<compile_context>
chip_gen: v5e
topology: v5e:2x2
jax: 0.10.0
libtpu: 0.0.40
codegen_flags: <defaults>
</compile_context>

<pallas_src>
import functools

import jax
import jax.numpy as jnp
from jax import lax
from jax.experimental import pallas as pl
from jax.experimental.pallas import tpu as pltpu

C_ENC = 256          # encoder output channels (fixed by pred_head Linear(256, ...))
_CHUNK = 1024        # in-kernel lane chunk (bounds the live f32 feature temp to 1 MiB)
_LANE = 128


def _cdiv(a, b):
    return -(-a // b)


def _round_up(x, m):
    return ((x + m - 1) // m) * m


def _vmem_budget_bytes():
    """Scoped-VMEM budget: ~3/4 of physical VMEM, clamped to [32, 96] MiB.
    v5e/v6e (128 MiB) -> 96 MiB, v7x (64 MiB) -> 48 MiB, unknown -> 48 MiB."""
    try:
        cap = int(pltpu.get_tpu_info().vmem_capacity_bytes)
    except Exception:
        cap = 64 << 20
    return max(32 << 20, min((cap * 3) // 4, 96 << 20))


def _plan_spatial(s_total, enc_bytes, budget_bytes, max_spatial_tile=None):
    """Pick (TS, chunk, NS, pad) for the flattened spatial axis.

    TS is a multiple of `chunk` (itself a multiple of 128); NS * TS >= s_total and
    the zero-padded remainder is corrected analytically inside the kernel, so any
    D*H*W is supported (no TS == S fallback)."""
    if s_total <= _CHUNK:
        ts = _round_up(s_total, _LANE)
        return ts, ts, 1, ts - s_total
    # VMEM budget: double-buffered enc-out tile + double-buffered input tile,
    # plus fixed costs (weights ~1.4 MiB double-buffered, a few live f32 chunk
    # temps, compiler slack).
    fixed = (3 << 20) + 3 * (C_ENC * _CHUNK * 4) + (6 << 20)
    per_elem = 2 * C_ENC * enc_bytes + 2 * 4
    ts_cap = max(_CHUNK,
                 min(16384, ((budget_bytes - fixed) // per_elem) // _CHUNK * _CHUNK))
    if max_spatial_tile is not None:
        ts_cap = max(_CHUNK, min(ts_cap, (max_spatial_tile // _CHUNK) * _CHUNK))
    ns = _cdiv(s_total, ts_cap)
    ts = min(_round_up(_cdiv(s_total, ns), _CHUNK), ts_cap)
    ns = _cdiv(s_total, ts)
    return ts, _CHUNK, ns, ns * ts - s_total


# -----------------------------------------------------------------------------
# Fused kernel: pointwise conv(1->256)+ReLU, chunked enc_out store, running
# global-average-pool sum, and the 3-layer MLP head on the last spatial tile.
# Grid: (B, NS).  Batch axis parallel, spatial axis arbitrary (reduction).
# -----------------------------------------------------------------------------
def _enc_pool_mlp_kernel(
    x_ref,        # (1, 1, TS)     f32   input tile (single input channel)
    cw_ref,       # (256, 1)       f32   1x1x1 conv weight
    cb_ref,       # (256, 1)       f32   conv bias
    w1t_ref,      # (256, 512)     f32   Linear(256->512).weight^T
    b1_ref,       # (1, 512)       f32
    w2t_ref,      # (512, 256)     f32   Linear(512->256).weight^T
    b2_ref,       # (1, 256)       f32
    w3t_ref,      # (256, out)     f32   Linear(256->out).weight^T
    b3_ref,       # (1, out)       f32
    enc_ref,      # (1, 256, TS)   enc_dtype  encoder-output tile
    pred_ref,     # (1, 1, out)    f32   prediction for this batch element
    acc_ref,      # (256, 1)       f32   VMEM scratch: running spatial sum
    *,
    s_true,       # static: true (unpadded) spatial size D*H*W
    pad,          # static: number of zero-padded spatial positions
    chunk,        # static: lane chunk size inside a tile
):
    s = pl.program_id(1)
    ns = pl.num_programs(1)
    ts = enc_ref.shape[-1]
    nc = ts // chunk                          # static (<= 16)

    cw = cw_ref[...]                          # (256, 1)
    cb = cb_ref[...]                          # (256, 1)

    @pl.when(s == 0)
    def _():
        acc_ref[...] = jnp.zeros_like(acc_ref)

    # ---- encoder (pointwise conv + ReLU), processed in static lane chunks ------
    # Chunking keeps the live f32 feature temp at (256, chunk) instead of
    # (256, TS); chunk offsets are static Python ints -> free ref slices.
    ones_col = jnp.ones((chunk, 1), jnp.float32)
    psum = jnp.zeros((C_ENC, 1), jnp.float32)
    for c in range(nc):
        lo = c * chunk
        xc = x_ref[0, :, lo:lo + chunk]                       # (1, chunk)
        feat = jnp.maximum(cw * xc + cb, 0.0)                 # (256, chunk) f32
        enc_ref[0, :, lo:lo + chunk] = feat.astype(enc_ref.dtype)
        if pad == 0:
            # Spatial reduction on the (otherwise idle) MXU -> frees VALU slots.
            psum = psum + jnp.dot(feat, ones_col,
                                  preferred_element_type=jnp.float32)
        else:
            # Exact f32 sum so the zero-pad correction below cancels exactly.
            psum = psum + jnp.sum(feat, axis=-1, keepdims=True)
    acc_ref[...] += psum

    # ---- global-average-pool + MLP head, fused on the last spatial tile --------
    @pl.when(s == ns - 1)
    def _():
        pooled = acc_ref[...]                                 # (256, 1), incl. pad
        if pad > 0:
            # Zero-padded inputs each contribute relu(conv_bias); remove exactly.
            pooled = pooled - float(pad) * jnp.maximum(cb, 0.0)
        pooled = pooled * (1.0 / float(s_true))
        # Row-vector x matrix MLP: out_dim lands on lanes -> unmasked stores.
        h = lax.dot_general(pooled, w1t_ref[...],
                            (((0,), (0,)), ((), ())),
                            preferred_element_type=jnp.float32) + b1_ref[...]
        h = jnp.maximum(h, 0.0)                               # (1, 512)
        h = jnp.dot(h, w2t_ref[...],
                    preferred_element_type=jnp.float32) + b2_ref[...]
        h = jnp.maximum(h, 0.0)                               # (1, 256)
        pred_ref[0] = jnp.dot(h, w3t_ref[...],
                              preferred_element_type=jnp.float32) + b3_ref[...]


def finetune_model_forward(img, params, return_feat=False, *,
                           enc_dtype=jnp.float32, max_spatial_tile=None,
                           vmem_budget_bytes=None):
    """img: (B, 1, D, H, W) float32 (NCDHW, like the PyTorch module)."""
    assert img.shape[1] == 1, "Image dimension must be 1"
    B, _, D, H, W = img.shape
    S = D * H * W
    out_dim = params["w3"].shape[0]
    enc_dtype = jnp.dtype(enc_dtype)

    budget = (vmem_budget_bytes if vmem_budget_bytes is not None
              else _vmem_budget_bytes())
    TS, CH, NS, PAD = _plan_spatial(S, enc_dtype.itemsize, budget, max_spatial_tile)
    S_pad = NS * TS

    x_flat = img.reshape(B, 1, S).astype(jnp.float32)
    if PAD:
        x_flat = jnp.pad(x_flat, ((0, 0), (0, 0), (0, PAD)))

    # Wrapper-side layout plumbing: PyTorch (out, in) weights -> transposed,
    # biases -> lane rows, conv params -> (256, 1) columns.
    cw = params["conv_w"].reshape(C_ENC, 1).astype(jnp.float32)
    cb = params["conv_b"].reshape(C_ENC, 1).astype(jnp.float32)
    w1t = params["w1"].T.astype(jnp.float32)          # (256, 512)
    w2t = params["w2"].T.astype(jnp.float32)          # (512, 256)
    w3t = params["w3"].T.astype(jnp.float32)          # (256, out)
    b1 = params["b1"].reshape(1, -1).astype(jnp.float32)
    b2 = params["b2"].reshape(1, -1).astype(jnp.float32)
    b3 = params["b3"].reshape(1, -1).astype(jnp.float32)

    kernel = functools.partial(_enc_pool_mlp_kernel, s_true=S, pad=PAD, chunk=CH)

    enc_flat, pred = pl.pallas_call(
        kernel,
        out_shape=(
            jax.ShapeDtypeStruct((B, C_ENC, S_pad), enc_dtype),
            jax.ShapeDtypeStruct((B, 1, out_dim), jnp.float32),
        ),
        grid_spec=pltpu.PrefetchScalarGridSpec(
            num_scalar_prefetch=0,
            grid=(B, NS),
            in_specs=[
                pl.BlockSpec((1, 1, TS), lambda b, s: (b, 0, s)),       # input tile
                pl.BlockSpec((C_ENC, 1), lambda b, s: (0, 0)),          # conv_w
                pl.BlockSpec((C_ENC, 1), lambda b, s: (0, 0)),          # conv_b
                pl.BlockSpec((C_ENC, 512), lambda b, s: (0, 0)),        # w1^T
                pl.BlockSpec((1, 512), lambda b, s: (0, 0)),            # b1
                pl.BlockSpec((512, C_ENC), lambda b, s: (0, 0)),        # w2^T
                pl.BlockSpec((1, C_ENC), lambda b, s: (0, 0)),          # b2
                pl.BlockSpec((C_ENC, out_dim), lambda b, s: (0, 0)),    # w3^T
                pl.BlockSpec((1, out_dim), lambda b, s: (0, 0)),        # b3
            ],
            out_specs=[
                pl.BlockSpec((1, C_ENC, TS), lambda b, s: (b, 0, s)),   # enc_out tile
                pl.BlockSpec((1, 1, out_dim), lambda b, s: (b, 0, 0)),  # pred (lane-dense)
            ],
            scratch_shapes=[pltpu.VMEM((C_ENC, 1), jnp.float32)],
        ),
        compiler_params=pltpu.CompilerParams(
            dimension_semantics=("parallel", "arbitrary"),
            vmem_limit_bytes=int(budget),
        ),
    )(x_flat, cw, cb, w1t, b1, w2t, b2, w3t, b3)

    if PAD:
        enc_flat = enc_flat[:, :, :S]
    enc_out = enc_flat.reshape(B, C_ENC, D, H, W)        # NCDHW encoder output
    pred_out = pred.reshape(B, out_dim)

    result = {"enc_out": enc_out, "pred_out": pred_out}
    if return_feat:
        result["feat"] = enc_out
    return result


def init_params(key, output_dim):
    # TODO(synk): the real encoder is an external nn.Module passed into __init__;
    # here it is modeled as a 1x1x1 Conv3d(1, 256) + ReLU stand-in.
    ks = jax.random.split(key, 8)
    return {
        # Conv3d(1, 256, kernel_size=1) in PyTorch layout.
        "conv_w": 0.1 * jax.random.normal(ks[0], (C_ENC, 1, 1, 1, 1), jnp.float32),
        "conv_b": 0.1 * jax.random.normal(ks[1], (C_ENC,), jnp.float32),
        # pred_head MLP, PyTorch nn.Linear layout: weight (out, in), bias (out,).
        "w1": 0.05 * jax.random.normal(ks[2], (512, C_ENC), jnp.float32),
        "b1": 0.05 * jax.random.normal(ks[3], (512,), jnp.float32),
        "w2": 0.05 * jax.random.normal(ks[4], (C_ENC, 512), jnp.float32),
        "b2": 0.05 * jax.random.normal(ks[5], (C_ENC,), jnp.float32),
        "w3": 0.05 * jax.random.normal(ks[6], (output_dim, C_ENC), jnp.float32),
        "b3": 0.05 * jax.random.normal(ks[7], (output_dim,), jnp.float32),
    }


def _reference(img, params):
    """Pure-JAX reference mirroring the PyTorch forward."""
    B = img.shape[0]
    S = img.shape[2] * img.shape[3] * img.shape[4]
    x = img.reshape(B, 1, S)
    cw = params["conv_w"].reshape(C_ENC, 1)
    cb = params["conv_b"].reshape(C_ENC, 1)
    feat = jnp.maximum(cw[None] * x + cb[None], 0.0)          # (B, 256, S)
    pooled = jnp.mean(feat, axis=-1)                          # (B, 256)
    h = jnp.maximum(jnp.dot(pooled, params["w1"].T) + params["b1"], 0.0)
    h = jnp.maximum(jnp.dot(h, params["w2"].T) + params["b2"], 0.0)
    pred = jnp.dot(h, params["w3"].T) + params["b3"]
    return feat, pred


if __name__ == "__main__":
    key = jax.random.PRNGKey(0)
    k_img, k_par, k_img2 = jax.random.split(key, 3)
    output_dim = 10
    params = init_params(k_par, output_dim)

    # --- test 1: small volume, single spatial tile, no padding ------------------
    B, D, H, W = 2, 8, 8, 8                                    # S = 512
    img = jax.random.normal(k_img, (B, 1, D, H, W), jnp.float32)
    out = jax.jit(lambda im: finetune_model_forward(im, params))(img)
    jax.block_until_ready(out)

    feat_ref, pred_ref = _reference(img, params)
    assert out["enc_out"].shape == (B, C_ENC, D, H, W)
    assert out["enc_out"].dtype == jnp.float32
    assert out["pred_out"].shape == (B, output_dim)
    enc = out["enc_out"].reshape(B, C_ENC, D * H * W).astype(jnp.float32)
    assert jnp.allclose(enc, feat_ref, atol=1e-5, rtol=1e-5), "enc_out mismatch (test 1)"
    assert jnp.allclose(out["pred_out"], pred_ref, atol=1e-3, rtol=1e-3), \
        "pred_out mismatch (test 1)"

    # --- test 2: odd volume -> multi-tile, multi-chunk, zero-padded spatial axis -
    B2, D2, H2, W2 = 1, 12, 13, 14                             # S = 2184 (awkward)
    img2 = jax.random.normal(k_img2, (B2, 1, D2, H2, W2), jnp.float32)
    out2 = jax.jit(lambda im: finetune_model_forward(im, params,
                                                     max_spatial_tile=2048))(img2)
    jax.block_until_ready(out2)

    feat_ref2, pred_ref2 = _reference(img2, params)
    assert out2["enc_out"].shape == (B2, C_ENC, D2, H2, W2)
    enc2 = out2["enc_out"].reshape(B2, C_ENC, D2 * H2 * W2).astype(jnp.float32)
    assert jnp.allclose(enc2, feat_ref2, atol=1e-5, rtol=1e-5), "enc_out mismatch (test 2)"
    assert jnp.allclose(out2["pred_out"], pred_ref2, atol=1e-3, rtol=1e-3), \
        "pred_out mismatch (test 2)"

    print("KERNEL_OK")
</pallas_src>

<mosaic_0001>
module attributes {stable_mosaic.version = 11 : i64} {
  func.func @_enc_pool_mlp_kernel(%arg0: i32, %arg1: i32, %arg2: memref<1x1x512xf32, #tpu.memory_space<vmem>>, %arg3: memref<256x1xf32, #tpu.memory_space<vmem>>, %arg4: memref<256x1xf32, #tpu.memory_space<vmem>>, %arg5: memref<256x512xf32, #tpu.memory_space<vmem>>, %arg6: memref<1x512xf32, #tpu.memory_space<vmem>>, %arg7: memref<512x256xf32, #tpu.memory_space<vmem>>, %arg8: memref<1x256xf32, #tpu.memory_space<vmem>>, %arg9: memref<256x10xf32, #tpu.memory_space<vmem>>, %arg10: memref<1x10xf32, #tpu.memory_space<vmem>>, %arg11: memref<1x256x512xf32, #tpu.memory_space<vmem>>, %arg12: memref<1x1x10xf32, #tpu.memory_space<vmem>>, %arg13: memref<256x1xf32, #tpu.memory_space<vmem>>) attributes {dimension_semantics = [#tpu.dimension_semantics<parallel>, #tpu.dimension_semantics<arbitrary>], iteration_bounds = array<i64: 2, 1>, scalar_prefetch = 0 : i64, scratch_operands = 1 : i64, tpu.core_type = #tpu.core_type<tc>, window_params = [{transform_indices = @transform_0, window_bounds = array<i64: 1, 1, 512>}, {pipeline_mode = #tpu.pipeline_mode<synchronous>, transform_indices = @transform_1, window_bounds = array<i64: 256, 1>}, {pipeline_mode = #tpu.pipeline_mode<synchronous>, transform_indices = @transform_2, window_bounds = array<i64: 256, 1>}, {pipeline_mode = #tpu.pipeline_mode<synchronous>, transform_indices = @transform_3, window_bounds = array<i64: 256, 512>}, {pipeline_mode = #tpu.pipeline_mode<synchronous>, transform_indices = @transform_4, window_bounds = array<i64: 1, 512>}, {pipeline_mode = #tpu.pipeline_mode<synchronous>, transform_indices = @transform_5, window_bounds = array<i64: 512, 256>}, {pipeline_mode = #tpu.pipeline_mode<synchronous>, transform_indices = @transform_6, window_bounds = array<i64: 1, 256>}, {pipeline_mode = #tpu.pipeline_mode<synchronous>, transform_indices = @transform_7, window_bounds = array<i64: 256, 10>}, {pipeline_mode = #tpu.pipeline_mode<synchronous>, transform_indices = @transform_8, window_bounds = array<i64: 1, 10>}, {transform_indices = @transform_9, window_bounds = array<i64: 1, 256, 512>}, {transform_indices = @transform_10, window_bounds = array<i64: 1, 1, 10>}]} {
    %c0 = arith.constant 0 : index
    %c0_0 = arith.constant 0 : index
    %0 = vector.load %arg3[%c0, %c0_0] : memref<256x1xf32, #tpu.memory_space<vmem>>, vector<256x1xf32>
    %c0_1 = arith.constant 0 : index
    %c0_2 = arith.constant 0 : index
    %1 = vector.load %arg4[%c0_1, %c0_2] : memref<256x1xf32, #tpu.memory_space<vmem>>, vector<256x1xf32>
    %c0_i32 = arith.constant 0 : i32
    %2 = arith.cmpi eq, %arg1, %c0_i32 : i32
    %3 = arith.extui %2 : i1 to i32
    %c0_i32_3 = arith.constant 0 : i32
    %4 = arith.cmpi ne, %3, %c0_i32_3 : i32
    scf.if %4 {
      %cst_19 = arith.constant 0.000000e+00 : f32
      %27 = vector.broadcast %cst_19 : f32 to vector<256x1xf32>
      %c0_20 = arith.constant 0 : index
      %c0_21 = arith.constant 0 : index
      %28 = vector.load %arg13[%c0_20, %c0_21] : memref<256x1xf32, #tpu.memory_space<vmem>>, vector<256x1xf32>
      tpu.vector_store %arg13[%c0_20, %c0_21], %27 {strides = array<i32>} : memref<256x1xf32, #tpu.memory_space<vmem>>, vector<256x1xf32>,
    } else {
    }
    %cst = arith.constant 1.000000e+00 : f32
    %5 = vector.broadcast %cst : f32 to vector<512x1xf32>
    %cst_4 = arith.constant 0.000000e+00 : f32
    %6 = vector.broadcast %cst_4 : f32 to vector<256x1xf32>
    %c0_5 = arith.constant 0 : index
    %c0_6 = arith.constant 0 : index
    %c0_7 = arith.constant 0 : index
    %7 = vector.load %arg2[%c0_5, %c0_6, %c0_7] : memref<1x1x512xf32, #tpu.memory_space<vmem>>, vector<1x1x512xf32>
    %8 = vector.shape_cast %7 : vector<1x1x512xf32> to vector<1x512xf32>
    %9 = vector.broadcast %0 : vector<256x1xf32> to vector<256x512xf32>
    %10 = vector.broadcast %8 : vector<1x512xf32> to vector<256x512xf32>
    %11 = arith.mulf %9, %10 : vector<256x512xf32>
    %12 = vector.broadcast %1 : vector<256x1xf32> to vector<256x512xf32>
    %13 = arith.addf %11, %12 : vector<256x512xf32>
    %cst_8 = arith.constant 0.000000e+00 : f32
    %14 = vector.broadcast %cst_8 : f32 to vector<256x512xf32>
    %15 = arith.maximumf %13, %14 : vector<256x512xf32>
    %c0_9 = arith.constant 0 : index
    %c0_10 = arith.constant 0 : index
    %c0_11 = arith.constant 0 : index
    %16 = vector.load %arg11[%c0_9, %c0_10, %c0_11] : memref<1x256x512xf32, #tpu.memory_space<vmem>>, vector<1x256x512xf32>
    %17 = vector.shape_cast %16 : vector<1x256x512xf32> to vector<256x512xf32>
    %18 = vector.shape_cast %15 : vector<256x512xf32> to vector<1x256x512xf32>
    tpu.vector_store %arg11[%c0_9, %c0_10, %c0_11], %18 {strides = array<i32>} : memref<1x256x512xf32, #tpu.memory_space<vmem>>, vector<1x256x512xf32>,
    %cst_12 = arith.constant dense<0.000000e+00> : vector<256x1xf32>
    %19 = tpu.matmul %15, %5, %cst_12 {dimension_numbers = #tpu.dot_dimension_numbers<[1], [0], [0], [1], [0, 0, 1, 1], [], []>} : vector<256x512xf32>, vector<512x1xf32>, vector<256x1xf32> -> vector<256x1xf32>
    %20 = arith.addf %6, %19 : vector<256x1xf32>
    %c0_13 = arith.constant 0 : index
    %c0_14 = arith.constant 0 : index
    %21 = vector.load %arg13[%c0_13, %c0_14] : memref<256x1xf32, #tpu.memory_space<vmem>>, vector<256x1xf32>
    %22 = arith.addf %21, %20 : vector<256x1xf32>
    %c0_15 = arith.constant 0 : index
    %c0_16 = arith.constant 0 : index
    %23 = vector.load %arg13[%c0_15, %c0_16] : memref<256x1xf32, #tpu.memory_space<vmem>>, vector<256x1xf32>
    tpu.vector_store %arg13[%c0_15, %c0_16], %22 {strides = array<i32>} : memref<256x1xf32, #tpu.memory_space<vmem>>, vector<256x1xf32>,
    %c0_i32_17 = arith.constant 0 : i32
    %24 = arith.cmpi eq, %arg1, %c0_i32_17 : i32
    %25 = arith.extui %24 : i1 to i32
    %c0_i32_18 = arith.constant 0 : i32
    %26 = arith.cmpi ne, %25, %c0_i32_18 : i32
    scf.if %26 {
      %c0_19 = arith.constant 0 : index
      %c0_20 = arith.constant 0 : index
      %27 = vector.load %arg13[%c0_19, %c0_20] : memref<256x1xf32, #tpu.memory_space<vmem>>, vector<256x1xf32>
      %cst_21 = arith.constant 0.001953125 : f32
      %28 = vector.broadcast %cst_21 : f32 to vector<256x1xf32>
      %29 = arith.mulf %27, %28 : vector<256x1xf32>
      %c0_22 = arith.constant 0 : index
      %c0_23 = arith.constant 0 : index
      %30 = vector.load %arg5[%c0_22, %c0_23] : memref<256x512xf32, #tpu.memory_space<vmem>>, vector<256x512xf32>
      %cst_24 = arith.constant dense<0.000000e+00> : vector<1x512xf32>
      %31 = tpu.matmul %29, %30, %cst_24 {dimension_numbers = #tpu.dot_dimension_numbers<[0], [0], [1], [1], [0, 1, 1, 1], [], []>} : vector<256x1xf32>, vector<256x512xf32>, vector<1x512xf32> -> vector<1x512xf32>
      %c0_25 = arith.constant 0 : index
      %c0_26 = arith.constant 0 : index
      %32 = vector.load %arg6[%c0_25, %c0_26] : memref<1x512xf32, #tpu.memory_space<vmem>>, vector<1x512xf32>
      %33 = arith.addf %31, %32 : vector<1x512xf32>
      %cst_27 = arith.constant 0.000000e+00 : f32
      %34 = vector.broadcast %cst_27 : f32 to vector<1x512xf32>
      %35 = arith.maximumf %33, %34 : vector<1x512xf32>
      %c0_28 = arith.constant 0 : index
      %c0_29 = arith.constant 0 : index
      %36 = vector.load %arg7[%c0_28, %c0_29] : memref<512x256xf32, #tpu.memory_space<vmem>>, vector<512x256xf32>
      %cst_30 = arith.constant dense<0.000000e+00> : vector<1x256xf32>
      %37 = tpu.matmul %35, %36, %cst_30 {dimension_numbers = #tpu.dot_dimension_numbers<[1], [0], [0], [1], [0, 0, 1, 1], [], []>} : vector<1x512xf32>, vector<512x256xf32>, vector<1x256xf32> -> vector<1x256xf32>
      %c0_31 = arith.constant 0 : index
      %c0_32 = arith.constant 0 : index
      %38 = vector.load %arg8[%c0_31, %c0_32] : memref<1x256xf32, #tpu.memory_space<vmem>>, vector<1x256xf32>
      %39 = arith.addf %37, %38 : vector<1x256xf32>
      %cst_33 = arith.constant 0.000000e+00 : f32
      %40 = vector.broadcast %cst_33 : f32 to vector<1x256xf32>
      %41 = arith.maximumf %39, %40 : vector<1x256xf32>
      %c0_34 = arith.constant 0 : index
      %c0_35 = arith.constant 0 : index
      %42 = vector.load %arg9[%c0_34, %c0_35] : memref<256x10xf32, #tpu.memory_space<vmem>>, vector<256x10xf32>
      %cst_36 = arith.constant dense<0.000000e+00> : vector<1x10xf32>
      %43 = tpu.matmul %41, %42, %cst_36 {dimension_numbers = #tpu.dot_dimension_numbers<[1], [0], [0], [1], [0, 0, 1, 1], [], []>} : vector<1x256xf32>, vector<256x10xf32>, vector<1x10xf32> -> vector<1x10xf32>
      %c0_37 = arith.constant 0 : index
      %c0_38 = arith.constant 0 : index
      %44 = vector.load %arg10[%c0_37, %c0_38] : memref<1x10xf32, #tpu.memory_space<vmem>>, vector<1x10xf32>
      %45 = arith.addf %43, %44 : vector<1x10xf32>
      %c0_39 = arith.constant 0 : index
      %c0_40 = arith.constant 0 : index
      %c0_41 = arith.constant 0 : index
      %46 = vector.load %arg12[%c0_39, %c0_40, %c0_41] : memref<1x1x10xf32, #tpu.memory_space<vmem>>, vector<1x1x10xf32>
      %47 = vector.shape_cast %46 : vector<1x1x10xf32> to vector<1x10xf32>
      %48 = vector.shape_cast %45 : vector<1x10xf32> to vector<1x1x10xf32>
      tpu.vector_store %arg12[%c0_39, %c0_40, %c0_41], %48 {strides = array<i32>} : memref<1x1x10xf32, #tpu.memory_space<vmem>>, vector<1x1x10xf32>,
    } else {
    }
    return
  }
  func.func @transform_0(%arg0: i32, %arg1: i32) -> (i32, i32, i32) {
    %c0_i32 = arith.constant 0 : i32
    %c0_i32_0 = arith.constant 0 : i32
    return %arg0, %c0_i32, %arg1 : i32, i32, i32
  }
  func.func @transform_1(%arg0: i32, %arg1: i32) -> (i32, i32) {
    %c0_i32 = arith.constant 0 : i32
    %c0_i32_0 = arith.constant 0 : i32
    %c0_i32_1 = arith.constant 0 : i32
    return %c0_i32, %c0_i32_0 : i32, i32
  }
  func.func @transform_2(%arg0: i32, %arg1: i32) -> (i32, i32) {
    %c0_i32 = arith.constant 0 : i32
    %c0_i32_0 = arith.constant 0 : i32
    %c0_i32_1 = arith.constant 0 : i32
    return %c0_i32, %c0_i32_0 : i32, i32
  }
  func.func @transform_3(%arg0: i32, %arg1: i32) -> (i32, i32) {
    %c0_i32 = arith.constant 0 : i32
    %c0_i32_0 = arith.constant 0 : i32
    %c0_i32_1 = arith.constant 0 : i32
    return %c0_i32, %c0_i32_0 : i32, i32
  }
  func.func @transform_4(%arg0: i32, %arg1: i32) -> (i32, i32) {
    %c0_i32 = arith.constant 0 : i32
    %c0_i32_0 = arith.constant 0 : i32
    %c0_i32_1 = arith.constant 0 : i32
    return %c0_i32, %c0_i32_0 : i32, i32
  }
  func.func @transform_5(%arg0: i32, %arg1: i32) -> (i32, i32) {
    %c0_i32 = arith.constant 0 : i32
    %c0_i32_0 = arith.constant 0 : i32
    %c0_i32_1 = arith.constant 0 : i32
    return %c0_i32, %c0_i32_0 : i32, i32
  }
  func.func @transform_6(%arg0: i32, %arg1: i32) -> (i32, i32) {
    %c0_i32 = arith.constant 0 : i32
    %c0_i32_0 = arith.constant 0 : i32
    %c0_i32_1 = arith.constant 0 : i32
    return %c0_i32, %c0_i32_0 : i32, i32
  }
  func.func @transform_7(%arg0: i32, %arg1: i32) -> (i32, i32) {
    %c0_i32 = arith.constant 0 : i32
    %c0_i32_0 = arith.constant 0 : i32
    %c0_i32_1 = arith.constant 0 : i32
    return %c0_i32, %c0_i32_0 : i32, i32
  }
  func.func @transform_8(%arg0: i32, %arg1: i32) -> (i32, i32) {
    %c0_i32 = arith.constant 0 : i32
    %c0_i32_0 = arith.constant 0 : i32
    %c0_i32_1 = arith.constant 0 : i32
    return %c0_i32, %c0_i32_0 : i32, i32
  }
  func.func @transform_9(%arg0: i32, %arg1: i32) -> (i32, i32, i32) {
    %c0_i32 = arith.constant 0 : i32
    %c0_i32_0 = arith.constant 0 : i32
    return %arg0, %c0_i32, %arg1 : i32, i32, i32
  }
  func.func @transform_10(%arg0: i32, %arg1: i32) -> (i32, i32, i32) {
    %c0_i32 = arith.constant 0 : i32
    %c0_i32_0 = arith.constant 0 : i32
    %c0_i32_1 = arith.constant 0 : i32
    return %arg0, %c0_i32, %c0_i32_0 : i32, i32, i32
  }
}

</mosaic_0001>

<bundles_post_ra>
// kernel: _lambda_.1
= control target key start
LH: loop header
LB: loop body
LE: loop exit
PB: predicated region body
PF: predicated region fallthrough
CT: control target
= control target key end

     0   :  { %s5127_s0 = inlined_call_operand.vmem [shape: f32[2,1,512], index: 0, kind: input, shape index: {}]   ;;  %s5128_s1 = inlined_call_operand.hbm [shape: f32[256,1], index: 1, kind: input, shape index: {}]   ;;  %s5129_s2 = inlined_call_operand.hbm [shape: f32[256,1], index: 2, kind: input, shape index: {}]   ;;  %s5130_s3 = inlined_call_operand.hbm [shape: f32[256,512], index: 3, kind: input, shape index: {}]   ;;  %s5131_s4 = inlined_call_operand.vmem [shape: f32[1,512], index: 4, kind: input, shape index: {}]   ;;  %s5132_s5 = inlined_call_operand.hbm [shape: f32[512,256], index: 5, kind: input, shape index: {}]   ;;  %s5133_s6 = inlined_call_operand.vmem [shape: f32[1,256], index: 6, kind: input, shape index: {}]   ;;  %s5134_s7 = inlined_call_operand.hbm [shape: f32[256,10], index: 7, kind: input, shape index: {}]   ;;  %s5135_s8 = inlined_call_operand.vmem [shape: f32[1,10], index: 8, kind: input, shape index: {}]   ;;  %s5136_s9 = inlined_call_operand.vmem [shape: f32[2,256,512], index: 9, kind: output, shape index: {0}]   ;;  %s5137_s10 = inlined_call_operand.hbm [shape: f32[2,1,10], index: 10, kind: output, shape index: {1}]  }
   0x1   :  { %5184 = sst [smem:[#allocation24_spill]] %s5129_s2 }
   0x2   :  { %5185 = sst [smem:[#allocation25_spill]] %s5132_s5 }
   0x3   :  { %16 = vsyncpa [#allocation4], 0 }
   0x4   :  { %17 = vsyncpa [#allocation7], 0 }
   0x5   :  { %18 = vsyncpa [#allocation10], 0 }
   0x6   :  { %19 = vsyncpa [#allocation5], 0 }
   0x7   :  { %21 = vsyncpa [#allocation5 + $0x1], 0  ;;  %s3518_s13 = smov 0   ;;  %s3520_s14 = smov 0  }
   0x8   :  { %s3522_s15 = smov 0   ;;  %s3524_s16 = smov 0  }
   0x9   :  { %s3526_s17 = smov 0   ;;  %s3528_s18 = smov 0  }
   0xa LB: > { %5186 = sst [smem:[#allocation17_spill]] %s3423_s13  ;;  %s2964_s19 = sadd.s32 4294967295, %s3443_s18   ;;  %s3443_s18 = sphi %s3528_s18, %s27_s18   ;;  %s3439_s17 = sphi %s3526_s17, %s5245_s17   ;;  %s3435_s16 = sphi %s3524_s16, %s5244_s16   ;;  %s3431_s15 = sphi %s3522_s15, %s5243_s15   ;;  %s3427_s14 = sphi %s3520_s14, %s5247_s14   ;;  %s3423_s13 = sphi %s3518_s13, %s5246_s13  }
   0xb   : > { %5187 = sst [smem:[#allocation18_spill]] %s3431_s15  ;;  %s2965_s20 = sadd.s32 4294967294, %s3443_s18  }
   0xc   : > { %5188 = sst [smem:[#allocation19_spill]] %s3439_s17  ;;  %s39_s21 = sadd.s32 1, %s3439_s17 }
   0xd   : > { %5189 = sst [smem:[#allocation20_spill]] %s3443_s18  ;;  %s270_s22 = sadd.s32 1, %s3431_s15 }
   0xe   : > { %p41_p0 = scmp.ge.s32.totalorder %s39_s21, 2  ;;  %p280_p1 = scmp.ne.s32.totalorder %s3431_s15, %s3427_s14 }
   0xf   : > { %p281_p2 = scmp.eq.s32.totalorder %s2964_s19, 1  ;;  %p286_p3 = scmp.ne.s32.totalorder %s3427_s14, %s3423_s13 }
  0x10   : > { %s5249_s21 = smov (%p41_p0, %s39_s21), 0  ;;  %p287_p5 = scmp.eq.s32.totalorder %s2965_s20, 1 }
  0x11   : > { %5190 = sst [smem:[#allocation21_spill]] %s5249_s21  ;;  %p3558_p4 = por %p281_p2, %p280_p1 }
  0x12   : > { %s267_s24 = ssub.s32 %s3439_s17, %s5249_s21  ;;  %p2966_p6 = scmp.ge.s32.totalorder %s3443_s18, 1 }
  0x13   : > { %p268_p7 = scmp.eq.s32.totalorder %s267_s24, 0  ;;  %p3565_p8 = por %p287_p5, %p286_p3 }
  0x14   : > { %p294_p9 = scmp.lt.s32.totalorder %s3443_s18, 3  ;;  %p3577_p11 = scmp.eq.s32.totalorder %s2964_s19, 0 }
  0x15   : > { %s5192_s25 = scalar_select %p3565_p8, 1, 0 }
  0x16   : > { %s3571_s26 = scalar_select %p268_p7, %s3431_s15, %s270_s22  }
  0x17   : > { %5193 = sst [smem:[#allocation22_spill]] %s5192_s25  ;;  %p3573_p10 = pnand %p2966_p6, %p294_p9 }
  0x18   : > { %5194 = sst [smem:[#allocation23_spill]] %s3571_s26  ;;  %s3445_s20 = smov [#allocation6]  }
  0x19   : > { %p3107_p12 = pneg %p3573_p10  ;;  %s5197_s2 = sld [smem:[#allocation24_spill]] }
  0x1a   : > { %s321_s19 = sshll.u32 %s3445_s20, 4  ;;  %s5199_s5 = sld [smem:[#allocation25_spill]]  ;;  %s322_s19 = int_to_ptr.vmem [resolvable:$true] %s321_s19 }
  0x1b   : > { %p3588_p13 = pnand %p3577_p11, %p3107_p12  ;;  %s3446_s17 = smov 128  }
  0x1c   : > { %s3447_s29 = smov 8   ;;  %s3448_s30 = smov [#allocation9]  }
  0x1d   : > { %s3449_s26 = smov 256   ;;  %s3450_s15 = smov 16  }
  0x1e   : > { %s305_s24 = sshll.u32 %s5128_s1, 4  ;;  %s3455_s13 = smov [#allocation11]   ;;  %s306_s24 = int_to_ptr.hbm [resolvable:$true] %s305_s24 }
  0x1f   : > { %s319_s11 = sshll.u32 %s5197_s2, 4  ;;  %s352_s2 = sshll.u32 %s3448_s30, 4  ;;  %s320_s11 = int_to_ptr.hbm [resolvable:$true] %s319_s11  ;;  %s353_s2 = int_to_ptr.vmem [resolvable:$true] %s352_s2 }
  0x20   : > { %s350_s21 = sshll.u32 %s5199_s5, 4  ;;  %s3451_s5 = smov [#allocation3]   ;;  %s351_s21 = int_to_ptr.hbm [resolvable:$true] %s350_s21 }
  0x21   : > { %3113 = dma.hbm_to_vmem [thread:$0]  (!%p3588_p13), %s320_s11, 4096, %s322_s19, [#allocation7], %s3446_s17, %s3446_s17, %s3447_s29  }
  0x22   : > { %3119 = dma.hbm_to_vmem [thread:$0]  (!%p3588_p13), %s351_s21, 16384, %s353_s2, [#allocation10], %s3449_s26, %s3449_s26, %s3450_s15  }
  0x23   : > { %s307_s25 = sshll.u32 %s3451_s5, 4  ;;  %s333_s11 = sshll.u32 %s5130_s3, 4  ;;  %s308_s25 = int_to_ptr.vmem [resolvable:$true] %s307_s25  ;;  %s334_s11 = int_to_ptr.hbm [resolvable:$true] %s333_s11 }
  0x24   : > { %3110 = dma.hbm_to_vmem [thread:$0]  (!%p3588_p13), %s306_s24, 4096, %s308_s25, [#allocation4], %s3446_s17, %s3446_s17, %s3447_s29  }
  0x25   : > { %s3452_s2 = smov [#allocation8]   ;;  %s367_s19 = sshll.u32 %s5134_s7, 4  ;;  %s368_s19 = int_to_ptr.hbm [resolvable:$true] %s367_s19 }
  0x26   : > { %s335_s15 = sshll.u32 %s3452_s2, 4  ;;  %s3453_s5 = smov 512   ;;  %s336_s15 = int_to_ptr.vmem [resolvable:$true] %s335_s15 }
  0x27   : > { %s3454_s30 = smov 32   ;;  %s369_s18 = sshll.u32 %s3455_s13, 4  ;;  %s370_s18 = int_to_ptr.vmem [resolvable:$true] %s369_s18 }
  0x28   : > { %3116 = dma.hbm_to_vmem [thread:$0]  (!%p3588_p13), %s334_s11, 16384, %s336_s15, [#allocation7], %s3453_s5, %s3453_s5, %s3454_s30  }
  0x29   : > { %3122 = dma.hbm_to_vmem [thread:$0]  (!%p3588_p13), %s368_s19, 4096, %s370_s18, [#allocation10], %s3446_s17, %s3446_s17, %s3447_s29  }
  0x2a   : > { %400 = sbr.rel (%p3573_p10) target bundleno = 1114 (0x45a), region = 56 }
  0x2f   : > { %3406 = dma.done.wait (%p3577_p11), [#allocation4], 4096  }
  0x30   : > { %3408 = vsyncadd (%p3577_p11), [#allocation4], 4294963200 }
  0x31   : > { %3410 = dma.done.wait (%p3577_p11), [#allocation7], 20480  }
  0x32   : > { %3412 = vsyncadd (%p3577_p11), [#allocation7], 4294946816 }
  0x33   : > { %3414 = dma.done.wait (%p3577_p11), [#allocation10], 20480  }
  0x34   : > { %3416 = vsyncadd (%p3577_p11), [#allocation10], 4294946816  ;;  %v3456_v0 = vmov 0   ;;  %v491_v1 = vld [vmem:[#allocation3 + $0x10] sm:$0xff]  ;;  %v490_v2 = vld [vmem:[#allocation3 + $0x8] sm:$0xff]  ;;  %v3457_v25 = vmov 1.0   ;;  %s2807_s30 = scalar_lea.hbm %s5137_s10, %s3435_s16 }
  0x35   : > { %3202 = vset.pattern.permute.xlu2 %v3456_v0  ;;  %3201 = vset.pattern.permute.xlu1 %v3456_v0  ;;  %v489_v3 = vld [vmem:[#allocation3] sm:$0xff]  ;;  %v523_v4 = vld [vmem:[#allocation6 + $0x10] sm:$0xff]  ;;  %v522_v5 = vld [vmem:[#allocation6 + $0x8] sm:$0xff]  ;;  %p471_p0 = scmp.lt.s32.totalorder %s3435_s16, 1  ;;  %vm557_vm0 = vcmask 7168   ;;  %s468_s26 = sand.u32 1, %s3427_s14  }
  0x36   : > { %3200 = vset.pattern.permute.xlu0 %v3456_v0  ;;  %603 = vperm.xlu2 %3202, %v491_v1   ;;  %v521_v6 = vld [vmem:[#allocation6] sm:$0xff]  ;;  %v524_v8 = vld [vmem:[#allocation6 + $0x18] sm:$0xff]  ;;  %v526_v10 = vld [vmem:[#allocation6 + $0x28] sm:$0xff]  ;;  %s2811_s27 = sshll.u32 %s2807_s30, 4  ;;  %vm2783_vm1 = vcmask 73728   ;;  %s2795_s28 = scalar_lea.sflag [#allocation5], %s468_s26  ;;  %s2812_s27 = int_to_ptr.hbm [resolvable:$true] %s2811_s27 }
  0x37   : > { %598 = vperm.xlu1 %3201, %v490_v2   ;;  %593 = vperm.xlu0 %3200, %v489_v3   ;;  %v493_v7 = vld [vmem:[#allocation3 + $0x20] sm:$0xff]  ;;  %v492_v9 = vld [vmem:[#allocation3 + $0x18] sm:$0xff]  ;;  %v494_v11 = vld [vmem:[#allocation3 + $0x28] sm:$0xff]  ;;  %s3689_s17 = scalar_select %p471_p0, %s3435_s16, 1 }
  0x38   : > { %v525_v12 = vld [vmem:[#allocation6 + $0x20] sm:$0xff]  ;;  %v496_v13 = vld [vmem:[#allocation3 + $0x38] sm:$0xff]  ;;  %v527_v14 = vld [vmem:[#allocation6 + $0x30] sm:$0xff]  ;;  %1432 = vmatpush.msra.mxu0 %v3457_v25  ;;  %1545 = vmatpush.msra.mxu1 %v3457_v25  ;;  %s3373_s22 = scalar_lea.hbm %s5137_s10, 2 }
  0x39   : > { %v495_v15 = vld [vmem:[#allocation3 + $0x30] sm:$0xff]  ;;  %v529_v16 = vld [vmem:[#allocation6 + $0x40] sm:$0xff]  ;;  %v528_v18 = vld [vmem:[#allocation6 + $0x38] sm:$0xff]  ;;  %1658 = vmatpush.msra.mxu2 %v3457_v25  ;;  %1771 = vmatpush.msra.mxu3 %v3457_v25  ;;  %s2979_s25 = sshll.u32 %s3689_s17, 2  ;;  %s2984_s29 = sshll.u32 %s3689_s17, 10 }
  0x3a   : > { %v497_v17 = vld [vmem:[#allocation3 + $0x40] sm:$0xff]  ;;  %v499_v19 = vld [vmem:[#allocation3 + $0x50] sm:$0xff]  ;;  %v530_v20 = vld [vmem:[#allocation6 + $0x48] sm:$0xff]  ;;  %1433 = vmatpush.msra.mxu0 %v3457_v25  ;;  %1546 = vmatpush.msra.mxu1 %v3457_v25  ;;  %s477_s12 = scalar_lea.vmem %s5127_s0, %s2979_s25  ;;  %s3736_s24 = scalar_lea.vmem %s5136_s9, %s2984_s29 }
  0x3b   : > { %v498_v21 = vld [vmem:[#allocation3 + $0x48] sm:$0xff]  ;;  %v532_v22 = vld [vmem:[#allocation6 + $0x58] sm:$0xff]  ;;  %v531_v24 = vld [vmem:[#allocation6 + $0x50] sm:$0xff]  ;;  %1659 = vmatpush.msra.mxu2 %v3457_v25  ;;  %1772 = vmatpush.msra.mxu3 %v3457_v25  ;;  %s469_s17 = scalar_lea.vmem [#allocation12], %s468_s26 }
  0x3c   : > { %v500_v23 = vld [vmem:[#allocation3 + $0x58] sm:$0xff]  ;;  %v502_v26 = vld [vmem:[#allocation3 + $0x68] sm:$0xff]  ;;  %v533_v27 = vld [vmem:[#allocation6 + $0x60] sm:$0xff]  ;;  %1434 = vmatpush.msra.mxu0 %v3457_v25  ;;  %1547 = vmatpush.msra.mxu1 %v3457_v25  ;;  %s2809_s25 = sshll.u32 %s469_s17, 4  ;;  %s2810_s25 = int_to_ptr.vmem [resolvable:$true] %s2809_s25 }
  0x3d   : > { %v501_v28 = vld [vmem:[#allocation3 + $0x60] sm:$0xff]  ;;  %1660 = vmatpush.msra.mxu2 %v3457_v25  ;;  %1773 = vmatpush.msra.mxu3 %v3457_v25  ;;  %v535_v29 = vld [vmem:[#allocation6 + $0x70] sm:$0xff]  ;;  %v534_v31 = vld [vmem:[#allocation6 + $0x68] sm:$0xff] }
  0x3e   : > { %900 = vperm.xlu2 %3202, %v523_v4   ;;  %1435 = vmatpush.msra.mxu0 %v3457_v25  ;;  %v503_v30 = vld [vmem:[#allocation3 + $0x70] sm:$0xff]  ;;  %v505_v32 = vld [vmem:[#allocation3 + $0x80] sm:$0xff]  ;;  %v536_v33 = vld [vmem:[#allocation6 + $0x78] sm:$0xff] }
  0x3f   : > { %895 = vperm.xlu1 %3201, %v522_v5   ;;  %890 = vperm.xlu0 %3200, %v521_v6   ;;  %v504_v34 = vld [vmem:[#allocation3 + $0x78] sm:$0xff]  ;;  %v538_v35 = vld [vmem:[#allocation6 + $0x88] sm:$0xff]  ;;  %v537_v37 = vld [vmem:[#allocation6 + $0x80] sm:$0xff] }
  0x40   : > { %1548 = vmatpush.msra.mxu1 %v3457_v25  ;;  %1661 = vmatpush.msra.mxu2 %v3457_v25  ;;  %v506_v36 = vld [vmem:[#allocation3 + $0x88] sm:$0xff]  ;;  %v508_v39 = vld [vmem:[#allocation3 + $0x98] sm:$0xff]  ;;  %v539_v40 = vld [vmem:[#allocation6 + $0x90] sm:$0xff] }
  0x41   : > { %1774 = vmatpush.msra.mxu3 %v3457_v25  ;;  %1436 = vmatpush.msra.mxu0 %v3457_v25  ;;  %v507_v41 = vld [vmem:[#allocation3 + $0x90] sm:$0xff]  ;;  %v590_v42 = vld [vmem:[%s477_s12] sm:$0xf]  ;;  %v540_v46 = vld [vmem:[#allocation6 + $0x98] sm:$0xff]  ;;  %s3367_s12 = sshra.s32 %s2812_s27, 4  ;;  %s3368_s12 = int_to_ptr.hbm [resolvable:$true] %s3367_s12 }
  0x42   : > { %1549 = vmatpush.msra.mxu1 %v3457_v25  ;;  %1662 = vmatpush.msra.mxu2 %v3457_v25  ;;  %v541_v43 = vld [vmem:[#allocation6 + $0xa0] sm:$0xff]  ;;  %v3709_v47 = vperm.slane %v590_v42, 0  ;;  %v3711_v48 = vperm.slane %v590_v42, 1  ;;  %v3713_v49 = vperm.slane %v590_v42, 2  ;;  %v3715_v50 = vperm.slane %v590_v42, 3  ;;  %v511_v62 = vld [vmem:[#allocation3 + $0xb0] sm:$0xff]  ;;  %p3374_p5 = scmp.lt.s32.totalorder %s3368_s12, %s5137_s10 }
  0x43   : > { %1775 = vmatpush.msra.mxu3 %v3457_v25  ;;  %1437 = vmatpush.msra.mxu0 %v3457_v25  ;;  %v509_v44 = vld [vmem:[#allocation3 + $0xa0] sm:$0xff]  ;;  %v542_v63 = vld [vmem:[#allocation6 + $0xa8] sm:$0xff]  ;;  %v544_v5 = vld [vmem:[#allocation6 + $0xb8] sm:$0xff]  ;;  %s3369_s16 = scalar_lea.hbm %s3368_s12, 1 }
  0x44   : > { %1550 = vmatpush.msra.mxu1 %v3457_v25  ;;  %1663 = vmatpush.msra.mxu2 %v3457_v25  ;;  %v510_v1 = vld [vmem:[#allocation3 + $0xa8] sm:$0xff]  ;;  %v512_v6 = vld [vmem:[#allocation3 + $0xb8] sm:$0xff]  ;;  %p3370_p1 = scmp.ne.s32.totalorder %s3368_s12, %s3369_s16  ;;  %p3375_p6 = scmp.lt.s32.totalorder %s3373_s22, %s3369_s16 }
  0x45   : > { %1776 = vmatpush.msra.mxu3 %v3457_v25  ;;  %1438 = vmatpush.msra.mxu0 %v3457_v25 }
  0x46   : > { %613 = vperm.xlu2 %3202, %v493_v7   ;;  %1551 = vmatpush.msra.mxu1 %v3457_v25  ;;  %v543_v7 = vld [vmem:[#allocation6 + $0xb0] sm:$0xff]  ;;  %p3371_p2 = pnand %p3370_p1, %p3558_p4  ;;  %p3376_p7 = por %p3375_p6, %p3374_p5 }
  0x47   : > { %905 = vperm.xlu1 %3201, %v524_v8   ;;  %608 = vperm.xlu0 %3200, %v492_v9  }
  0x48   : > { %1664 = vmatpush.msra.mxu2 %v3457_v25  ;;  %1777 = vmatpush.msra.mxu3 %v3457_v25  ;;  %p3372_p3 = pneg %p3371_p2 }
  0x49   : > { %1439 = vmatpush.msra.mxu0 %v3457_v25  ;;  %1552 = vmatpush.msra.mxu1 %v3457_v25 }
  0x4a   : > { %1665 = vmatpush.msra.mxu2 %v3457_v25  ;;  %1778 = vmatpush.msra.mxu3 %v3457_v25  ;;  %p3377_p9 = pnand %p3376_p7, %p3372_p3 }
  0x4b   : > { %1440 = vmatpush.msra.mxu0 %v3457_v25  ;;  %1553 = vmatpush.msra.mxu1 %v3457_v25 }
  0x4c   : > { %1666 = vmatpush.msra.mxu2 %v3457_v25  ;;  %1779 = vmatpush.msra.mxu3 %v3457_v25 }
  0x4d   : > { %1441 = vmatpush.msra.mxu0 %v3457_v25  ;;  %1554 = vmatpush.msra.mxu1 %v3457_v25 }
  0x4e   : > { %915 = vperm.xlu2 %3202, %v526_v10   ;;  %1667 = vmatpush.msra.mxu2 %v3457_v25 }
  0x4f   : > { %618 = vperm.xlu1 %3201, %v494_v11   ;;  %910 = vperm.xlu0 %3200, %v525_v12  }
  0x50   : > { %1780 = vmatpush.msra.mxu3 %v3457_v25  ;;  %1442 = vmatpush.msra.mxu0 %v3457_v25 }
  0x51   : > { %1555 = vmatpush.msra.mxu1 %v3457_v25  ;;  %1668 = vmatpush.msra.mxu2 %v3457_v25 }
  0x52   : > { %1781 = vmatpush.msra.mxu3 %v3457_v25  ;;  %1443 = vmatpush.msra.mxu0 %v3457_v25 }
  0x53   : > { %1556 = vmatpush.msra.mxu1 %v3457_v25  ;;  %1669 = vmatpush.msra.mxu2 %v3457_v25 }
  0x54   : > { %1782 = vmatpush.msra.mxu3 %v3457_v25  ;;  %1444 = vmatpush.msra.mxu0 %v3457_v25 }
  0x55   : > { %1557 = vmatpush.msra.mxu1 %v3457_v25  ;;  %1670 = vmatpush.msra.mxu2 %v3457_v25 }
  0x56   : > { %628 = vperm.xlu2 %3202, %v496_v13   ;;  %1783 = vmatpush.msra.mxu3 %v3457_v25 }
  0x57   : > { %920 = vperm.xlu1 %3201, %v527_v14   ;;  %623 = vperm.xlu0 %3200, %v495_v15  }
  0x58   : > { %1445 = vmatpush.msra.mxu0 %v3457_v25  ;;  %1558 = vmatpush.msra.mxu1 %v3457_v25 }
  0x59   : > { %1671 = vmatpush.msra.mxu2 %v3457_v25  ;;  %1784 = vmatpush.msra.mxu3 %v3457_v25 }
  0x5a   : > { %1446 = vmatpush.msra.mxu0 %v3457_v25  ;;  %1559 = vmatpush.msra.mxu1 %v3457_v25 }
  0x5b   : > { %1672 = vmatpush.msra.mxu2 %v3457_v25  ;;  %1785 = vmatpush.msra.mxu3 %v3457_v25 }
  0x5c   : > { %1447 = vmatpush.msra.mxu0 %v3457_v25  ;;  %1560 = vmatpush.msra.mxu1 %v3457_v25 }
  0x5d   : > { %1673 = vmatpush.msra.mxu2 %v3457_v25  ;;  %1786 = vmatpush.msra.mxu3 %v3457_v25 }
  0x5e   : > { %930 = vperm.xlu2 %3202, %v529_v16  }
  0x5f   : > { %633 = vperm.xlu1 %3201, %v497_v17   ;;  %925 = vperm.xlu0 %3200, %v528_v18  }
  0x66   : > { %643 = vperm.xlu2 %3202, %v499_v19  }
  0x67   : > { %935 = vperm.xlu1 %3201, %v530_v20   ;;  %638 = vperm.xlu0 %3200, %v498_v21  }
  0x6e   : > { %945 = vperm.xlu2 %3202, %v532_v22  }
  0x6f   : > { %648 = vperm.xlu1 %3201, %v500_v23   ;;  %940 = vperm.xlu0 %3200, %v531_v24  }
  0x76   : > { %658 = vperm.xlu2 %3202, %v502_v26  }
  0x77   : > { %950 = vperm.xlu1 %3201, %v533_v27   ;;  %653 = vperm.xlu0 %3200, %v501_v28  }
  0x7e   : > { %960 = vperm.xlu2 %3202, %v535_v29  }
  0x7f   : > { %663 = vperm.xlu1 %3201, %v503_v30   ;;  %955 = vperm.xlu0 %3200, %v534_v31  }
  0x86   : > { %673 = vperm.xlu2 %3202, %v505_v32   ;;  %v514_v32 = vld [vmem:[#allocation3 + $0xc8] sm:$0xff] }
  0x87   : > { %965 = vperm.xlu1 %3201, %v536_v33   ;;  %668 = vperm.xlu0 %3200, %v504_v34   ;;  %v545_v33 = vld [vmem:[#allocation6 + $0xc0] sm:$0xff] }
  0x88   : > { %v513_v34 = vld [vmem:[#allocation3 + $0xc0] sm:$0xff] }
  0x8e   : > { %975 = vperm.xlu2 %3202, %v538_v35  }
  0x8f   : > { %678 = vperm.xlu1 %3201, %v506_v36   ;;  %970 = vperm.xlu0 %3200, %v537_v37  }
  0x90   : > { %v604_v38 = vpop.permute.xlu2 %603 }
  0x91   : > { %v768_v51 = vmul.f32 %v3709_v47, %v604_v38  ;;  %v769_v52 = vmul.f32 %v3711_v48, %v604_v38  ;;  %v770_v53 = vmul.f32 %v3713_v49, %v604_v38  ;;  %v771_v54 = vmul.f32 %v3715_v50, %v604_v38 }
  0x96   : > { %688 = vperm.xlu2 %3202, %v508_v39  }
  0x97   : > { %980 = vperm.xlu1 %3201, %v539_v40   ;;  %683 = vperm.xlu0 %3200, %v507_v41  }
  0x98   : > { %v901_v45 = vpop.permute.xlu2 %900 }
  0x99   : > { %v3722_v55 = vadd.f32 %v901_v45, %v768_v51  ;;  %v3724_v56 = vadd.f32 %v901_v45, %v769_v52  ;;  %v3726_v57 = vadd.f32 %v901_v45, %v770_v53  ;;  %v3728_v58 = vadd.f32 %v901_v45, %v771_v54  ;;  %v547_v53 = vld [vmem:[#allocation6 + $0xd0] sm:$0xff] }
  0x9a   : > { %v515_v54 = vld [vmem:[#allocation3 + $0xd0] sm:$0xff] }
  0x9b   : > { %v1184_v59 = vmax.f32 %v3722_v55, 0.0  ;;  %v1185_v60 = vmax.f32 %v3724_v56, 0.0  ;;  %v1186_v61 = vmax.f32 %v3726_v57, 0.0  ;;  %v1187_v0 = vmax.f32 %v3728_v58, 0.0 }
  0x9d   : > { %1312 = vst [vmem:[%s3736_s24 + $0x40] sm:$0xff] %v1184_v59 }
  0x9e   : > { %990 = vperm.xlu2 %3202, %v541_v43   ;;  %1313 = vst [vmem:[%s3736_s24 + $0x48] sm:$0xff] %v1185_v60 }
  0x9f   : > { %693 = vperm.xlu1 %3201, %v509_v44   ;;  %985 = vperm.xlu0 %3200, %v540_v46   ;;  %1314 = vst [vmem:[%s3736_s24 + $0x50] sm:$0xff] %v1186_v61 }
  0xa0   : > { %v3745_v2 = vpop.permute.xlu2 %613  ;;  %1315 = vst [vmem:[%s3736_s24 + $0x58] sm:$0xff] %v1187_v0 }
  0xa6   : > { %703 = vperm.xlu2 %3202, %v511_v62   ;;  %v546_v62 = vld [vmem:[#allocation6 + $0xc8] sm:$0xff] }
  0xa7   : > { %995 = vperm.xlu1 %3201, %v542_v63   ;;  %698 = vperm.xlu0 %3200, %v510_v1  }
  0xa8   : > { %v3757_v12 = vpop.permute.xlu2 %915 }
  0xa9   : > { %v599_v3 = vpop.permute.xlu1 %598  ;;  %v594_v4 = vpop.permute.xlu0 %593 }
  0xaa   : > { %v764_v8 = vmul.f32 %v3709_v47, %v599_v3  ;;  %v765_v9 = vmul.f32 %v3711_v48, %v599_v3  ;;  %v766_v10 = vmul.f32 %v3713_v49, %v599_v3  ;;  %v767_v11 = vmul.f32 %v3715_v50, %v599_v3 }
  0xab   : > { %v760_v14 = vmul.f32 %v3709_v47, %v594_v4  ;;  %v761_v15 = vmul.f32 %v3711_v48, %v594_v4  ;;  %v762_v16 = vmul.f32 %v3713_v49, %v594_v4  ;;  %v763_v17 = vmul.f32 %v3715_v50, %v594_v4 }
  0xae   : > { %1005 = vperm.xlu2 %3202, %v544_v5   ;;  %v776_v5 = vmul.f32 %v3709_v47, %v3745_v2 }
  0xaf   : > { %708 = vperm.xlu1 %3201, %v512_v6   ;;  %1000 = vperm.xlu0 %3200, %v543_v7   ;;  %v777_v7 = vmul.f32 %v3711_v48, %v3745_v2 }
  0xb0   : > { %v3768_v40 = vpop.permute.xlu2 %628 }
  0xb1   : > { %v896_v13 = vpop.permute.xlu1 %895  ;;  %v891_v18 = vpop.permute.xlu0 %890 }
  0xb2   : > { %v1052_v19 = vadd.f32 %v896_v13, %v764_v8  ;;  %v1053_v20 = vadd.f32 %v896_v13, %v765_v9  ;;  %v1048_v21 = vadd.f32 %v891_v18, %v760_v14  ;;  %v1049_v22 = vadd.f32 %v891_v18, %v761_v15 }
  0xb3   : > { %v1050_v23 = vadd.f32 %v891_v18, %v762_v16  ;;  %v1051_v24 = vadd.f32 %v891_v18, %v763_v17  ;;  %v1054_v26 = vadd.f32 %v896_v13, %v766_v10  ;;  %v1055_v27 = vadd.f32 %v896_v13, %v767_v11 }
  0xb4   : > { %v1180_v25 = vmax.f32 %v1052_v19, 0.0  ;;  %v1176_v28 = vmax.f32 %v1048_v21, 0.0  ;;  %v1177_v29 = vmax.f32 %v1049_v22, 0.0  ;;  %v1181_v35 = vmax.f32 %v1053_v20, 0.0 }
  0xb5   : > { %v1178_v30 = vmax.f32 %v1050_v23, 0.0  ;;  %v1179_v31 = vmax.f32 %v1051_v24, 0.0  ;;  %v1182_v36 = vmax.f32 %v1054_v26, 0.0  ;;  %v1183_v38 = vmax.f32 %v1055_v27, 0.0  ;;  %v517_v26 = vld [vmem:[#allocation3 + $0xe0] sm:$0xff]  ;;  %v548_v27 = vld [vmem:[#allocation6 + $0xd8] sm:$0xff] }
  0xb6   : > { %1308 = vst [vmem:[%s3736_s24 + $0x20] sm:$0xff] %v1180_v25  ;;  %1448 = vmatmul.f32.vlgmr.msra.gmra.mxu0 %v1176_v28  ;;  %1561 = vmatmul.f32.vlgmr.msra.gmra.mxu1 %v1177_v29  ;;  %v778_v8 = vmul.f32 %v3713_v49, %v3745_v2  ;;  %v779_v9 = vmul.f32 %v3715_v50, %v3745_v2 }
  0xb7   : > { %1304 = vst [vmem:[%s3736_s24] sm:$0xff] %v1176_v28  ;;  %1674 = vmatmul.f32.vlgmr.msra.gmra.mxu2 %v1178_v30  ;;  %1787 = vmatmul.f32.vlgmr.msra.gmra.mxu3 %v1179_v31 }
  0xb8   : > { %1305 = vst [vmem:[%s3736_s24 + $0x8] sm:$0xff] %v1177_v29  ;;  %718 = vperm.xlu2 %3202, %v514_v32   ;;  %1010 = vperm.xlu1 %3201, %v545_v33   ;;  %v3827_v21 = vpop.permute.xlu2 %930 }
  0xb9   : > { %1306 = vst [vmem:[%s3736_s24 + $0x10] sm:$0xff] %v1178_v30  ;;  %v906_v37 = vpop.permute.xlu1 %905  ;;  %713 = vperm.xlu0 %3200, %v513_v34   ;;  %v609_v39 = vpop.permute.xlu0 %608  ;;  %v516_v30 = vld [vmem:[#allocation3 + $0xd8] sm:$0xff] }
  0xba   : > { %1307 = vst [vmem:[%s3736_s24 + $0x18] sm:$0xff] %v1179_v31  ;;  %v772_v41 = vmul.f32 %v3709_v47, %v609_v39  ;;  %v773_v42 = vmul.f32 %v3711_v48, %v609_v39  ;;  %v774_v43 = vmul.f32 %v3713_v49, %v609_v39  ;;  %v775_v44 = vmul.f32 %v3715_v50, %v609_v39  ;;  %v549_v39 = vld [vmem:[#allocation6 + $0xe0] sm:$0xff] }
  0xbb   : > { %1309 = vst [vmem:[%s3736_s24 + $0x28] sm:$0xff] %v1181_v35 }
  0xbc   : > { %1310 = vst [vmem:[%s3736_s24 + $0x30] sm:$0xff] %v1182_v36  ;;  %v3777_v45 = vadd.f32 %v906_v37, %v772_v41  ;;  %v3779_v46 = vadd.f32 %v906_v37, %v773_v42  ;;  %v3781_v51 = vadd.f32 %v906_v37, %v774_v43  ;;  %v3783_v52 = vadd.f32 %v906_v37, %v775_v44  ;;  %v518_v37 = vld [vmem:[#allocation3 + $0xe8] sm:$0xff] }
  0xbd   : > { %1311 = vst [vmem:[%s3736_s24 + $0x38] sm:$0xff] %v1183_v38 }
  0xbe   : > { %1451 = vmatmul.f32.gmra.mxu0 %v1180_v25  ;;  %1564 = vmatmul.f32.gmra.mxu1 %v1181_v35  ;;  %v1188_v63 = vmax.f32 %v3777_v45, 0.0  ;;  %v1189_v1 = vmax.f32 %v3779_v46, 0.0  ;;  %v1190_v3 = vmax.f32 %v3781_v51, 0.0  ;;  %v1191_v4 = vmax.f32 %v3783_v52, 0.0 }
  0xbf   : > { %1677 = vmatmul.f32.gmra.mxu2 %v1182_v36  ;;  %1790 = vmatmul.f32.gmra.mxu3 %v1183_v38  ;;  %v550_v36 = vld [vmem:[#allocation6 + $0xe8] sm:$0xff]  ;;  %v788_v45 = vmul.f32 %v3709_v47, %v3768_v40  ;;  %v789_v51 = vmul.f32 %v3711_v48, %v3768_v40  ;;  %v790_v52 = vmul.f32 %v3713_v49, %v3768_v40 }
  0xc0   : > { %1020 = vperm.xlu2 %3202, %v547_v53   ;;  %723 = vperm.xlu1 %3201, %v515_v54   ;;  %1316 = vst [vmem:[%s3736_s24 + $0x60] sm:$0xff] %v1188_v63  ;;  %v3887_v38 = vpop.permute.xlu2 %643  ;;  %v791_v53 = vmul.f32 %v3715_v50, %v3768_v40 }
  0xc1   : > { %v619_v6 = vpop.permute.xlu1 %618  ;;  %1015 = vperm.xlu0 %3200, %v546_v62   ;;  %v911_v10 = vpop.permute.xlu0 %910  ;;  %1317 = vst [vmem:[%s3736_s24 + $0x68] sm:$0xff] %v1189_v1 }
  0xc2   : > { %v780_v11 = vmul.f32 %v3709_v47, %v619_v6  ;;  %v781_v13 = vmul.f32 %v3711_v48, %v619_v6  ;;  %v782_v14 = vmul.f32 %v3713_v49, %v619_v6  ;;  %1318 = vst [vmem:[%s3736_s24 + $0x70] sm:$0xff] %v1190_v3  ;;  %v3809_v15 = vadd.f32 %v911_v10, %v776_v5 }
  0xc3   : > { %v3811_v16 = vadd.f32 %v911_v10, %v777_v7  ;;  %v3813_v17 = vadd.f32 %v911_v10, %v778_v8  ;;  %v3815_v2 = vadd.f32 %v911_v10, %v779_v9  ;;  %1319 = vst [vmem:[%s3736_s24 + $0x78] sm:$0xff] %v1191_v4  ;;  %v783_v20 = vmul.f32 %v3715_v50, %v619_v6 }
  0xc4   : > { %v3821_v18 = vadd.f32 %v3757_v12, %v780_v11  ;;  %v3824_v19 = vadd.f32 %v3757_v12, %v781_v13  ;;  %v1192_v22 = vmax.f32 %v3809_v15, 0.0  ;;  %v3833_v25 = vadd.f32 %v3757_v12, %v782_v14  ;;  %v520_v14 = vld [vmem:[#allocation3 + $0xf8] sm:$0xff] }
  0xc5   : > { %v1193_v23 = vmax.f32 %v3811_v16, 0.0  ;;  %v1194_v24 = vmax.f32 %v3813_v17, 0.0  ;;  %v1195_v28 = vmax.f32 %v3815_v2, 0.0  ;;  %v3837_v29 = vadd.f32 %v3757_v12, %v783_v20  ;;  %v551_v20 = vld [vmem:[#allocation6 + $0xf0] sm:$0xff] }
  0xc6   : > { %1454 = vmatmul.f32.gmra.mxu0 %v1184_v59  ;;  %1567 = vmatmul.f32.gmra.mxu1 %v1185_v60  ;;  %1320 = vst [vmem:[%s3736_s24 + $0x80] sm:$0xff] %v1192_v22  ;;  %v1196_v31 = vmax.f32 %v3821_v18, 0.0  ;;  %v1197_v55 = vmax.f32 %v3824_v19, 0.0  ;;  %v1198_v59 = vmax.f32 %v3833_v25, 0.0  ;;  %v800_v19 = vmul.f32 %v3709_v47, %v3887_v38 }
  0xc7   : > { %1680 = vmatmul.f32.gmra.mxu2 %v1186_v61  ;;  %1793 = vmatmul.f32.gmra.mxu3 %v1187_v0  ;;  %1321 = vst [vmem:[%s3736_s24 + $0x88] sm:$0xff] %v1193_v23  ;;  %v1199_v58 = vmax.f32 %v3837_v29, 0.0  ;;  %v802_v25 = vmul.f32 %v3713_v49, %v3887_v38  ;;  %v803_v29 = vmul.f32 %v3715_v50, %v3887_v38 }
  0xc8   : > { %733 = vperm.xlu2 %3202, %v517_v26   ;;  %1025 = vperm.xlu1 %3201, %v548_v27   ;;  %1322 = vst [vmem:[%s3736_s24 + $0x90] sm:$0xff] %v1194_v24  ;;  %v946_v16 = vpop.permute.xlu2 %945 }
  0xc9   : > { %v921_v56 = vpop.permute.xlu1 %920  ;;  %728 = vperm.xlu0 %3200, %v516_v30   ;;  %v624_v57 = vpop.permute.xlu0 %623  ;;  %1323 = vst [vmem:[%s3736_s24 + $0x98] sm:$0xff] %v1195_v28  ;;  %v519_v30 = vld [vmem:[#allocation3 + $0xf0] sm:$0xff] }
  0xca   : > { %1324 = vst [vmem:[%s3736_s24 + $0xa0] sm:$0xff] %v1196_v31  ;;  %v784_v60 = vmul.f32 %v3709_v47, %v624_v57  ;;  %v785_v61 = vmul.f32 %v3711_v48, %v624_v57  ;;  %v786_v0 = vmul.f32 %v3713_v49, %v624_v57  ;;  %v787_v12 = vmul.f32 %v3715_v50, %v624_v57 }
  0xcb   : > { %1325 = vst [vmem:[%s3736_s24 + $0xa8] sm:$0xff] %v1197_v55 }
  0xcc   : > { %1326 = vst [vmem:[%s3736_s24 + $0xb0] sm:$0xff] %v1198_v59  ;;  %v3876_v32 = vadd.f32 %v921_v56, %v784_v60  ;;  %v3878_v33 = vadd.f32 %v921_v56, %v785_v61  ;;  %v3880_v34 = vadd.f32 %v921_v56, %v786_v0  ;;  %v3882_v35 = vadd.f32 %v921_v56, %v787_v12 }
  0xcd   : > { %1327 = vst [vmem:[%s3736_s24 + $0xb8] sm:$0xff] %v1199_v58 }
  0xce   : > { %1457 = vmatmul.f32.gmra.mxu0 %v1188_v63  ;;  %1570 = vmatmul.f32.gmra.mxu1 %v1189_v1  ;;  %v1200_v41 = vmax.f32 %v3876_v32, 0.0  ;;  %v1201_v42 = vmax.f32 %v3878_v33, 0.0  ;;  %v1202_v43 = vmax.f32 %v3880_v34, 0.0  ;;  %v1203_v44 = vmax.f32 %v3882_v35, 0.0 }
  0xcf   : > { %1683 = vmatmul.f32.gmra.mxu2 %v1190_v3  ;;  %1796 = vmatmul.f32.gmra.mxu3 %v1191_v4 }
  0xd0   : > { %1035 = vperm.xlu2 %3202, %v550_v36   ;;  %738 = vperm.xlu1 %3201, %v518_v37   ;;  %1328 = vst [vmem:[%s3736_s24 + $0xc0] sm:$0xff] %v1200_v41  ;;  %v552_v36 = vld [vmem:[#allocation6 + $0xf8] sm:$0xff] }
  0xd1   : > { %v634_v46 = vpop.permute.xlu1 %633  ;;  %1030 = vperm.xlu0 %3200, %v549_v39   ;;  %v926_v54 = vpop.permute.xlu0 %925  ;;  %1329 = vst [vmem:[%s3736_s24 + $0xc8] sm:$0xff] %v1201_v42 }
  0xd2   : > { %v792_v62 = vmul.f32 %v3709_v47, %v634_v46  ;;  %v793_v63 = vmul.f32 %v3711_v48, %v634_v46  ;;  %v794_v1 = vmul.f32 %v3713_v49, %v634_v46  ;;  %1330 = vst [vmem:[%s3736_s24 + $0xd0] sm:$0xff] %v1202_v43  ;;  %v3921_v3 = vadd.f32 %v926_v54, %v788_v45 }
  0xd3   : > { %v3923_v4 = vadd.f32 %v926_v54, %v789_v51  ;;  %v3925_v5 = vadd.f32 %v926_v54, %v790_v52  ;;  %v3927_v40 = vadd.f32 %v926_v54, %v791_v53  ;;  %1331 = vst [vmem:[%s3736_s24 + $0xd8] sm:$0xff] %v1203_v44  ;;  %v795_v8 = vmul.f32 %v3715_v50, %v634_v46  ;;  %v659_v52 = vpop.permute.xlu2 %658 }
  0xd4   : > { %v3933_v6 = vadd.f32 %v3827_v21, %v792_v62  ;;  %v3936_v7 = vadd.f32 %v3827_v21, %v793_v63  ;;  %v1204_v9 = vmax.f32 %v3921_v3, 0.0  ;;  %v3943_v13 = vadd.f32 %v3827_v21, %v794_v1 }
  0xd5   : > { %v1205_v10 = vmax.f32 %v3923_v4, 0.0  ;;  %v1206_v11 = vmax.f32 %v3925_v5, 0.0  ;;  %v1207_v26 = vmax.f32 %v3927_v40, 0.0  ;;  %v3947_v27 = vadd.f32 %v3827_v21, %v795_v8 }
  0xd6   : > { %1460 = vmatmul.f32.gmra.mxu0 %v1192_v22  ;;  %1573 = vmatmul.f32.gmra.mxu1 %v1193_v23  ;;  %1332 = vst [vmem:[%s3736_s24 + $0xe0] sm:$0xff] %v1204_v9  ;;  %v1208_v56 = vmax.f32 %v3933_v6, 0.0  ;;  %v1209_v15 = vmax.f32 %v3936_v7, 0.0  ;;  %v1210_v17 = vmax.f32 %v3943_v13, 0.0  ;;  %v812_v4 = vmul.f32 %v3709_v47, %v659_v52 }
  0xd7   : > { %1686 = vmatmul.f32.gmra.mxu2 %v1194_v24  ;;  %1799 = vmatmul.f32.gmra.mxu3 %v1195_v28  ;;  %1333 = vst [vmem:[%s3736_s24 + $0xe8] sm:$0xff] %v1205_v10  ;;  %v1211_v22 = vmax.f32 %v3947_v27, 0.0  ;;  %v815_v5 = vmul.f32 %v3715_v50, %v659_v52 }
  0xd8   : > { %748 = vperm.xlu2 %3202, %v520_v14   ;;  %1040 = vperm.xlu1 %3201, %v551_v20   ;;  %1334 = vst [vmem:[%s3736_s24 + $0xf0] sm:$0xff] %v1206_v11 }
  0xd9   : > { %v936_v21 = vpop.permute.xlu1 %935  ;;  %743 = vperm.xlu0 %3200, %v519_v30   ;;  %v639_v2 = vpop.permute.xlu0 %638  ;;  %1335 = vst [vmem:[%s3736_s24 + $0xf8] sm:$0xff] %v1207_v26 }
  0xda   : > { %1336 = vst [vmem:[%s3736_s24 + $0x100] sm:$0xff] %v1208_v56  ;;  %v796_v23 = vmul.f32 %v3709_v47, %v639_v2  ;;  %v797_v24 = vmul.f32 %v3711_v48, %v639_v2  ;;  %v798_v28 = vmul.f32 %v3713_v49, %v639_v2  ;;  %v799_v57 = vmul.f32 %v3715_v50, %v639_v2 }
  0xdb   : > { %1337 = vst [vmem:[%s3736_s24 + $0x108] sm:$0xff] %v1209_v15 }
  0xdc   : > { %1338 = vst [vmem:[%s3736_s24 + $0x110] sm:$0xff] %v1210_v17  ;;  %v3986_v60 = vadd.f32 %v936_v21, %v796_v23  ;;  %v3988_v61 = vadd.f32 %v936_v21, %v797_v24  ;;  %v3990_v0 = vadd.f32 %v936_v21, %v798_v28  ;;  %v3992_v12 = vadd.f32 %v936_v21, %v799_v57  ;;  %v961_v28 = vpop.permute.xlu2 %960 }
  0xdd   : > { %1339 = vst [vmem:[%s3736_s24 + $0x118] sm:$0xff] %v1211_v22 }
  0xde   : > { %1463 = vmatmul.f32.gmra.mxu0 %v1196_v31  ;;  %1576 = vmatmul.f32.gmra.mxu1 %v1197_v55  ;;  %v1212_v37 = vmax.f32 %v3986_v60, 0.0  ;;  %v1213_v39 = vmax.f32 %v3988_v61, 0.0  ;;  %v1214_v45 = vmax.f32 %v3990_v0, 0.0  ;;  %v1215_v18 = vmax.f32 %v3992_v12, 0.0 }
  0xdf   : > { %1689 = vmatmul.f32.gmra.mxu2 %v1198_v59  ;;  %1802 = vmatmul.f32.gmra.mxu3 %v1199_v58  ;;  %v801_v55 = vmul.f32 %v3711_v48, %v3887_v38 }
  0xe0   : > { %1340 = vst [vmem:[%s3736_s24 + $0x120] sm:$0xff] %v1212_v37 }
  0xe1   : > { %v649_v31 = vpop.permute.xlu1 %648  ;;  %1045 = vperm.xlu0 %3200, %v552_v36   ;;  %v941_v59 = vpop.permute.xlu0 %940  ;;  %1341 = vst [vmem:[%s3736_s24 + $0x128] sm:$0xff] %v1213_v39 }
  0xe2   : > { %v804_v58 = vmul.f32 %v3709_v47, %v649_v31  ;;  %v805_v46 = vmul.f32 %v3711_v48, %v649_v31  ;;  %v806_v51 = vmul.f32 %v3713_v49, %v649_v31  ;;  %1342 = vst [vmem:[%s3736_s24 + $0x130] sm:$0xff] %v1214_v45  ;;  %v4029_v53 = vadd.f32 %v941_v59, %v800_v19 }
  0xe3   : > { %v4031_v54 = vadd.f32 %v941_v59, %v801_v55  ;;  %v4033_v38 = vadd.f32 %v941_v59, %v802_v25  ;;  %v4035_v62 = vadd.f32 %v941_v59, %v803_v29  ;;  %1343 = vst [vmem:[%s3736_s24 + $0x138] sm:$0xff] %v1215_v18  ;;  %v807_v8 = vmul.f32 %v3715_v50, %v649_v31 }
  0xe4   : > { %v4040_v63 = vadd.f32 %v946_v16, %v804_v58  ;;  %v4042_v1 = vadd.f32 %v946_v16, %v805_v46  ;;  %v1216_v14 = vmax.f32 %v4029_v53, 0.0  ;;  %v4048_v21 = vadd.f32 %v946_v16, %v806_v51 }
  0xe5   : > { %v1217_v20 = vmax.f32 %v4031_v54, 0.0  ;;  %v1218_v30 = vmax.f32 %v4033_v38, 0.0  ;;  %v1219_v2 = vmax.f32 %v4035_v62, 0.0  ;;  %v4051_v23 = vadd.f32 %v946_v16, %v807_v8 }
  0xe6   : > { %1466 = vmatmul.f32.gmra.mxu0 %v1200_v41  ;;  %1579 = vmatmul.f32.gmra.mxu1 %v1201_v42  ;;  %1344 = vst [vmem:[%s3736_s24 + $0x140] sm:$0xff] %v1216_v14  ;;  %v1220_v24 = vmax.f32 %v4040_v63, 0.0  ;;  %v1221_v32 = vmax.f32 %v4042_v1, 0.0  ;;  %v1222_v41 = vmax.f32 %v4048_v21, 0.0 }
  0xe7   : > { %1692 = vmatmul.f32.gmra.mxu2 %v1202_v43  ;;  %1805 = vmatmul.f32.gmra.mxu3 %v1203_v44  ;;  %1345 = vst [vmem:[%s3736_s24 + $0x148] sm:$0xff] %v1217_v20  ;;  %v1223_v34 = vmax.f32 %v4051_v23, 0.0 }
  0xe8   : > { %1346 = vst [vmem:[%s3736_s24 + $0x150] sm:$0xff] %v1218_v30 }
  0xe9   : > { %v951_v33 = vpop.permute.xlu1 %950  ;;  %v654_v42 = vpop.permute.xlu0 %653  ;;  %1347 = vst [vmem:[%s3736_s24 + $0x158] sm:$0xff] %v1219_v2 }
  0xea   : > { %1348 = vst [vmem:[%s3736_s24 + $0x160] sm:$0xff] %v1220_v24  ;;  %v808_v35 = vmul.f32 %v3709_v47, %v654_v42  ;;  %v809_v43 = vmul.f32 %v3711_v48, %v654_v42  ;;  %v810_v44 = vmul.f32 %v3713_v49, %v654_v42  ;;  %v811_v16 = vmul.f32 %v3715_v50, %v654_v42 }
  0xeb   : > { %1349 = vst [vmem:[%s3736_s24 + $0x168] sm:$0xff] %v1221_v32 }
  0xec   : > { %1350 = vst [vmem:[%s3736_s24 + $0x170] sm:$0xff] %v1222_v41  ;;  %v4090_v57 = vadd.f32 %v951_v33, %v808_v35  ;;  %v4092_v36 = vadd.f32 %v951_v33, %v809_v43  ;;  %v4094_v31 = vadd.f32 %v951_v33, %v810_v44  ;;  %v4096_v19 = vadd.f32 %v951_v33, %v811_v16 }
  0xed   : > { %1351 = vst [vmem:[%s3736_s24 + $0x178] sm:$0xff] %v1223_v34 }
  0xee   : > { %1469 = vmatmul.f32.gmra.mxu0 %v1204_v9  ;;  %1582 = vmatmul.f32.gmra.mxu1 %v1205_v10  ;;  %v1224_v55 = vmax.f32 %v4090_v57, 0.0  ;;  %v1225_v25 = vmax.f32 %v4092_v36, 0.0  ;;  %v1226_v29 = vmax.f32 %v4094_v31, 0.0  ;;  %v1227_v3 = vmax.f32 %v4096_v19, 0.0 }
  0xef   : > { %1695 = vmatmul.f32.gmra.mxu2 %v1206_v11  ;;  %1808 = vmatmul.f32.gmra.mxu3 %v1207_v26  ;;  %v813_v9 = vmul.f32 %v3711_v48, %v659_v52  ;;  %v814_v10 = vmul.f32 %v3713_v49, %v659_v52  ;;  %v3458_v31 = vmov 0.0  }
  0xf0   : > { %1352 = vst [vmem:[%s3736_s24 + $0x180] sm:$0xff] %v1224_v55 }
  0xf1   : > { %v664_v59 = vpop.permute.xlu1 %663  ;;  %v956_v58 = vpop.permute.xlu0 %955  ;;  %1353 = vst [vmem:[%s3736_s24 + $0x188] sm:$0xff] %v1225_v25 }
  0xf2   : > { %v816_v40 = vmul.f32 %v3709_v47, %v664_v59  ;;  %v817_v11 = vmul.f32 %v3711_v48, %v664_v59  ;;  %v818_v26 = vmul.f32 %v3713_v49, %v664_v59  ;;  %v819_v46 = vmul.f32 %v3715_v50, %v664_v59  ;;  %1354 = vst [vmem:[%s3736_s24 + $0x190] sm:$0xff] %v1226_v29 }
  0xf3   : > { %v4130_v51 = vadd.f32 %v956_v58, %v812_v4  ;;  %v4132_v8 = vadd.f32 %v956_v58, %v813_v9  ;;  %v4134_v52 = vadd.f32 %v956_v58, %v814_v10  ;;  %v4136_v33 = vadd.f32 %v956_v58, %v815_v5  ;;  %1355 = vst [vmem:[%s3736_s24 + $0x198] sm:$0xff] %v1227_v3  ;;  %v674_v10 = vpop.permute.xlu2 %673 }
  0xf4   : > { %v4141_v42 = vadd.f32 %v961_v28, %v816_v40  ;;  %v4143_v35 = vadd.f32 %v961_v28, %v817_v11  ;;  %v4148_v59 = vadd.f32 %v961_v28, %v818_v26  ;;  %v4151_v9 = vadd.f32 %v961_v28, %v819_v46  ;;  %558 = vst.msk [vmem:[#allocation2] sm:$0xff] %vm557_vm0, %v3458_v31 }
  0xf5   : > { %v1228_v43 = vmax.f32 %v4130_v51, 0.0  ;;  %v1229_v44 = vmax.f32 %v4132_v8, 0.0  ;;  %v1230_v16 = vmax.f32 %v4134_v52, 0.0  ;;  %v1231_v4 = vmax.f32 %v4136_v33, 0.0  ;;  %559 = vst.msk [vmem:[#allocation2 + $0x8] sm:$0xff] %vm557_vm0, %v3458_v31 }
  0xf6   : > { %1472 = vmatmul.f32.gmra.mxu0 %v1208_v56  ;;  %1585 = vmatmul.f32.gmra.mxu1 %v1209_v15  ;;  %v1232_v5 = vmax.f32 %v4141_v42, 0.0  ;;  %v5149_v6 = vmax.f32 %v4143_v35, 0.0  ;;  %v5147_v56 = vmax.f32 %v4148_v59, 0.0  ;;  %v5146_v13 = vmax.f32 %v4151_v9, 0.0  ;;  %560 = vst.msk [vmem:[#allocation2 + $0x10] sm:$0xff] %vm557_vm0, %v3458_v31 }
  0xf7   : > { %1356 = vst [vmem:[%s3736_s24 + $0x1a0] sm:$0xff] %v1228_v43  ;;  %1698 = vmatmul.f32.gmra.mxu2 %v1210_v17  ;;  %1811 = vmatmul.f32.gmra.mxu3 %v1211_v22  ;;  %v824_v61 = vmul.f32 %v3709_v47, %v674_v10  ;;  %v827_v0 = vmul.f32 %v3715_v50, %v674_v10  ;;  %v5202_v51 = vmax.f32 %v4151_v9, 0.0 }
  0xf8   : > { %1357 = vst [vmem:[%s3736_s24 + $0x1a8] sm:$0xff] %v1229_v44 }
  0xf9   : > { %v966_v7 = vpop.permute.xlu1 %965  ;;  %1358 = vst [vmem:[%s3736_s24 + $0x1b0] sm:$0xff] %v1230_v16  ;;  %v669_v15 = vpop.permute.xlu0 %668 }
  0xfa   : > { %1359 = vst [vmem:[%s3736_s24 + $0x1b8] sm:$0xff] %v1231_v4  ;;  %v820_v27 = vmul.f32 %v3709_v47, %v669_v15  ;;  %v821_v17 = vmul.f32 %v3711_v48, %v669_v15  ;;  %v822_v22 = vmul.f32 %v3713_v49, %v669_v15  ;;  %v823_v28 = vmul.f32 %v3715_v50, %v669_v15 }
  0xfb   : > { %1360 = vst [vmem:[%s3736_s24 + $0x1c0] sm:$0xff] %v1232_v5 }
  0xfc   : > { %1361 = vst [vmem:[%s3736_s24 + $0x1c8] sm:$0xff] %v5149_v6  ;;  %v4190_v58 = vadd.f32 %v966_v7, %v820_v27  ;;  %v4192_v40 = vadd.f32 %v966_v7, %v821_v17  ;;  %v4194_v11 = vadd.f32 %v966_v7, %v822_v22  ;;  %v4196_v26 = vadd.f32 %v966_v7, %v823_v28 }
  0xfd   : > { %1362 = vst [vmem:[%s3736_s24 + $0x1d0] sm:$0xff] %v5147_v56  ;;  %v826_v17 = vmul.f32 %v3713_v49, %v674_v10 }
  0xfe   : > { %1363 = vst [vmem:[%s3736_s24 + $0x1d8] sm:$0xff] %v5146_v13  ;;  %1475 = vmatmul.f32.gmra.mxu0 %v1212_v37  ;;  %1588 = vmatmul.f32.gmra.mxu1 %v1213_v39  ;;  %v5145_v46 = vmax.f32 %v4190_v58, 0.0  ;;  %v5148_v15 = vmax.f32 %v4192_v40, 0.0  ;;  %v1238_v27 = vmax.f32 %v4194_v11, 0.0  ;;  %v1239_v60 = vmax.f32 %v4196_v26, 0.0  ;;  %v976_v37 = vpop.permute.xlu2 %975 }
  0xff   : > { %1701 = vmatmul.f32.gmra.mxu2 %v1214_v45  ;;  %1814 = vmatmul.f32.gmra.mxu3 %v1215_v18  ;;  %v825_v39 = vmul.f32 %v3711_v48, %v674_v10  ;;  %561 = vst.msk [vmem:[#allocation2 + $0x18] sm:$0xff] %vm557_vm0, %v3458_v31  ;;  %v5203_v33 = vmax.f32 %v4190_v58, 0.0  ;;  %v5204_v42 = vmax.f32 %v4192_v40, 0.0 }
 0x100   : > { %1364 = vst [vmem:[%s3736_s24 + $0x1e0] sm:$0xff] %v5145_v46 }
 0x101   : > { %v679_v7 = vpop.permute.xlu1 %678  ;;  %v971_v45 = vpop.permute.xlu0 %970  ;;  %1365 = vst [vmem:[%s3736_s24 + $0x1e8] sm:$0xff] %v5148_v15 }
 0x102   : > { %v828_v12 = vmul.f32 %v3709_v47, %v679_v7  ;;  %v829_v18 = vmul.f32 %v3711_v48, %v679_v7  ;;  %v830_v22 = vmul.f32 %v3713_v49, %v679_v7  ;;  %v831_v28 = vmul.f32 %v3715_v50, %v679_v7  ;;  %1366 = vst [vmem:[%s3736_s24 + $0x1f0] sm:$0xff] %v1238_v27 }
 0x103   : > { %v4230_v46 = vadd.f32 %v971_v45, %v824_v61  ;;  %v4232_v13 = vadd.f32 %v971_v45, %v825_v39  ;;  %v4234_v10 = vadd.f32 %v971_v45, %v826_v17  ;;  %v4236_v56 = vadd.f32 %v971_v45, %v827_v0  ;;  %1367 = vst [vmem:[%s3736_s24 + $0x1f8] sm:$0xff] %v1239_v60 }
 0x104   : > { %v4241_v15 = vadd.f32 %v976_v37, %v828_v12  ;;  %v4243_v6 = vadd.f32 %v976_v37, %v829_v18  ;;  %v4248_v17 = vadd.f32 %v976_v37, %v830_v22  ;;  %v4251_v45 = vadd.f32 %v976_v37, %v831_v28  ;;  %562 = vst.msk [vmem:[#allocation2 + $0x20] sm:$0xff] %vm557_vm0, %v3458_v31 }
 0x105   : > { %v1240_v7 = vmax.f32 %v4230_v46, 0.0  ;;  %v1241_v61 = vmax.f32 %v4232_v13, 0.0  ;;  %v1242_v39 = vmax.f32 %v4234_v10, 0.0  ;;  %v5151_v0 = vmax.f32 %v4236_v56, 0.0  ;;  %563 = vst.msk [vmem:[#allocation2 + $0x28] sm:$0xff] %vm557_vm0, %v3458_v31 }
 0x106   : > { %1478 = vmatmul.f32.gmra.mxu0 %v1216_v14  ;;  %1591 = vmatmul.f32.gmra.mxu1 %v1217_v20  ;;  %v5150_v12 = vmax.f32 %v4241_v15, 0.0  ;;  %v1245_v53 = vmax.f32 %v4243_v6, 0.0  ;;  %v1246_v14 = vmax.f32 %v4248_v17, 0.0  ;;  %v5154_v38 = vmax.f32 %v4251_v45, 0.0  ;;  %v689_v62 = vpop.permute.xlu2 %688  ;;  %564 = vst.msk [vmem:[#allocation2 + $0x30] sm:$0xff] %vm557_vm0, %v3458_v31 }
 0x107   : > { %1368 = vst [vmem:[%s3736_s24 + $0x200] sm:$0xff] %v1240_v7  ;;  %1704 = vmatmul.f32.gmra.mxu2 %v1218_v30  ;;  %1817 = vmatmul.f32.gmra.mxu3 %v1219_v2  ;;  %v836_v1 = vmul.f32 %v3709_v47, %v689_v62  ;;  %v839_v21 = vmul.f32 %v3715_v50, %v689_v62 }
 0x108   : > { %1369 = vst [vmem:[%s3736_s24 + $0x208] sm:$0xff] %v1241_v61 }
 0x109   : > { %v981_v54 = vpop.permute.xlu1 %980  ;;  %1370 = vst [vmem:[%s3736_s24 + $0x210] sm:$0xff] %v1242_v39  ;;  %v684_v20 = vpop.permute.xlu0 %683 }
 0x10a   : > { %1371 = vst [vmem:[%s3736_s24 + $0x218] sm:$0xff] %v5151_v0  ;;  %v832_v30 = vmul.f32 %v3709_v47, %v684_v20  ;;  %v833_v2 = vmul.f32 %v3711_v48, %v684_v20  ;;  %v834_v37 = vmul.f32 %v3713_v49, %v684_v20  ;;  %v835_v18 = vmul.f32 %v3715_v50, %v684_v20 }
 0x10b   : > { %1372 = vst [vmem:[%s3736_s24 + $0x220] sm:$0xff] %v5150_v12 }
 0x10c   : > { %1373 = vst [vmem:[%s3736_s24 + $0x228] sm:$0xff] %v1245_v53  ;;  %v4290_v22 = vadd.f32 %v981_v54, %v832_v30  ;;  %v4292_v28 = vadd.f32 %v981_v54, %v833_v2  ;;  %v4294_v12 = vadd.f32 %v981_v54, %v834_v37  ;;  %v4296_v0 = vadd.f32 %v981_v54, %v835_v18 }
 0x10d   : > { %1374 = vst [vmem:[%s3736_s24 + $0x230] sm:$0xff] %v1246_v14  ;;  %v838_v54 = vmul.f32 %v3713_v49, %v689_v62 }
 0x10e   : > { %1375 = vst [vmem:[%s3736_s24 + $0x238] sm:$0xff] %v5154_v38  ;;  %1481 = vmatmul.f32.gmra.mxu0 %v1220_v24  ;;  %1594 = vmatmul.f32.gmra.mxu1 %v1221_v32  ;;  %v5152_v20 = vmax.f32 %v4290_v22, 0.0  ;;  %v5153_v30 = vmax.f32 %v4292_v28, 0.0  ;;  %v5155_v2 = vmax.f32 %v4294_v12, 0.0  ;;  %v1251_v63 = vmax.f32 %v4296_v0, 0.0 }
 0x10f   : > { %1707 = vmatmul.f32.gmra.mxu2 %v1222_v41  ;;  %1820 = vmatmul.f32.gmra.mxu3 %v1223_v34  ;;  %v837_v32 = vmul.f32 %v3711_v48, %v689_v62  ;;  %565 = vst.msk [vmem:[#allocation2 + $0x38] sm:$0xff] %vm557_vm0, %v3458_v31 }
 0x110   : > { %1376 = vst [vmem:[%s3736_s24 + $0x240] sm:$0xff] %v5152_v20 }
 0x111   : > { %v4313_v24 = vpop.permute.xlu1 %693  ;;  %v986_v41 = vpop.permute.xlu0 %985  ;;  %1377 = vst [vmem:[%s3736_s24 + $0x248] sm:$0xff] %v5153_v30 }
 0x112   : > { %v840_v23 = vmul.f32 %v3709_v47, %v4313_v24  ;;  %v841_v34 = vmul.f32 %v3711_v48, %v4313_v24  ;;  %1378 = vst [vmem:[%s3736_s24 + $0x250] sm:$0xff] %v5155_v2  ;;  %v4332_v37 = vadd.f32 %v986_v41, %v836_v1  ;;  %v4334_v18 = vadd.f32 %v986_v41, %v837_v32  ;;  %v4343_v30 = vpop.permute.xlu2 %990 }
 0x113   : > { %v4336_v62 = vadd.f32 %v986_v41, %v838_v54  ;;  %v4338_v20 = vadd.f32 %v986_v41, %v839_v21  ;;  %1379 = vst [vmem:[%s3736_s24 + $0x258] sm:$0xff] %v1251_v63 }
 0x114   : > { %v1252_v38 = vmax.f32 %v4332_v37, 0.0  ;;  %v1253_v1 = vmax.f32 %v4334_v18, 0.0  ;;  %v4350_v54 = vadd.f32 %v4343_v30, %v840_v23  ;;  %v4353_v21 = vadd.f32 %v4343_v30, %v841_v34  ;;  %566 = vst.msk [vmem:[#allocation2 + $0x40] sm:$0xff] %vm557_vm0, %v3458_v31 }
 0x115   : > { %v1254_v32 = vmax.f32 %v4336_v62, 0.0  ;;  %v1255_v2 = vmax.f32 %v4338_v20, 0.0  ;;  %567 = vst.msk [vmem:[#allocation2 + $0x48] sm:$0xff] %vm557_vm0, %v3458_v31 }
 0x116   : > { %1484 = vmatmul.f32.gmra.mxu0 %v1224_v55  ;;  %1597 = vmatmul.f32.gmra.mxu1 %v1225_v25  ;;  %1380 = vst [vmem:[%s3736_s24 + $0x260] sm:$0xff] %v1252_v38  ;;  %v1256_v41 = vmax.f32 %v4350_v54, 0.0  ;;  %v1257_v57 = vmax.f32 %v4353_v21, 0.0 }
 0x117   : > { %1710 = vmatmul.f32.gmra.mxu2 %v1226_v29  ;;  %1823 = vmatmul.f32.gmra.mxu3 %v1227_v3  ;;  %1381 = vst [vmem:[%s3736_s24 + $0x268] sm:$0xff] %v1253_v1  ;;  %v5200_v29 = vmax.f32 %v4143_v35, 0.0  ;;  %v5201_v3 = vmax.f32 %v4148_v59, 0.0 }
 0x118   : > { %1382 = vst [vmem:[%s3736_s24 + $0x270] sm:$0xff] %v1254_v32 }
 0x119   : > { %1383 = vst [vmem:[%s3736_s24 + $0x278] sm:$0xff] %v1255_v2  ;;  %v699_v36 = vpop.permute.xlu0 %698  ;;  %v4401_v19 = vpop.permute.xlu1 %995 }
 0x11a   : > { %1384 = vst [vmem:[%s3736_s24 + $0x280] sm:$0xff] %v1256_v41  ;;  %v4407_v55 = vpop.permute.xlu2 %703  ;;  %v846_v58 = vmul.f32 %v3713_v49, %v699_v36 }
 0x11b   : > { %1385 = vst [vmem:[%s3736_s24 + $0x288] sm:$0xff] %v1257_v57  ;;  %v848_v10 = vmul.f32 %v3709_v47, %v4407_v55 }
 0x11c   : > { %568 = vst.msk [vmem:[#allocation2 + $0x50] sm:$0xff] %vm557_vm0, %v3458_v31 }
 0x11d   : > { %569 = vst.msk [vmem:[#allocation2 + $0x58] sm:$0xff] %vm557_vm0, %v3458_v31 }
 0x11e   : > { %1487 = vmatmul.f32.gmra.mxu0 %v1228_v43  ;;  %1600 = vmatmul.f32.gmra.mxu1 %v1229_v44  ;;  %570 = vst.msk [vmem:[#allocation2 + $0x60] sm:$0xff] %vm557_vm0, %v3458_v31  ;;  %v842_v43 = vmul.f32 %v3713_v49, %v4313_v24  ;;  %v843_v44 = vmul.f32 %v3715_v50, %v4313_v24 }
 0x11f   : > { %1713 = vmatmul.f32.gmra.mxu2 %v1230_v16  ;;  %1826 = vmatmul.f32.gmra.mxu3 %v1231_v4  ;;  %571 = vst.msk [vmem:[#allocation2 + $0x68] sm:$0xff] %vm557_vm0, %v3458_v31  ;;  %v844_v16 = vmul.f32 %v3709_v47, %v699_v36  ;;  %v845_v4 = vmul.f32 %v3711_v48, %v699_v36 }
 0x120   : > { %572 = vst.msk [vmem:[#allocation2 + $0x70] sm:$0xff] %vm557_vm0, %v3458_v31  ;;  %v4484_v11 = vadd.f32 %v4343_v30, %v843_v44 }
 0x121   : > { %v4413_v25 = vpop.permute.xlu0 %1000  ;;  %v4435_v8 = vpop.permute.xlu1 %708  ;;  %573 = vst.msk [vmem:[#allocation2 + $0x78] sm:$0xff] %vm557_vm0, %v3458_v31  ;;  %v4493_v26 = vadd.f32 %v4401_v19, %v844_v16  ;;  %v4505_v13 = vadd.f32 %v4401_v19, %v845_v4 }
 0x122   : > { %574 = vst.msk [vmem:[#allocation2 + $0x80] sm:$0xff] %vm557_vm0, %v3458_v31  ;;  %v4441_v52 = vpop.permute.xlu2 %1005 }
 0x123   : > { %575 = vst.msk [vmem:[#allocation2 + $0x88] sm:$0xff] %vm557_vm0, %v3458_v31  ;;  %v5167_v23 = vmax.f32 %v4493_v26, 0.0 }
 0x124   : > { %576 = vst.msk [vmem:[#allocation2 + $0x90] sm:$0xff] %vm557_vm0, %v3458_v31 }
 0x125   : > { %577 = vst.msk [vmem:[#allocation2 + $0x98] sm:$0xff] %vm557_vm0, %v3458_v31 }
 0x126   : > { %1490 = vmatmul.f32.gmra.mxu0 %v1232_v5  ;;  %1603 = vmatmul.f32.gmra.mxu1 %v5200_v29  ;;  %578 = vst.msk [vmem:[#allocation2 + $0xa0] sm:$0xff] %vm557_vm0, %v3458_v31  ;;  %v4476_v5 = vadd.f32 %v4343_v30, %v842_v43  ;;  %v5205_v30 = vmax.f32 %v4236_v56, 0.0  ;;  %v849_v29 = vmul.f32 %v3711_v48, %v4407_v55  ;;  %v1884_v43 = vld [vmem:[#allocation2] sm:$0xff] }
 0x127   : > { %1716 = vmatmul.f32.gmra.mxu2 %v5201_v3  ;;  %1829 = vmatmul.f32.gmra.mxu3 %v5202_v51  ;;  %579 = vst.msk [vmem:[#allocation2 + $0xa8] sm:$0xff] %vm557_vm0, %v3458_v31 }
 0x128   : > { %580 = vst.msk [vmem:[#allocation2 + $0xb0] sm:$0xff] %vm557_vm0, %v3458_v31  ;;  %v1258_v46 = vmax.f32 %v4476_v5, 0.0  ;;  %v4543_v4 = vadd.f32 %v4413_v25, %v849_v29 }
 0x129   : > { %581 = vst.msk [vmem:[#allocation2 + $0xb8] sm:$0xff] %vm557_vm0, %v3458_v31 }
 0x12a   : > { %582 = vst.msk [vmem:[#allocation2 + $0xc0] sm:$0xff] %vm557_vm0, %v3458_v31  ;;  %v4479_v40 = vpop.permute.xlu1 %1010  ;;  %v5161_v17 = vmax.f32 %v4543_v4, 0.0 }
 0x12b   : > { %v4451_v35 = vpop.permute.xlu0 %713  ;;  %583 = vst.msk [vmem:[#allocation2 + $0xc8] sm:$0xff] %vm557_vm0, %v3458_v31 }
 0x12c   : > { %584 = vst.msk [vmem:[#allocation2 + $0xd0] sm:$0xff] %vm557_vm0, %v3458_v31 }
 0x12d   : > { %585 = vst.msk [vmem:[#allocation2 + $0xd8] sm:$0xff] %vm557_vm0, %v3458_v31 }
 0x12e   : > { %1493 = vmatmul.f32.gmra.mxu0 %v5203_v33  ;;  %1606 = vmatmul.f32.gmra.mxu1 %v5204_v42  ;;  %586 = vst.msk [vmem:[#allocation2 + $0xe0] sm:$0xff] %vm557_vm0, %v3458_v31  ;;  %v5158_v33 = vmax.f32 %v4505_v13, 0.0  ;;  %v850_v42 = vmul.f32 %v3713_v49, %v4407_v55 }
 0x12f   : > { %1719 = vmatmul.f32.gmra.mxu2 %v1238_v27  ;;  %1832 = vmatmul.f32.gmra.mxu3 %v1239_v60  ;;  %v847_v27 = vmul.f32 %v3715_v50, %v699_v36  ;;  %v4496_v60 = vpop.permute.xlu2 %718  ;;  %587 = vst.msk [vmem:[#allocation2 + $0xe8] sm:$0xff] %vm557_vm0, %v3458_v31  ;;  %v4527_v36 = vadd.f32 %v4413_v25, %v848_v10  ;;  %v5206_v10 = vmax.f32 %v4241_v15, 0.0  ;;  %v5207_v15 = vmax.f32 %v4251_v45, 0.0 }
 0x130   : > { %588 = vst.msk [vmem:[#allocation2 + $0xf0] sm:$0xff] %vm557_vm0, %v3458_v31 }
 0x131   : > { %v4524_v34 = vadd.f32 %v4401_v19, %v847_v27  ;;  %589 = vst.msk [vmem:[#allocation2 + $0xf8] sm:$0xff] %vm557_vm0, %v3458_v31  ;;  %v851_v31 = vmul.f32 %v3715_v50, %v4407_v55  ;;  %v4553_v27 = vadd.f32 %v4413_v25, %v850_v42 }
 0x132   : > { %1386 = vst [vmem:[%s3736_s24 + $0x290] sm:$0xff] %v1258_v46  ;;  %v4569_v29 = vpop.permute.xlu1 %723 }
 0x133   : > { %v1449_v59 = vpop.f32.mrf.mxu0  ;;  %v1562_v9 = vpop.f32.mrf.mxu1  ;;  %1388 = vst [vmem:[%s3736_s24 + $0x2a0] sm:$0xff] %v5167_v23  ;;  %v5156_v55 = vmax.f32 %v4524_v34, 0.0 }
 0x134   : > { %v1563_v56 = vadd.f32 %v1562_v9, %v1449_v59  ;;  %v853_v9 = vmul.f32 %v3711_v48, %v4435_v8  ;;  %1389 = vst [vmem:[%s3736_s24 + $0x2a8] sm:$0xff] %v5158_v33  ;;  %v1885_v33 = vld [vmem:[#allocation2 + $0x8] sm:$0xff] }
 0x135   : > { %1391 = vst [vmem:[%s3736_s24 + $0x2b8] sm:$0xff] %v5156_v55 }
 0x136   : > { %1496 = vmatmul.f32.gmra.mxu0 %v1240_v7  ;;  %1609 = vmatmul.f32.gmra.mxu1 %v1241_v61  ;;  %v4511_v7 = vadd.f32 %v4401_v19, %v846_v58  ;;  %v4515_v61 = vpop.permute.xlu0 %1015  ;;  %v852_v19 = vmul.f32 %v3709_v47, %v4435_v8  ;;  %v4590_v45 = vadd.f32 %v4441_v52, %v853_v9 }
 0x137   : > { %1722 = vmatmul.f32.gmra.mxu2 %v1242_v39  ;;  %1835 = vmatmul.f32.gmra.mxu3 %v5205_v30  ;;  %v1259_v39 = vmax.f32 %v4484_v11, 0.0  ;;  %v854_v30 = vmul.f32 %v3713_v49, %v4435_v8  ;;  %1393 = vst [vmem:[%s3736_s24 + $0x2c8] sm:$0xff] %v5161_v17  ;;  %v5210_v17 = vmax.f32 %v4294_v12, 0.0 }
 0x138   : > { %v5157_v59 = vmax.f32 %v4511_v7, 0.0  ;;  %v4579_v6 = vadd.f32 %v4441_v52, %v852_v19  ;;  %v858_v19 = vmul.f32 %v3713_v49, %v4451_v35 }
 0x139   : > { %1387 = vst [vmem:[%s3736_s24 + $0x298] sm:$0xff] %v1259_v39  ;;  %v4599_v42 = vadd.f32 %v4441_v52, %v854_v30 }
 0x13a   : > { %v1675_v24 = vpop.f32.mrf.mxu2  ;;  %v1788_v51 = vpop.f32.mrf.mxu3  ;;  %1390 = vst [vmem:[%s3736_s24 + $0x2b0] sm:$0xff] %v5157_v59  ;;  %v5164_v30 = vmax.f32 %v4579_v6, 0.0 }
 0x13b   : > { %v1676_v3 = vadd.f32 %v1675_v24, %v1563_v56  ;;  %v1452_v44 = vpop.f32.mrf.mxu0  ;;  %v1565_v16 = vpop.f32.mrf.mxu1  ;;  %v5159_v56 = vmax.f32 %v4527_v36, 0.0  ;;  %v4567_v24 = vadd.f32 %v4413_v25, %v851_v31  ;;  %v856_v25 = vmul.f32 %v3709_v47, %v4451_v35 }
 0x13c   : > { %1396 = vst [vmem:[%s3736_s24 + $0x2e0] sm:$0xff] %v5164_v30 }
 0x13d   : > { %v1789_v58 = vadd.f32 %v1788_v51, %v1676_v3  ;;  %v857_v51 = vmul.f32 %v3711_v48, %v4451_v35  ;;  %v5165_v9 = vmax.f32 %v4567_v24, 0.0  ;;  %1392 = vst [vmem:[%s3736_s24 + $0x2c0] sm:$0xff] %v5159_v56  ;;  %v4623_v59 = vadd.f32 %v4479_v40, %v856_v25 }
 0x13e   : > { %1499 = vmatmul.f32.gmra.mxu0 %v5206_v10  ;;  %1612 = vmatmul.f32.gmra.mxu1 %v1245_v53  ;;  %v855_v53 = vmul.f32 %v3715_v50, %v4435_v8  ;;  %v5160_v8 = vmax.f32 %v4553_v27, 0.0  ;;  %v4609_v10 = vpop.permute.xlu0 %728  ;;  %v5162_v56 = vmax.f32 %v4599_v42, 0.0  ;;  %v5209_v25 = vmax.f32 %v4292_v28, 0.0 }
 0x13f   : > { %v1916_v3 = vadd.f32 %v1884_v43, %v1789_v58  ;;  %1725 = vmatmul.f32.gmra.mxu2 %v1246_v14  ;;  %1838 = vmatmul.f32.gmra.mxu3 %v5207_v15  ;;  %v4592_v14 = vpop.permute.xlu2 %1020  ;;  %v1566_v43 = vadd.f32 %v1565_v16, %v1452_v44  ;;  %v859_v58 = vmul.f32 %v3715_v50, %v4451_v35  ;;  %v5163_v35 = vmax.f32 %v4590_v45, 0.0 }
 0x140   : > { %v4616_v44 = vadd.f32 %v4441_v52, %v855_v53  ;;  %1394 = vst [vmem:[%s3736_s24 + $0x2d0] sm:$0xff] %v5160_v8  ;;  %v4630_v52 = vadd.f32 %v4479_v40, %v857_v51  ;;  %v860_v53 = vmul.f32 %v3709_v47, %v4496_v60  ;;  %v4642_v8 = vadd.f32 %v4479_v40, %v858_v19 }
 0x141   : > { %1949 = vst.msk [vmem:[#allocation2] sm:$0xff] %vm557_vm0, %v1916_v3  ;;  %v861_v51 = vmul.f32 %v3711_v48, %v4496_v60  ;;  %v4655_v28 = vadd.f32 %v4479_v40, %v859_v58  ;;  %v862_v19 = vmul.f32 %v3713_v49, %v4496_v60  ;;  %v1272_v12 = vmax.f32 %v4623_v59, 0.0 }
 0x142   : > { %v1678_v31 = vpop.f32.mrf.mxu2  ;;  %v1791_v3 = vpop.f32.mrf.mxu3  ;;  %1395 = vst [vmem:[%s3736_s24 + $0x2d8] sm:$0xff] %v5165_v9  ;;  %v4664_v0 = vadd.f32 %v4515_v61, %v860_v53  ;;  %v864_v40 = vmul.f32 %v3709_v47, %v4569_v29  ;;  %v868_v23 = vmul.f32 %v3709_v47, %v4609_v10  ;;  %v870_v37 = vmul.f32 %v3713_v49, %v4609_v10 }
 0x143   : > { %v1679_v16 = vadd.f32 %v1678_v31, %v1566_v43  ;;  %v1455_v15 = vpop.f32.mrf.mxu0  ;;  %v1568_v55 = vpop.f32.mrf.mxu1  ;;  %v5208_v31 = vmax.f32 %v4290_v22, 0.0  ;;  %v5166_v22 = vmax.f32 %v4616_v44, 0.0  ;;  %1397 = vst [vmem:[%s3736_s24 + $0x2e8] sm:$0xff] %v5163_v35  ;;  %v1886_v35 = vld [vmem:[#allocation2 + $0x10] sm:$0xff]  ;;  %v871_v20 = vmul.f32 %v3715_v50, %v4609_v10 }
 0x144   : > { %v1569_v58 = vadd.f32 %v1568_v55, %v1455_v15  ;;  %1398 = vst [vmem:[%s3736_s24 + $0x2f0] sm:$0xff] %v5162_v56  ;;  %v866_v15 = vmul.f32 %v3713_v49, %v4569_v29  ;;  %v5170_v9 = vmax.f32 %v4664_v0, 0.0 }
 0x145   : > { %v1792_v43 = vadd.f32 %v1791_v3, %v1679_v16  ;;  %v865_v16 = vmul.f32 %v3711_v48, %v4569_v29  ;;  %1399 = vst [vmem:[%s3736_s24 + $0x2f8] sm:$0xff] %v5166_v22 }
 0x146   : > { %1502 = vmatmul.f32.gmra.mxu0 %v5208_v31  ;;  %1615 = vmatmul.f32.gmra.mxu1 %v5209_v25  ;;  %v4684_v31 = vadd.f32 %v4515_v61, %v862_v19  ;;  %1400 = vst [vmem:[%s3736_s24 + $0x300] sm:$0xff] %v1272_v12 }
 0x147   : > { %1728 = vmatmul.f32.gmra.mxu2 %v5210_v17  ;;  %1841 = vmatmul.f32.gmra.mxu3 %v1251_v63  ;;  %v1917_v3 = vadd.f32 %v1885_v33, %v1792_v43  ;;  %v863_v63 = vmul.f32 %v3715_v50, %v4496_v60  ;;  %v4670_v17 = vpop.permute.xlu1 %1025  ;;  %v1273_v33 = vmax.f32 %v4630_v52, 0.0  ;;  %v5181_v60 = vmax.f32 %v4642_v8, 0.0  ;;  %v4686_v55 = vpop.permute.xlu2 %733  ;;  %1404 = vst [vmem:[%s3736_s24 + $0x320] sm:$0xff] %v5170_v9  ;;  %v1892_v52 = vld [vmem:[#allocation2 + $0x40] sm:$0xff] }
 0x148   : > { %v4681_v43 = vadd.f32 %v4515_v61, %v861_v51  ;;  %v867_v51 = vmul.f32 %v3715_v50, %v4569_v29  ;;  %v4709_v29 = vadd.f32 %v4592_v14, %v864_v40  ;;  %v869_v40 = vmul.f32 %v3711_v48, %v4609_v10 }
 0x149   : > { %1950 = vst.msk [vmem:[#allocation2 + $0x8] sm:$0xff] %vm557_vm0, %v1917_v3  ;;  %v5171_v3 = vmax.f32 %v4655_v28, 0.0 }
 0x14a   : > { %v1681_v53 = vpop.f32.mrf.mxu2  ;;  %v1794_v56 = vpop.f32.mrf.mxu3  ;;  %1401 = vst [vmem:[%s3736_s24 + $0x308] sm:$0xff] %v1273_v33  ;;  %v4744_v62 = vadd.f32 %v4592_v14, %v867_v51  ;;  %v872_v51 = vmul.f32 %v3709_v47, %v4686_v55 }
 0x14b   : > { %v1682_v25 = vadd.f32 %v1681_v53, %v1569_v58  ;;  %v1458_v19 = vpop.f32.mrf.mxu0  ;;  %v1571_v30 = vpop.f32.mrf.mxu1  ;;  %v4701_v58 = vadd.f32 %v4515_v61, %v863_v63  ;;  %1402 = vst [vmem:[%s3736_s24 + $0x310] sm:$0xff] %v5181_v60  ;;  %v5169_v61 = vmax.f32 %v4681_v43, 0.0  ;;  %v4723_v63 = vadd.f32 %v4592_v14, %v865_v16 }
 0x14c   : > { %v4703_v53 = vpop.permute.xlu0 %1030  ;;  %1403 = vst [vmem:[%s3736_s24 + $0x318] sm:$0xff] %v5171_v3  ;;  %v4781_v3 = vadd.f32 %v4670_v17, %v871_v20  ;;  %v5213_v60 = vmax.f32 %v4511_v7, 0.0 }
 0x14d   : > { %v1795_v22 = vadd.f32 %v1794_v56, %v1682_v25  ;;  %v5168_v56 = vmax.f32 %v4684_v31, 0.0  ;;  %v5172_v18 = vmax.f32 %v4701_v58, 0.0  ;;  %1405 = vst [vmem:[%s3736_s24 + $0x328] sm:$0xff] %v5169_v61 }
 0x14e   : > { %1505 = vmatmul.f32.gmra.mxu0 %v1252_v38  ;;  %1618 = vmatmul.f32.gmra.mxu1 %v1253_v1  ;;  %v4735_v38 = vadd.f32 %v4592_v14, %v866_v15  ;;  %v5180_v1 = vmax.f32 %v4709_v29, 0.0 }
 0x14f   : > { %v1918_v25 = vadd.f32 %v1886_v35, %v1795_v22  ;;  %1731 = vmatmul.f32.gmra.mxu2 %v1254_v32  ;;  %1844 = vmatmul.f32.gmra.mxu3 %v1255_v2  ;;  %v1572_v2 = vadd.f32 %v1571_v30, %v1458_v19  ;;  %v5177_v35 = vmax.f32 %v4723_v63, 0.0  ;;  %v4755_v22 = vadd.f32 %v4670_v17, %v868_v23  ;;  %v739_v14 = vpop.permute.xlu1 %738  ;;  %v1887_v19 = vld [vmem:[#allocation2 + $0x18] sm:$0xff]  ;;  %v1036_v61 = vpop.permute.xlu2 %1035 }
 0x150   : > { %1406 = vst [vmem:[%s3736_s24 + $0x330] sm:$0xff] %v5168_v56  ;;  %v5175_v10 = vmax.f32 %v4735_v38, 0.0  ;;  %v4762_v30 = vadd.f32 %v4670_v17, %v869_v40  ;;  %v873_v56 = vmul.f32 %v3711_v48, %v4686_v55  ;;  %v874_v40 = vmul.f32 %v3713_v49, %v4686_v55 }
 0x151   : > { %1951 = vst.msk [vmem:[#allocation2 + $0x10] sm:$0xff] %vm557_vm0, %v1918_v25 }
 0x152   : > { %v1684_v32 = vpop.f32.mrf.mxu2  ;;  %v1797_v15 = vpop.f32.mrf.mxu3  ;;  %1407 = vst [vmem:[%s3736_s24 + $0x338] sm:$0xff] %v5172_v18  ;;  %v876_v18 = vmul.f32 %v3709_v47, %v739_v14  ;;  %v5176_v54 = vmax.f32 %v4762_v30, 0.0  ;;  %v4804_v21 = vadd.f32 %v4703_v53, %v873_v56  ;;  %v4814_v11 = vadd.f32 %v4703_v53, %v874_v40 }
 0x153   : > { %v1685_v16 = vadd.f32 %v1684_v32, %v1572_v2  ;;  %v1461_v25 = vpop.f32.mrf.mxu0  ;;  %v1574_v23 = vpop.f32.mrf.mxu1  ;;  %v5174_v2 = vmax.f32 %v4744_v62, 0.0  ;;  %v4771_v32 = vadd.f32 %v4670_v17, %v870_v37  ;;  %1408 = vst [vmem:[%s3736_s24 + $0x340] sm:$0xff] %v5180_v1  ;;  %v5173_v37 = vmax.f32 %v4755_v22, 0.0 }
 0x154   : > { %1409 = vst [vmem:[%s3736_s24 + $0x348] sm:$0xff] %v5177_v35  ;;  %v5211_v35 = vmax.f32 %v4493_v26, 0.0  ;;  %v5214_v26 = vmax.f32 %v4524_v34, 0.0 }
 0x155   : > { %v1798_v9 = vadd.f32 %v1797_v15, %v1685_v16  ;;  %v4793_v16 = vadd.f32 %v4703_v53, %v872_v51  ;;  %v744_v15 = vpop.permute.xlu0 %743  ;;  %1410 = vst [vmem:[%s3736_s24 + $0x350] sm:$0xff] %v5175_v10  ;;  %v5178_v5 = vmax.f32 %v4771_v32, 0.0 }
 0x156   : > { %1508 = vmatmul.f32.gmra.mxu0 %v1256_v41  ;;  %1621 = vmatmul.f32.gmra.mxu1 %v1257_v57  ;;  %v875_v41 = vmul.f32 %v3715_v50, %v4686_v55  ;;  %v877_v57 = vmul.f32 %v3711_v48, %v739_v14  ;;  %1411 = vst [vmem:[%s3736_s24 + $0x358] sm:$0xff] %v5174_v2 }
 0x157   : > { %v1919_v17 = vadd.f32 %v1887_v19, %v1798_v9  ;;  %1734 = vmatmul.f32.gmra.mxu2 %v1258_v46  ;;  %1847 = vmatmul.f32.gmra.mxu3 %v1259_v39  ;;  %v878_v46 = vmul.f32 %v3713_v49, %v739_v14  ;;  %v1575_v39 = vadd.f32 %v1574_v23, %v1461_v25  ;;  %v5179_v9 = vmax.f32 %v4781_v3, 0.0 }
 0x158   : > { %v879_v55 = vmul.f32 %v3715_v50, %v739_v14  ;;  %1412 = vst [vmem:[%s3736_s24 + $0x360] sm:$0xff] %v5173_v37  ;;  %v1288_v20 = vmax.f32 %v4793_v16, 0.0  ;;  %v4825_v51 = vadd.f32 %v4703_v53, %v875_v41  ;;  %v4827_v19 = vadd.f32 %v1036_v61, %v876_v18  ;;  %v1888_v37 = vld [vmem:[#allocation2 + $0x20] sm:$0xff] }
 0x159   : > { %1952 = vst.msk [vmem:[#allocation2 + $0x18] sm:$0xff] %vm557_vm0, %v1919_v17  ;;  %v880_v40 = vmul.f32 %v3709_v47, %v744_v15  ;;  %v1289_v14 = vmax.f32 %v4804_v21, 0.0  ;;  %v881_v17 = vmul.f32 %v3711_v48, %v744_v15  ;;  %v1290_v53 = vmax.f32 %v4814_v11, 0.0  ;;  %v1896_v21 = vld [vmem:[#allocation2 + $0x60] sm:$0xff] }
 0x15a   : > { %v1687_v56 = vpop.f32.mrf.mxu2  ;;  %v1800_v23 = vpop.f32.mrf.mxu3  ;;  %1413 = vst [vmem:[%s3736_s24 + $0x368] sm:$0xff] %v5176_v54  ;;  %v4839_v18 = vadd.f32 %v1036_v61, %v877_v57  ;;  %v882_v54 = vmul.f32 %v3713_v49, %v744_v15  ;;  %v5182_v57 = vmax.f32 %v4825_v51, 0.0 }
 0x15b   : > { %v1688_v25 = vadd.f32 %v1687_v56, %v1575_v39  ;;  %v1464_v2 = vpop.f32.mrf.mxu0  ;;  %v1577_v10 = vpop.f32.mrf.mxu1  ;;  %1414 = vst [vmem:[%s3736_s24 + $0x370] sm:$0xff] %v5178_v5  ;;  %v4844_v39 = vadd.f32 %v1036_v61, %v878_v46  ;;  %v5212_v5 = vmax.f32 %v4505_v13, 0.0 }
 0x15c   : > { %1415 = vst [vmem:[%s3736_s24 + $0x378] sm:$0xff] %v5179_v9  ;;  %v1041_v56 = vpop.permute.xlu1 %1040  ;;  %v749_v46 = vpop.permute.xlu2 %748  ;;  %v883_v9 = vmul.f32 %v3715_v50, %v744_v15  ;;  %v1578_v7 = vadd.f32 %v1577_v10, %v1464_v2 }
 0x15d   : > { %v1801_v41 = vadd.f32 %v1800_v23, %v1688_v25  ;;  %1416 = vst [vmem:[%s3736_s24 + $0x380] sm:$0xff] %v1288_v20  ;;  %v1292_v25 = vmax.f32 %v4827_v19, 0.0  ;;  %v4856_v23 = vadd.f32 %v1036_v61, %v879_v55  ;;  %v4866_v13 = vadd.f32 %v1041_v56, %v880_v40  ;;  %v1897_v19 = vld [vmem:[#allocation2 + $0x68] sm:$0xff] }
 0x15e   : > { %1511 = vmatmul.f32.gmra.mxu0 %v5211_v35  ;;  %1624 = vmatmul.f32.gmra.mxu1 %v5212_v5  ;;  %1417 = vst [vmem:[%s3736_s24 + $0x388] sm:$0xff] %v1289_v14  ;;  %v5183_v61 = vmax.f32 %v4839_v18, 0.0  ;;  %v4872_v35 = vadd.f32 %v1041_v56, %v881_v17  ;;  %v1294_v34 = vmax.f32 %v4844_v39, 0.0  ;;  %v884_v15 = vmul.f32 %v3709_v47, %v749_v46 }
 0x15f   : > { %v1920_v1 = vadd.f32 %v1888_v37, %v1801_v41  ;;  %1737 = vmatmul.f32.gmra.mxu2 %v5213_v60  ;;  %1850 = vmatmul.f32.gmra.mxu3 %v5214_v26  ;;  %1418 = vst [vmem:[%s3736_s24 + $0x390] sm:$0xff] %v1290_v53  ;;  %v1046_v37 = vpop.permute.xlu0 %1045  ;;  %v2109_v60 = vld [vmem:[#allocation8 + $0x1e8] sm:$0xff]  ;;  %v1295_v55 = vmax.f32 %v4856_v23, 0.0  ;;  %v4881_v40 = vadd.f32 %v1041_v56, %v882_v54  ;;  %v1296_v47 = vmax.f32 %v4866_v13, 0.0 }
 0x160   : > { %2290 = vmatpush.msra.mxu2 %v2109_v60  ;;  %1419 = vst [vmem:[%s3736_s24 + $0x398] sm:$0xff] %v5182_v57  ;;  %v885_v17 = vmul.f32 %v3711_v48, %v749_v46  ;;  %v4888_v2 = vadd.f32 %v1041_v56, %v883_v9  ;;  %v886_v41 = vmul.f32 %v3713_v49, %v749_v46  ;;  %v1889_v60 = vld [vmem:[#allocation2 + $0x28] sm:$0xff]  ;;  %v1297_v48 = vmax.f32 %v4872_v35, 0.0  ;;  %v1898_v35 = vld [vmem:[#allocation2 + $0x70] sm:$0xff] }
 0x161   : > { %1953 = vst.msk [vmem:[#allocation2 + $0x20] sm:$0xff] %vm557_vm0, %v1920_v1  ;;  %v4891_v26 = vadd.f32 %v1046_v37, %v884_v15  ;;  %v5215_v56 = vmax.f32 %v4527_v36, 0.0  ;;  %v5216_v15 = vmax.f32 %v4543_v4, 0.0 }
 0x162   : > { %v1690_v5 = vpop.f32.mrf.mxu2  ;;  %v1803_v10 = vpop.f32.mrf.mxu3  ;;  %1420 = vst [vmem:[%s3736_s24 + $0x3a0] sm:$0xff] %v1292_v25  ;;  %v4903_v49 = vadd.f32 %v1046_v37, %v886_v41  ;;  %v1299_v36 = vmax.f32 %v4888_v2, 0.0  ;;  %v2172_v41 = vld [vmem:[#allocation8 + $0x3e0] sm:$0xff] }
 0x163   : > { %v1691_v1 = vadd.f32 %v1690_v5, %v1578_v7  ;;  %v1467_v54 = vpop.f32.mrf.mxu0  ;;  %v1580_v57 = vpop.f32.mrf.mxu1  ;;  %1421 = vst [vmem:[%s3736_s24 + $0x3a8] sm:$0xff] %v5183_v61  ;;  %v887_v7 = vmul.f32 %v3715_v50, %v749_v46  ;;  %v4898_v5 = vadd.f32 %v1046_v37, %v885_v17  ;;  %v1298_v61 = vmax.f32 %v4881_v40, 0.0  ;;  %2270 = vmatpush.msra.mxu1 %v2172_v41 }
 0x164   : > { %1422 = vst [vmem:[%s3736_s24 + $0x3b0] sm:$0xff] %v1294_v34  ;;  %v5217_v17 = vmax.f32 %v4553_v27, 0.0  ;;  %v1300_v4 = vmax.f32 %v4891_v26, 0.0  ;;  %v2173_v27 = vld [vmem:[#allocation8 + $0x3e8] sm:$0xff]  ;;  %v5222_v41 = vmax.f32 %v4616_v44, 0.0  ;;  %v5223_v44 = vmax.f32 %v4642_v8, 0.0 }
 0x165   : > { %v1804_v9 = vadd.f32 %v1803_v10, %v1691_v1  ;;  %1423 = vst [vmem:[%s3736_s24 + $0x3b8] sm:$0xff] %v1295_v55  ;;  %v4913_v50 = vadd.f32 %v1046_v37, %v887_v7  ;;  %v5218_v1 = vmax.f32 %v4567_v24, 0.0  ;;  %v1581_v37 = vadd.f32 %v1580_v57, %v1467_v54  ;;  %v2108_v10 = vld [vmem:[#allocation8 + $0x1e0] sm:$0xff]  ;;  %2310 = vmatpush.msra.mxu3 %v2173_v27  ;;  %v1890_v54 = vld [vmem:[#allocation2 + $0x30] sm:$0xff]  ;;  %v1899_v26 = vld [vmem:[#allocation2 + $0x78] sm:$0xff] }
 0x166   : > { %1514 = vmatmul.f32.gmra.mxu0 %v5215_v56  ;;  %1627 = vmatmul.f32.gmra.mxu1 %v5216_v15  ;;  %1424 = vst [vmem:[%s3736_s24 + $0x3c0] sm:$0xff] %v1296_v47  ;;  %v1301_v24 = vmax.f32 %v4898_v5, 0.0  ;;  %v1302_v7 = vmax.f32 %v4903_v49, 0.0 }
 0x167   : > { %v1921_v46 = vadd.f32 %v1889_v60, %v1804_v9  ;;  %1740 = vmatmul.f32.gmra.mxu2 %v5217_v17  ;;  %1853 = vmatmul.f32.gmra.mxu3 %v5218_v1  ;;  %1425 = vst [vmem:[%s3736_s24 + $0x3c8] sm:$0xff] %v1297_v48  ;;  %v1303_v57 = vmax.f32 %v4913_v50, 0.0  ;;  %v5219_v1 = vmax.f32 %v4579_v6, 0.0  ;;  %v2152_v50 = vld [vmem:[#allocation8 + $0x340] sm:$0xff] }
 0x168   : > { %2250 = vmatpush.msra.mxu0 %v2108_v10  ;;  %1426 = vst [vmem:[%s3736_s24 + $0x3d0] sm:$0xff] %v1298_v61  ;;  %v5221_v10 = vmax.f32 %v4599_v42, 0.0 }
 0x169   : > { %1954 = vst.msk [vmem:[#allocation2 + $0x28] sm:$0xff] %vm557_vm0, %v1921_v46 }
 0x16a   : > { %v1693_v60 = vpop.f32.mrf.mxu2  ;;  %v1806_v56 = vpop.f32.mrf.mxu3  ;;  %1427 = vst [vmem:[%s3736_s24 + $0x3d8] sm:$0xff] %v1299_v36 }
 0x16b   : > { %v1694_v9 = vadd.f32 %v1693_v60, %v1581_v37  ;;  %v1470_v15 = vpop.f32.mrf.mxu0  ;;  %v1583_v46 = vpop.f32.mrf.mxu1  ;;  %1428 = vst [vmem:[%s3736_s24 + $0x3e0] sm:$0xff] %v1300_v4  ;;  %v5220_v37 = vmax.f32 %v4590_v45, 0.0  ;;  %v2105_v60 = vld [vmem:[#allocation8 + $0x1c8] sm:$0xff] }
 0x16c   : > { %1429 = vst [vmem:[%s3736_s24 + $0x3e8] sm:$0xff] %v1301_v24  ;;  %v1584_v6 = vadd.f32 %v1583_v46, %v1470_v15  ;;  %2291 = vmatpush.msra.mxu2 %v2105_v60  ;;  %v5224_v15 = vmax.f32 %v4655_v28, 0.0  ;;  %v5226_v28 = vmax.f32 %v4681_v43, 0.0 }
 0x16d   : > { %v1807_v17 = vadd.f32 %v1806_v56, %v1694_v9  ;;  %1430 = vst [vmem:[%s3736_s24 + $0x3f0] sm:$0xff] %v1302_v7 }
 0x16e   : > { %1517 = vmatmul.f32.gmra.mxu0 %v5219_v1  ;;  %1630 = vmatmul.f32.gmra.mxu1 %v5220_v37  ;;  %1431 = vst [vmem:[%s3736_s24 + $0x3f8] sm:$0xff] %v1303_v57  ;;  %v1891_v1 = vld [vmem:[#allocation2 + $0x38] sm:$0xff] }
 0x16f   : > { %v1922_v27 = vadd.f32 %v1890_v54, %v1807_v17  ;;  %1743 = vmatmul.f32.gmra.mxu2 %v5221_v10  ;;  %1856 = vmatmul.f32.gmra.mxu3 %v5222_v41  ;;  %v2104_v10 = vld [vmem:[#allocation8 + $0x1c0] sm:$0xff] }
 0x170   : > { %v2168_v41 = vld [vmem:[#allocation8 + $0x3c0] sm:$0xff]  ;;  %2251 = vmatpush.msra.mxu0 %v2104_v10  ;;  %v5231_v10 = vmax.f32 %v4735_v38, 0.0 }
 0x171   : > { %1955 = vst.msk [vmem:[#allocation2 + $0x30] sm:$0xff] %vm557_vm0, %v1922_v27  ;;  %v2169_v27 = vld [vmem:[#allocation8 + $0x3c8] sm:$0xff]  ;;  %2271 = vmatpush.msra.mxu1 %v2168_v41  ;;  %v5232_v41 = vmax.f32 %v4744_v62, 0.0  ;;  %v5234_v62 = vmax.f32 %v4762_v30, 0.0 }
 0x172   : > { %v1696_v9 = vpop.f32.mrf.mxu2  ;;  %v1809_v56 = vpop.f32.mrf.mxu3  ;;  %2311 = vmatpush.msra.mxu3 %v2169_v27  ;;  %v5229_v27 = vmax.f32 %v4709_v29, 0.0 }
 0x173   : > { %v1697_v45 = vadd.f32 %v1696_v9, %v1584_v6  ;;  %v1473_v37 = vpop.f32.mrf.mxu0  ;;  %v1586_v54 = vpop.f32.mrf.mxu1  ;;  %v5225_v9 = vmax.f32 %v4664_v0, 0.0  ;;  %v1893_v0 = vld [vmem:[#allocation2 + $0x48] sm:$0xff] }
 0x174   : > { %v1587_v46 = vadd.f32 %v1586_v54, %v1473_v37  ;;  %v2101_v54 = vld [vmem:[#allocation8 + $0x1a8] sm:$0xff] }
 0x175   : > { %v1810_v17 = vadd.f32 %v1809_v56, %v1697_v45  ;;  %v5227_v56 = vmax.f32 %v4684_v31, 0.0  ;;  %2292 = vmatpush.msra.mxu2 %v2101_v54  ;;  %v5230_v31 = vmax.f32 %v4723_v63, 0.0  ;;  %v1894_v63 = vld [vmem:[#allocation2 + $0x50] sm:$0xff]  ;;  %v2097_v54 = vld [vmem:[#allocation8 + $0x188] sm:$0xff] }
 0x176   : > { %1520 = vmatmul.f32.gmra.mxu0 %v1272_v12  ;;  %1633 = vmatmul.f32.gmra.mxu1 %v1273_v33 }
 0x177   : > { %v1923_v42 = vadd.f32 %v1891_v1, %v1810_v17  ;;  %1746 = vmatmul.f32.gmra.mxu2 %v5223_v44  ;;  %1859 = vmatmul.f32.gmra.mxu3 %v5224_v15  ;;  %v5228_v1 = vmax.f32 %v4701_v58, 0.0 }
 0x178   : > { %2293 = vmatpush.msra.mxu2 %v2097_v54 }
 0x179   : > { %1956 = vst.msk [vmem:[#allocation2 + $0x38] sm:$0xff] %vm557_vm0, %v1923_v42 }
 0x17a   : > { %v1699_v6 = vpop.f32.mrf.mxu2  ;;  %v1812_v12 = vpop.f32.mrf.mxu3 }
 0x17b   : > { %v1700_v59 = vadd.f32 %v1699_v6, %v1587_v46  ;;  %v1476_v33 = vpop.f32.mrf.mxu0  ;;  %v1589_v60 = vpop.f32.mrf.mxu1 }
 0x17c   : > { %v1590_v37 = vadd.f32 %v1589_v60, %v1476_v33 }
 0x17d   : > { %v1813_v8 = vadd.f32 %v1812_v12, %v1700_v59  ;;  %v2165_v59 = vld [vmem:[#allocation8 + $0x3a8] sm:$0xff]  ;;  %v2100_v12 = vld [vmem:[#allocation8 + $0x1a0] sm:$0xff] }
 0x17e   : > { %1523 = vmatmul.f32.gmra.mxu0 %v5225_v9  ;;  %1636 = vmatmul.f32.gmra.mxu1 %v5226_v28  ;;  %v5233_v28 = vmax.f32 %v4755_v22, 0.0  ;;  %v1895_v22 = vld [vmem:[#allocation2 + $0x58] sm:$0xff] }
 0x17f   : > { %v1924_v45 = vadd.f32 %v1892_v52, %v1813_v8  ;;  %1749 = vmatmul.f32.gmra.mxu2 %v5227_v56  ;;  %1862 = vmatmul.f32.gmra.mxu3 %v5228_v1  ;;  %v2164_v52 = vld [vmem:[#allocation8 + $0x3a0] sm:$0xff]  ;;  %v5235_v56 = vmax.f32 %v4771_v32, 0.0  ;;  %v5236_v1 = vmax.f32 %v4781_v3, 0.0  ;;  %v5237_v32 = vmax.f32 %v4825_v51, 0.0 }
 0x180   : > { %2312 = vmatpush.msra.mxu3 %v2165_v59  ;;  %2252 = vmatpush.msra.mxu0 %v2100_v12  ;;  %v5238_v51 = vmax.f32 %v4839_v18, 0.0 }
 0x181   : > { %1957 = vst.msk [vmem:[#allocation2 + $0x40] sm:$0xff] %vm557_vm0, %v1924_v45  ;;  %2272 = vmatpush.msra.mxu1 %v2164_v52 }
 0x182   : > { %v1702_v17 = vpop.f32.mrf.mxu2  ;;  %v1815_v44 = vpop.f32.mrf.mxu3 }
 0x183   : > { %v1703_v42 = vadd.f32 %v1702_v17, %v1590_v37  ;;  %v1479_v15 = vpop.f32.mrf.mxu0  ;;  %v1592_v46 = vpop.f32.mrf.mxu1 }
 0x184   : > { %v1593_v6 = vadd.f32 %v1592_v46, %v1479_v15 }
 0x185   : > { %v1816_v43 = vadd.f32 %v1815_v44, %v1703_v42 }
 0x186   : > { %1526 = vmatmul.f32.gmra.mxu0 %v5229_v27  ;;  %1639 = vmatmul.f32.gmra.mxu1 %v5230_v31  ;;  %v2096_v27 = vld [vmem:[#allocation8 + $0x180] sm:$0xff] }
 0x187   : > { %v1925_v58 = vadd.f32 %v1893_v0, %v1816_v43  ;;  %1752 = vmatmul.f32.gmra.mxu2 %v5231_v10  ;;  %1865 = vmatmul.f32.gmra.mxu3 %v5232_v41  ;;  %v2161_v43 = vld [vmem:[#allocation8 + $0x388] sm:$0xff]  ;;  %v2160_v31 = vld [vmem:[#allocation8 + $0x380] sm:$0xff] }
 0x188   : > { %2313 = vmatpush.msra.mxu3 %v2161_v43  ;;  %2253 = vmatpush.msra.mxu0 %v2096_v27 }
 0x189   : > { %1958 = vst.msk [vmem:[#allocation2 + $0x48] sm:$0xff] %vm557_vm0, %v1925_v58  ;;  %2273 = vmatpush.msra.mxu1 %v2160_v31  ;;  %v1901_v31 = vld [vmem:[#allocation2 + $0x88] sm:$0xff] }
 0x18a   : > { %v1705_v33 = vpop.f32.mrf.mxu2  ;;  %v1818_v60 = vpop.f32.mrf.mxu3 }
 0x18b   : > { %v1706_v29 = vadd.f32 %v1705_v33, %v1593_v6  ;;  %v1482_v8 = vpop.f32.mrf.mxu0  ;;  %v1595_v9 = vpop.f32.mrf.mxu1  ;;  %v2093_v6 = vld [vmem:[#allocation8 + $0x168] sm:$0xff] }
 0x18c   : > { %v1596_v37 = vadd.f32 %v1595_v9, %v1482_v8  ;;  %2294 = vmatpush.msra.mxu2 %v2093_v6 }
 0x18d   : > { %v1819_v38 = vadd.f32 %v1818_v60, %v1706_v29  ;;  %v2156_v29 = vld [vmem:[#allocation8 + $0x360] sm:$0xff] }
 0x18e   : > { %1529 = vmatmul.f32.gmra.mxu0 %v5233_v28  ;;  %1642 = vmatmul.f32.gmra.mxu1 %v5234_v62  ;;  %v2088_v62 = vld [vmem:[#allocation8 + $0x140] sm:$0xff] }
 0x18f   : > { %v1926_v45 = vadd.f32 %v1894_v63, %v1819_v38  ;;  %1755 = vmatmul.f32.gmra.mxu2 %v5235_v56  ;;  %1868 = vmatmul.f32.gmra.mxu3 %v5236_v1  ;;  %v1900_v1 = vld [vmem:[#allocation2 + $0x80] sm:$0xff] }
 0x190   : > { %2274 = vmatpush.msra.mxu1 %v2156_v29  ;;  %v1992_v29 = vld [vmem:[#allocation2 + $0x40] sm:$0xff] }
 0x191   : > { %1959 = vst.msk [vmem:[#allocation2 + $0x50] sm:$0xff] %vm557_vm0, %v1926_v45 }
 0x192   : > { %v1708_v17 = vpop.f32.mrf.mxu2  ;;  %v1821_v44 = vpop.f32.mrf.mxu3  ;;  %2275 = vmatpush.msra.mxu1 %v2152_v50 }
 0x193   : > { %v1709_v42 = vadd.f32 %v1708_v17, %v1596_v37  ;;  %v1485_v0 = vpop.f32.mrf.mxu0  ;;  %v1598_v15 = vpop.f32.mrf.mxu1 }
 0x194   : > { %v1599_v46 = vadd.f32 %v1598_v15, %v1485_v0 }
 0x195   : > { %v1822_v30 = vadd.f32 %v1821_v44, %v1709_v42 }
 0x196   : > { %1532 = vmatmul.f32.gmra.mxu0 %v1288_v20  ;;  %1645 = vmatmul.f32.gmra.mxu1 %v1289_v14 }
 0x197   : > { %v1927_v3 = vadd.f32 %v1895_v22, %v1822_v30  ;;  %1758 = vmatmul.f32.gmra.mxu2 %v1290_v53  ;;  %1871 = vmatmul.f32.gmra.mxu3 %v5237_v32  ;;  %v2085_v30 = vld [vmem:[#allocation8 + $0x128] sm:$0xff] }
 0x199   : > { %1960 = vst.msk [vmem:[#allocation2 + $0x58] sm:$0xff] %vm557_vm0, %v1927_v3 }
 0x19a   : > { %v1711_v58 = vpop.f32.mrf.mxu2  ;;  %v1824_v20 = vpop.f32.mrf.mxu3 }
 0x19b   : > { %v1712_v16 = vadd.f32 %v1711_v58, %v1599_v46  ;;  %v1488_v14 = vpop.f32.mrf.mxu0  ;;  %v1601_v10 = vpop.f32.mrf.mxu1 }
 0x19c   : > { %v1602_v41 = vadd.f32 %v1601_v10, %v1488_v14 }
 0x19d   : > { %v1825_v11 = vadd.f32 %v1824_v20, %v1712_v16 }
 0x19e   : > { %1535 = vmatmul.f32.gmra.mxu0 %v1292_v25  ;;  %1648 = vmatmul.f32.gmra.mxu1 %v5238_v51 }
 0x19f   : > { %v1928_v53 = vadd.f32 %v1896_v21, %v1825_v11  ;;  %1761 = vmatmul.f32.gmra.mxu2 %v1294_v34  ;;  %1874 = vmatmul.f32.gmra.mxu3 %v1295_v55  ;;  %v2157_v34 = vld [vmem:[#allocation8 + $0x368] sm:$0xff]  ;;  %v2092_v55 = vld [vmem:[#allocation8 + $0x160] sm:$0xff] }
 0x1a0   : > { %2314 = vmatpush.msra.mxu3 %v2157_v34  ;;  %2254 = vmatpush.msra.mxu0 %v2092_v55  ;;  %v1995_v10 = vld [vmem:[#allocation2 + $0x58] sm:$0xff] }
 0x1a1   : > { %1961 = vst.msk [vmem:[#allocation2 + $0x60] sm:$0xff] %vm557_vm0, %v1928_v53  ;;  %v1994_v53 = vld [vmem:[#allocation2 + $0x50] sm:$0xff]  ;;  %v2027_v6 = vmul.f32 0.001953125, %v1995_v10 }
 0x1a2   : > { %v1714_v59 = vpop.f32.mrf.mxu2  ;;  %v1827_v52 = vpop.f32.mrf.mxu3  ;;  %2255 = vmatpush.msra.mxu0 %v2088_v62  ;;  %v1987_v62 = vld [vmem:[#allocation2 + $0x18] sm:$0xff] }
 0x1a3   : > { %v1715_v12 = vadd.f32 %v1714_v59, %v1602_v41  ;;  %v1491_v25 = vpop.f32.mrf.mxu0  ;;  %v1604_v33 = vpop.f32.mrf.mxu1  ;;  %v2149_v59 = vld [vmem:[#allocation8 + $0x328] sm:$0xff] }
 0x1a4   : > { %v1605_v23 = vadd.f32 %v1604_v33, %v1491_v25  ;;  %v1993_v25 = vld [vmem:[#allocation2 + $0x48] sm:$0xff] }
 0x1a5   : > { %v1828_v18 = vadd.f32 %v1827_v52, %v1715_v12  ;;  %v2084_v12 = vld [vmem:[#allocation8 + $0x120] sm:$0xff] }
 0x1a6   : > { %1538 = vmatmul.f32.gmra.mxu0 %v1296_v47  ;;  %1651 = vmatmul.f32.gmra.mxu1 %v1297_v48  ;;  %v2148_v52 = vld [vmem:[#allocation8 + $0x320] sm:$0xff] }
 0x1a7   : > { %v1929_v39 = vadd.f32 %v1897_v19, %v1828_v18  ;;  %1764 = vmatmul.f32.gmra.mxu2 %v1298_v61  ;;  %1877 = vmatmul.f32.gmra.mxu3 %v1299_v36  ;;  %v2089_v36 = vld [vmem:[#allocation8 + $0x148] sm:$0xff] }
 0x1a8   : > { %2295 = vmatpush.msra.mxu2 %v2089_v36  ;;  %v1996_v20 = vld [vmem:[#allocation2 + $0x60] sm:$0xff]  ;;  %2276 = vmatpush.msra.mxu1 %v2148_v52 }
 0x1a9   : > { %1962 = vst.msk [vmem:[#allocation2 + $0x68] sm:$0xff] %vm557_vm0, %v1929_v39  ;;  %v2028_v51 = vmul.f32 0.001953125, %v1996_v20  ;;  %v2026_v39 = vmul.f32 0.001953125, %v1994_v53  ;;  %v2077_v20 = vld [vmem:[#allocation8 + $0xe8] sm:$0xff]  ;;  %v2076_v52 = vld [vmem:[#allocation8 + $0xe0] sm:$0xff] }
 0x1aa   : > { %v1717_v60 = vpop.f32.mrf.mxu2  ;;  %v1830_v47 = vpop.f32.mrf.mxu3  ;;  %2296 = vmatpush.msra.mxu2 %v2085_v30  ;;  %v1904_v30 = vld [vmem:[#allocation2 + $0xa0] sm:$0xff] }
 0x1ab   : > { %v1718_v13 = vadd.f32 %v1717_v60, %v1605_v23  ;;  %v1494_v48 = vpop.f32.mrf.mxu0  ;;  %v1607_v63 = vpop.f32.mrf.mxu1  ;;  %v1902_v23 = vld [vmem:[#allocation2 + $0x90] sm:$0xff] }
 0x1ac   : > { %v1608_v2 = vadd.f32 %v1607_v63, %v1494_v48  ;;  %v2024_v48 = vmul.f32 0.001953125, %v1992_v29  ;;  %v1990_v63 = vld [vmem:[#allocation2 + $0x30] sm:$0xff] }
 0x1ad   : > { %v1831_v40 = vadd.f32 %v1830_v47, %v1718_v13  ;;  %v2025_v13 = vmul.f32 0.001953125, %v1993_v25  ;;  %v1991_v47 = vld [vmem:[#allocation2 + $0x38] sm:$0xff] }
 0x1ae   : > { %1541 = vmatmul.f32.gmra.mxu0 %v1300_v4  ;;  %1654 = vmatmul.f32.gmra.mxu1 %v1301_v24 }
 0x1af   : > { %v1930_v61 = vadd.f32 %v1898_v35, %v1831_v40  ;;  %1767 = vmatmul.f32.gmra.mxu2 %v1302_v7  ;;  %1880 = vmatmul.f32.gmra.mxu3 %v1303_v57  ;;  %v2153_v7 = vld [vmem:[#allocation8 + $0x348] sm:$0xff] }
 0x1b0   : > { %2315 = vmatpush.msra.mxu3 %v2153_v7  ;;  %v1997_v32 = vld [vmem:[#allocation2 + $0x68] sm:$0xff] }
 0x1b1   : > { %1963 = vst.msk [vmem:[#allocation2 + $0x70] sm:$0xff] %vm557_vm0, %v1930_v61  ;;  %v2029_v14 = vmul.f32 0.001953125, %v1997_v32  ;;  %v2023_v61 = vmul.f32 0.001953125, %v1991_v47 }
 0x1b2   : > { %v1720_v8 = vpop.f32.mrf.mxu2  ;;  %v1833_v38 = vpop.f32.mrf.mxu3  ;;  %2316 = vmatpush.msra.mxu3 %v2149_v59 }
 0x1b3   : > { %v1721_v9 = vadd.f32 %v1720_v8, %v1608_v2  ;;  %v1497_v4 = vpop.f32.mrf.mxu0  ;;  %v1610_v28 = vpop.f32.mrf.mxu1  ;;  %v2081_v2 = vld [vmem:[#allocation8 + $0x108] sm:$0xff] }
 0x1b4   : > { %v1611_v49 = vadd.f32 %v1610_v28, %v1497_v4  ;;  %v1989_v8 = vld [vmem:[#allocation2 + $0x28] sm:$0xff]  ;;  %v1903_v4 = vld [vmem:[#allocation2 + $0x98] sm:$0xff] }
 0x1b5   : > { %v1834_v5 = vadd.f32 %v1833_v38, %v1721_v9  ;;  %v2021_v7 = vmul.f32 0.001953125, %v1989_v8 }
 0x1b7   : > { %v1931_v24 = vadd.f32 %v1899_v26, %v1834_v5  ;;  %v2022_v26 = vmul.f32 0.001953125, %v1990_v63  ;;  %v1907_v63 = vld [vmem:[#allocation2 + $0xb8] sm:$0xff] }
 0x1b8   : > { %v1998_v22 = vld [vmem:[#allocation2 + $0x70] sm:$0xff] }
 0x1b9   : > { %1964 = vst.msk [vmem:[#allocation2 + $0x78] sm:$0xff] %vm557_vm0, %v1931_v24  ;;  %v2030_v27 = vmul.f32 0.001953125, %v1998_v22  ;;  %v1988_v24 = vld [vmem:[#allocation2 + $0x20] sm:$0xff] }
 0x1ba   : > { %v1723_v57 = vpop.f32.mrf.mxu2  ;;  %v1836_v56 = vpop.f32.mrf.mxu3 }
 0x1bb   : > { %v1724_v45 = vadd.f32 %v1723_v57, %v1611_v49  ;;  %v1500_v37 = vpop.f32.mrf.mxu0  ;;  %v1613_v54 = vpop.f32.mrf.mxu1  ;;  %v2020_v57 = vmul.f32 0.001953125, %v1988_v24  ;;  %v1908_v24 = vld [vmem:[#allocation2 + $0xc0] sm:$0xff] }
 0x1bc   : > { %v1614_v0 = vadd.f32 %v1613_v54, %v1500_v37  ;;  %v2145_v37 = vld [vmem:[#allocation8 + $0x308] sm:$0xff]  ;;  %v2080_v54 = vld [vmem:[#allocation8 + $0x100] sm:$0xff] }
 0x1bd   : > { %v1837_v17 = vadd.f32 %v1836_v56, %v1724_v45  ;;  %v1986_v45 = vld [vmem:[#allocation2 + $0x10] sm:$0xff]  ;;  %2317 = vmatpush.msra.mxu3 %v2145_v37 }
 0x1bf   : > { %v1932_v42 = vadd.f32 %v1900_v1, %v1837_v17  ;;  %v2019_v1 = vmul.f32 0.001953125, %v1987_v62  ;;  %v2144_v17 = vld [vmem:[#allocation8 + $0x300] sm:$0xff] }
 0x1c0   : > { %v1999_v44 = vld [vmem:[#allocation2 + $0x78] sm:$0xff]  ;;  %2277 = vmatpush.msra.mxu1 %v2144_v17 }
 0x1c1   : > { %1965 = vst.msk [vmem:[#allocation2 + $0x80] sm:$0xff] %vm557_vm0, %v1932_v42  ;;  %v2031_v15 = vmul.f32 0.001953125, %v1999_v44  ;;  %v1985_v44 = vld [vmem:[#allocation2 + $0x8] sm:$0xff] }
 0x1c2   : > { %v1726_v3 = vpop.f32.mrf.mxu2  ;;  %v1839_v43 = vpop.f32.mrf.mxu3 }
 0x1c3   : > { %v1727_v46 = vadd.f32 %v1726_v3, %v1614_v0  ;;  %2991 = vmatpush.lsf.msrb.mxu0 %v2031_v15  ;;  %3041 = vmatpush.lsf.msrb.mxu2 %v2031_v15  ;;  %v1503_v58 = vpop.f32.mrf.mxu0  ;;  %v1616_v16 = vpop.f32.mrf.mxu1  ;;  %v2018_v15 = vmul.f32 0.001953125, %v1986_v45  ;;  %v2069_v45 = vld [vmem:[#allocation8 + $0xa8] sm:$0xff] }
 0x1c4   : > { %v1617_v41 = vadd.f32 %v1616_v16, %v1503_v58 }
 0x1c5   : > { %v1840_v21 = vadd.f32 %v1839_v43, %v1727_v46  ;;  %2992 = vmatpush.lsf.msrb.mxu0 %v2030_v27  ;;  %3042 = vmatpush.lsf.msrb.mxu2 %v2030_v27  ;;  %v1984_v46 = vld [vmem:[#allocation2] sm:$0xff]  ;;  %v2017_v27 = vmul.f32 0.001953125, %v1985_v44 }
 0x1c6   : > { %v2016_v58 = vmul.f32 0.001953125, %v1984_v46 }
 0x1c7   : > { %v1933_v11 = vadd.f32 %v1901_v31, %v1840_v21  ;;  %2993 = vmatpush.lsf.msrb.mxu0 %v2029_v14  ;;  %3043 = vmatpush.lsf.msrb.mxu2 %v2029_v14 }
 0x1c9   : > { %1966 = vst.msk [vmem:[#allocation2 + $0x88] sm:$0xff] %vm557_vm0, %v1933_v11  ;;  %2994 = vmatpush.lsf.msrb.mxu0 %v2028_v51  ;;  %3044 = vmatpush.lsf.msrb.mxu2 %v2028_v51  ;;  %v1905_v11 = vld [vmem:[#allocation2 + $0xa8] sm:$0xff] }
 0x1ca   : > { %v1729_v19 = vpop.f32.mrf.mxu2  ;;  %v1842_v18 = vpop.f32.mrf.mxu3 }
 0x1cb   : > { %2256 = vmatpush.msra.mxu0 %v2084_v12  ;;  %v1730_v33 = vadd.f32 %v1729_v19, %v1617_v41  ;;  %3045 = vmatpush.lsf.msrb.mxu2 %v2027_v6  ;;  %v1506_v34 = vpop.f32.mrf.mxu0  ;;  %v1619_v55 = vpop.f32.mrf.mxu1  ;;  %v2141_v12 = vld [vmem:[#allocation8 + $0x2e8] sm:$0xff]  ;;  %v2140_v19 = vld [vmem:[#allocation8 + $0x2e0] sm:$0xff] }
 0x1cc   : > { %v1620_v40 = vadd.f32 %v1619_v55, %v1506_v34  ;;  %2318 = vmatpush.msra.mxu3 %v2141_v12  ;;  %2278 = vmatpush.msra.mxu1 %v2140_v19  ;;  %v2129_v19 = vld [vmem:[#allocation8 + $0x288] sm:$0xff] }
 0x1cd   : > { %2995 = vmatpush.lsf.msrb.mxu0 %v2027_v6  ;;  %v1843_v60 = vadd.f32 %v1842_v18, %v1730_v33  ;;  %3046 = vmatpush.lsf.msrb.mxu2 %v2026_v39 }
 0x1cf   : > { %2996 = vmatpush.lsf.msrb.mxu0 %v2026_v39  ;;  %v1934_v35 = vadd.f32 %v1902_v23, %v1843_v60  ;;  %3047 = vmatpush.lsf.msrb.mxu2 %v2025_v13  ;;  %v1906_v39 = vld [vmem:[#allocation2 + $0xb0] sm:$0xff] }
 0x1d1   : > { %2997 = vmatpush.lsf.msrb.mxu0 %v2025_v13  ;;  %1967 = vst.msk [vmem:[#allocation2 + $0x90] sm:$0xff] %vm557_vm0, %v1934_v35  ;;  %3048 = vmatpush.lsf.msrb.mxu2 %v2024_v48  ;;  %v2073_v13 = vld [vmem:[#allocation8 + $0xc8] sm:$0xff] }
 0x1d2   : > { %v1732_v36 = vpop.f32.mrf.mxu2  ;;  %v1845_v38 = vpop.f32.mrf.mxu3 }
 0x1d3   : > { %2998 = vmatpush.lsf.msrb.mxu0 %v2024_v48  ;;  %2297 = vmatpush.msra.mxu2 %v2081_v2  ;;  %v1733_v9 = vadd.f32 %v1732_v36, %v1620_v40  ;;  %v1509_v28 = vpop.f32.mrf.mxu0  ;;  %v1622_v5 = vpop.f32.mrf.mxu1 }
 0x1d4   : > { %v1623_v56 = vadd.f32 %v1622_v5, %v1509_v28 }
 0x1d5   : > { %2999 = vmatpush.lsf.msrb.mxu0 %v2023_v61  ;;  %3049 = vmatpush.lsf.msrb.mxu2 %v2023_v61  ;;  %v1846_v49 = vadd.f32 %v1845_v38, %v1733_v9  ;;  %v2137_v9 = vld [vmem:[#allocation8 + $0x2c8] sm:$0xff]  ;;  %v2072_v38 = vld [vmem:[#allocation8 + $0xc0] sm:$0xff] }
 0x1d6   : > { %2319 = vmatpush.msra.mxu3 %v2137_v9 }
 0x1d7   : > { %3000 = vmatpush.lsf.msrb.mxu0 %v2022_v26  ;;  %3050 = vmatpush.lsf.msrb.mxu2 %v2022_v26  ;;  %v1935_v50 = vadd.f32 %v1903_v4, %v1846_v49  ;;  %v2136_v26 = vld [vmem:[#allocation8 + $0x2c0] sm:$0xff] }
 0x1d8   : > { %2279 = vmatpush.msra.mxu1 %v2136_v26  ;;  %v2124_v26 = vld [vmem:[#allocation8 + $0x260] sm:$0xff] }
 0x1d9   : > { %3001 = vmatpush.lsf.msrb.mxu0 %v2021_v7  ;;  %3051 = vmatpush.lsf.msrb.mxu2 %v2021_v7  ;;  %1968 = vst.msk [vmem:[#allocation2 + $0x98] sm:$0xff] %vm557_vm0, %v1935_v50 }
 0x1da   : > { %v1735_v42 = vpop.f32.mrf.mxu2  ;;  %v1848_v0 = vpop.f32.mrf.mxu3 }
 0x1db   : > { %3002 = vmatpush.lsf.msrb.mxu0 %v2020_v57  ;;  %3052 = vmatpush.lsf.msrb.mxu2 %v2020_v57  ;;  %v1736_v22 = vadd.f32 %v1735_v42, %v1623_v56  ;;  %v1512_v3 = vpop.f32.mrf.mxu0  ;;  %v1625_v32 = vpop.f32.mrf.mxu1 }
 0x1dc   : > { %v1626_v16 = vadd.f32 %v1625_v32, %v1512_v3  ;;  %v2132_v3 = vld [vmem:[#allocation8 + $0x2a0] sm:$0xff] }
 0x1dd   : > { %2257 = vmatpush.msra.mxu0 %v2080_v54  ;;  %3053 = vmatpush.lsf.msrb.mxu2 %v2019_v1  ;;  %v1849_v43 = vadd.f32 %v1848_v0, %v1736_v22  ;;  %v1909_v54 = vld [vmem:[#allocation2 + $0xc8] sm:$0xff] }
 0x1de   : > { %2280 = vmatpush.msra.mxu1 %v2132_v3 }
 0x1df   : > { %3003 = vmatpush.lsf.msrb.mxu0 %v2019_v1  ;;  %3054 = vmatpush.lsf.msrb.mxu2 %v2018_v15  ;;  %v1936_v31 = vadd.f32 %v1904_v30, %v1849_v43  ;;  %v2068_v30 = vld [vmem:[#allocation8 + $0xa0] sm:$0xff] }
 0x1e1   : > { %3004 = vmatpush.lsf.msrb.mxu0 %v2018_v15  ;;  %3055 = vmatpush.lsf.msrb.mxu2 %v2017_v27  ;;  %1969 = vst.msk [vmem:[#allocation2 + $0xa0] sm:$0xff] %vm557_vm0, %v1936_v31  ;;  %v2133_v15 = vld [vmem:[#allocation8 + $0x2a8] sm:$0xff] }
 0x1e2   : > { %v1738_v21 = vpop.f32.mrf.mxu2  ;;  %v1851_v10 = vpop.f32.mrf.mxu3  ;;  %2320 = vmatpush.msra.mxu3 %v2133_v15  ;;  %v2120_v15 = vld [vmem:[#allocation8 + $0x240] sm:$0xff] }
 0x1e3   : > { %3005 = vmatpush.lsf.msrb.mxu0 %v2017_v27  ;;  %3056 = vmatpush.lsf.msrb.mxu2 %v2016_v58  ;;  %v1739_v14 = vadd.f32 %v1738_v21, %v1626_v16  ;;  %v1515_v51 = vpop.f32.mrf.mxu0  ;;  %v1628_v53 = vpop.f32.mrf.mxu1  ;;  %v1910_v27 = vld [vmem:[#allocation2 + $0xd0] sm:$0xff] }
 0x1e4   : > { %3057 = vllmr.1.mxu2  ;;  %v1629_v59 = vadd.f32 %v1628_v53, %v1515_v51  ;;  %v1911_v53 = vld [vmem:[#allocation2 + $0xd8] sm:$0xff]  ;;  %2321 = vmatpush.msra.mxu3 %v2129_v19 }
 0x1e5   : > { %3006 = vmatpush.lsf.msrb.mxu0 %v2016_v58  ;;  %2298 = vmatpush.msra.mxu2 %v2077_v20  ;;  %v1852_v41 = vadd.f32 %v1851_v10, %v1739_v14  ;;  %v2065_v14 = vld [vmem:[#allocation8 + $0x88] sm:$0xff] }
 0x1e6   : > { %3007 = vllmr.1.mxu0 }
 0x1e7   : > { %v1937_v6 = vadd.f32 %v1905_v11, %v1852_v41  ;;  %2258 = vmatpush.msra.mxu0 %v2076_v52  ;;  %2299 = vmatpush.msra.mxu2 %v2073_v13 }
 0x1e9   : > { %1970 = vst.msk [vmem:[#allocation2 + $0xa8] sm:$0xff] %vm557_vm0, %v1937_v6  ;;  %2259 = vmatpush.msra.mxu0 %v2072_v38  ;;  %2300 = vmatpush.msra.mxu2 %v2069_v45 }
 0x1ea   : > { %v1741_v25 = vpop.f32.mrf.mxu2  ;;  %v1854_v18 = vpop.f32.mrf.mxu3 }
 0x1eb   : > { %v1742_v33 = vadd.f32 %v1741_v25, %v1629_v59  ;;  %v1518_v23 = vpop.f32.mrf.mxu0  ;;  %v1631_v34 = vpop.f32.mrf.mxu1  ;;  %2260 = vmatpush.msra.mxu0 %v2068_v30  ;;  %2301 = vmatpush.msra.mxu2 %v2065_v14  ;;  %v2064_v25 = vld [vmem:[#allocation8 + $0x80] sm:$0xff] }
 0x1ec   : > { %v1632_v60 = vadd.f32 %v1631_v34, %v1518_v23 }
 0x1ed   : > { %v1855_v55 = vadd.f32 %v1854_v18, %v1742_v33  ;;  %v2128_v33 = vld [vmem:[#allocation8 + $0x280] sm:$0xff]  ;;  %2261 = vmatpush.msra.mxu0 %v2064_v25 }
 0x1ee   : > { %2281 = vmatpush.msra.mxu1 %v2128_v33  ;;  %v2111_v33 = vld [vmem:[#allocation8 + $0x1f8] sm:$0xff] }
 0x1ef   : > { %v1938_v29 = vadd.f32 %v1906_v39, %v1855_v55  ;;  %v2061_v39 = vld [vmem:[#allocation8 + $0x68] sm:$0xff]  ;;  %v1912_v55 = vld [vmem:[#allocation2 + $0xe0] sm:$0xff] }
 0x1f0   : > { %2302 = vmatpush.msra.mxu2 %v2061_v39  ;;  %2282 = vmatpush.msra.mxu1 %v2124_v26  ;;  %v2106_v26 = vld [vmem:[#allocation8 + $0x1d0] sm:$0xff] }
 0x1f1   : > { %1971 = vst.msk [vmem:[#allocation2 + $0xb0] sm:$0xff] %vm557_vm0, %v1938_v29 }
 0x1f2   : > { %v1744_v47 = vpop.f32.mrf.mxu2  ;;  %v1857_v48 = vpop.f32.mrf.mxu3  ;;  %2283 = vmatpush.msra.mxu1 %v2120_v15  ;;  %v2066_v15 = vld [vmem:[#allocation8 + $0x90] sm:$0xff] }
 0x1f3   : > { %v1745_v35 = vadd.f32 %v1744_v47, %v1632_v60  ;;  %v1521_v40 = vpop.f32.mrf.mxu0  ;;  %v1634_v61 = vpop.f32.mrf.mxu1 }
 0x1f4   : > { %v1635_v8 = vadd.f32 %v1634_v61, %v1521_v40  ;;  %v2125_v61 = vld [vmem:[#allocation8 + $0x268] sm:$0xff] }
 0x1f5   : > { %v1858_v2 = vadd.f32 %v1857_v48, %v1745_v35  ;;  %2322 = vmatpush.msra.mxu3 %v2125_v61 }
 0x1f7   : > { %v1939_v36 = vadd.f32 %v1907_v63, %v1858_v2  ;;  %v2060_v2 = vld [vmem:[#allocation8 + $0x60] sm:$0xff] }
 0x1f8   : > { %2262 = vmatpush.msra.mxu0 %v2060_v2  ;;  %v2001_v2 = vld [vmem:[#allocation2 + $0x88] sm:$0xff] }
 0x1f9   : > { %1972 = vst.msk [vmem:[#allocation2 + $0xb8] sm:$0xff] %vm557_vm0, %v1939_v36  ;;  %v1913_v36 = vld [vmem:[#allocation2 + $0xe8] sm:$0xff] }
 0x1fa   : > { %v1747_v4 = vpop.f32.mrf.mxu2  ;;  %v1860_v5 = vpop.f32.mrf.mxu3 }
 0x1fb   : > { %v1748_v28 = vadd.f32 %v1747_v4, %v1635_v8  ;;  %v1524_v49 = vpop.f32.mrf.mxu0  ;;  %v1637_v7 = vpop.f32.mrf.mxu1 }
 0x1fc   : > { %v1638_v57 = vadd.f32 %v1637_v7, %v1524_v49  ;;  %v1914_v7 = vld [vmem:[#allocation2 + $0xf0] sm:$0xff] }
 0x1fd   : > { %v1861_v62 = vadd.f32 %v1860_v5, %v1748_v28 }
 0x1ff   : > { %v1940_v50 = vadd.f32 %v1908_v24, %v1861_v62 }
 0x201   : > { %1973 = vst.msk [vmem:[#allocation2 + $0xc0] sm:$0xff] %vm557_vm0, %v1940_v50 }
 0x202   : > { %v1750_v56 = vpop.f32.mrf.mxu2  ;;  %v1863_v37 = vpop.f32.mrf.mxu3 }
 0x203   : > { %v1751_v1 = vadd.f32 %v1750_v56, %v1638_v57  ;;  %v1527_v17 = vpop.f32.mrf.mxu0  ;;  %v1640_v42 = vpop.f32.mrf.mxu1 }
 0x204   : > { %v1641_v0 = vadd.f32 %v1640_v42, %v1527_v17  ;;  %v2121_v17 = vld [vmem:[#allocation8 + $0x248] sm:$0xff]  ;;  %v2056_v42 = vld [vmem:[#allocation8 + $0x40] sm:$0xff] }
 0x205   : > { %v1864_v44 = vadd.f32 %v1863_v37, %v1751_v1  ;;  %v2057_v1 = vld [vmem:[#allocation8 + $0x48] sm:$0xff]  ;;  %2323 = vmatpush.msra.mxu3 %v2121_v17  ;;  %2263 = vmatpush.msra.mxu0 %v2056_v42  ;;  %v2079_v17 = vld [vmem:[#allocation8 + $0xf8] sm:$0xff]  ;;  %v2074_v42 = vld [vmem:[#allocation8 + $0xd0] sm:$0xff] }
 0x206   : > { %2303 = vmatpush.msra.mxu2 %v2057_v1  ;;  %v2082_v1 = vld [vmem:[#allocation8 + $0x110] sm:$0xff] }
 0x207   : > { %v1941_v22 = vadd.f32 %v1909_v54, %v1864_v44 }
 0x209   : > { %1974 = vst.msk [vmem:[#allocation2 + $0xc8] sm:$0xff] %vm557_vm0, %v1941_v22  ;;  %v1915_v22 = vld [vmem:[#allocation2 + $0xf8] sm:$0xff] }
 0x20a   : > { %v1753_v32 = vpop.f32.mrf.mxu2  ;;  %v1866_v43 = vpop.f32.mrf.mxu3 }
 0x20b   : > { %v1754_v46 = vadd.f32 %v1753_v32, %v1641_v0  ;;  %v1530_v31 = vpop.f32.mrf.mxu0  ;;  %v1643_v58 = vpop.f32.mrf.mxu1 }
 0x20c   : > { %v1644_v21 = vadd.f32 %v1643_v58, %v1530_v31  ;;  %v2117_v31 = vld [vmem:[#allocation8 + $0x228] sm:$0xff]  ;;  %v2052_v58 = vld [vmem:[#allocation8 + $0x20] sm:$0xff] }
 0x20d   : > { %v1867_v16 = vadd.f32 %v1866_v43, %v1754_v46  ;;  %v2053_v43 = vld [vmem:[#allocation8 + $0x28] sm:$0xff]  ;;  %2264 = vmatpush.msra.mxu0 %v2052_v58  ;;  %v2050_v58 = vld [vmem:[#allocation8 + $0x10] sm:$0xff] }
 0x20e   : > { %2304 = vmatpush.msra.mxu2 %v2053_v43  ;;  %v2059_v43 = vld [vmem:[#allocation8 + $0x58] sm:$0xff] }
 0x20f   : > { %v1942_v20 = vadd.f32 %v1910_v27, %v1867_v16 }
 0x210   : > { %v2009_v19 = vld [vmem:[#allocation2 + $0xc8] sm:$0xff] }
 0x211   : > { %1975 = vst.msk [vmem:[#allocation2 + $0xd0] sm:$0xff] %vm557_vm0, %v1942_v20  ;;  %v2116_v20 = vld [vmem:[#allocation8 + $0x220] sm:$0xff]  ;;  %v2041_v39 = vmul.f32 0.001953125, %v2009_v19  ;;  %v2158_v19 = vld [vmem:[#allocation8 + $0x370] sm:$0xff] }
 0x212   : > { %v1756_v10 = vpop.f32.mrf.mxu2  ;;  %v1869_v51 = vpop.f32.mrf.mxu3 }
 0x213   : > { %v1757_v11 = vadd.f32 %v1756_v10, %v1644_v21  ;;  %v1533_v41 = vpop.f32.mrf.mxu0  ;;  %v1646_v6 = vpop.f32.mrf.mxu1  ;;  %v2049_v21 = vld [vmem:[#allocation8 + $0x8] sm:$0xff] }
 0x214   : > { %v1647_v52 = vadd.f32 %v1646_v6, %v1533_v41  ;;  %2305 = vmatpush.msra.mxu2 %v2049_v21  ;;  %v2112_v6 = vld [vmem:[#allocation8 + $0x200] sm:$0xff]  ;;  %v2175_v21 = vld [vmem:[#allocation8 + $0x3f8] sm:$0xff] }
 0x215   : > { %v1870_v59 = vadd.f32 %v1869_v51, %v1757_v11  ;;  %v2113_v11 = vld [vmem:[#allocation8 + $0x208] sm:$0xff]  ;;  %v2048_v51 = vld [vmem:[#allocation8] sm:$0xff]  ;;  %3058 = vmatmul.lmr.bf16.vlgmr.msra.gmra.1.mxu2 }
 0x216   : > { %2265 = vmatpush.msra.mxu0 %v2048_v51  ;;  %2370 = vmatpush.msra.mxu2 %v2111_v33  ;;  %v2442_v51 = vld [vmem:[#allocation9 + $0xe0] sm:$0xff]  ;;  %v2436_v33 = vld [vmem:[#allocation9 + $0xb0] sm:$0xff] }
 0x217   : > { %v1943_v12 = vadd.f32 %v1911_v53, %v1870_v59  ;;  %3008 = vmatmul.lmr.bf16.vlgmr.msra.gmra.1.mxu0 }
 0x218   : > { %v2010_v59 = vld [vmem:[#allocation2 + $0xd0] sm:$0xff] }
 0x219   : > { %1976 = vst.msk [vmem:[#allocation2 + $0xd8] sm:$0xff] %vm557_vm0, %v1943_v12  ;;  %v2042_v25 = vmul.f32 0.001953125, %v2010_v59  ;;  %v2162_v59 = vld [vmem:[#allocation8 + $0x390] sm:$0xff] }
 0x21a   : > { %v1759_v18 = vpop.f32.mrf.mxu2  ;;  %v1872_v34 = vpop.f32.mrf.mxu3 }
 0x21b   : > { %v1760_v23 = vadd.f32 %v1759_v18, %v1647_v52  ;;  %v1536_v29 = vpop.f32.mrf.mxu0  ;;  %v1649_v60 = vpop.f32.mrf.mxu1  ;;  %v2110_v52 = vld [vmem:[#allocation8 + $0x1f0] sm:$0xff]  ;;  %v2008_v18 = vld [vmem:[#allocation2 + $0xc0] sm:$0xff] }
 0x21c   : > { %v1650_v35 = vadd.f32 %v1649_v60, %v1536_v29  ;;  %2330 = vmatpush.msra.mxu0 %v2110_v52  ;;  %v2005_v60 = vld [vmem:[#allocation2 + $0xa8] sm:$0xff]  ;;  %v2438_v52 = vld [vmem:[#allocation9 + $0xc0] sm:$0xff] }
 0x21d   : > { %v1873_v13 = vadd.f32 %v1872_v34, %v1760_v23  ;;  %v2007_v23 = vld [vmem:[#allocation2 + $0xb8] sm:$0xff]  ;;  %v2040_v34 = vmul.f32 0.001953125, %v2008_v18  ;;  %v2154_v18 = vld [vmem:[#allocation8 + $0x350] sm:$0xff] }
 0x21e   : > { %v2039_v29 = vmul.f32 0.001953125, %v2007_v23  ;;  %2331 = vmatpush.msra.mxu0 %v2106_v26  ;;  %v2434_v23 = vld [vmem:[#allocation9 + $0xa0] sm:$0xff]  ;;  %v2131_v26 = vld [vmem:[#allocation8 + $0x298] sm:$0xff] }
 0x21f   : > { %v1944_v47 = vadd.f32 %v1912_v55, %v1873_v13  ;;  %v2006_v55 = vld [vmem:[#allocation2 + $0xb0] sm:$0xff] }
 0x220   : > { %v2011_v53 = vld [vmem:[#allocation2 + $0xd8] sm:$0xff]  ;;  %v2038_v13 = vmul.f32 0.001953125, %v2006_v55 }
 0x221   : > { %1977 = vst.msk [vmem:[#allocation2 + $0xe0] sm:$0xff] %vm557_vm0, %v1944_v47  ;;  %v2043_v12 = vmul.f32 0.001953125, %v2011_v53  ;;  %v2004_v47 = vld [vmem:[#allocation2 + $0xa0] sm:$0xff]  ;;  %v2166_v53 = vld [vmem:[#allocation8 + $0x3b0] sm:$0xff]  ;;  %v2151_v55 = vld [vmem:[#allocation8 + $0x338] sm:$0xff] }
 0x222   : > { %v1762_v48 = vpop.f32.mrf.mxu2  ;;  %v1875_v40 = vpop.f32.mrf.mxu3 }
 0x223   : > { %v1763_v63 = vadd.f32 %v1762_v48, %v1650_v35  ;;  %v1539_v8 = vpop.f32.mrf.mxu0  ;;  %v1652_v9 = vpop.f32.mrf.mxu1  ;;  %v2037_v35 = vmul.f32 0.001953125, %v2005_v60  ;;  %v2003_v48 = vld [vmem:[#allocation2 + $0x98] sm:$0xff]  ;;  %v2146_v60 = vld [vmem:[#allocation8 + $0x310] sm:$0xff] }
 0x224   : > { %v1653_v28 = vadd.f32 %v1652_v9, %v1539_v8  ;;  %v2035_v61 = vmul.f32 0.001953125, %v2003_v48  ;;  %v2000_v8 = vld [vmem:[#allocation2 + $0x80] sm:$0xff]  ;;  %v2033_v9 = vmul.f32 0.001953125, %v2001_v2  ;;  %v2143_v48 = vld [vmem:[#allocation8 + $0x2f8] sm:$0xff] }
 0x225   : > { %v1876_v38 = vadd.f32 %v1875_v40, %v1763_v63  ;;  %v2036_v63 = vmul.f32 0.001953125, %v2004_v47  ;;  %v2002_v40 = vld [vmem:[#allocation2 + $0x90] sm:$0xff]  ;;  %v2430_v47 = vld [vmem:[#allocation9 + $0x80] sm:$0xff] }
 0x226   : > { %v2426_v2 = vld [vmem:[#allocation9 + $0x60] sm:$0xff] }
 0x227   : > { %v1945_v4 = vadd.f32 %v1913_v36, %v1876_v38  ;;  %v2034_v36 = vmul.f32 0.001953125, %v2002_v40  ;;  %v2032_v38 = vmul.f32 0.001953125, %v2000_v8  ;;  %v2138_v40 = vld [vmem:[#allocation8 + $0x2d0] sm:$0xff]  ;;  %v2135_v8 = vld [vmem:[#allocation8 + $0x2b8] sm:$0xff] }
 0x228   : > { %v2012_v14 = vld [vmem:[#allocation2 + $0xe0] sm:$0xff] }
 0x229   : > { %1978 = vst.msk [vmem:[#allocation2 + $0xe8] sm:$0xff] %vm557_vm0, %v1945_v4  ;;  %v2044_v41 = vmul.f32 0.001953125, %v2012_v14  ;;  %v2107_v4 = vld [vmem:[#allocation8 + $0x1d8] sm:$0xff]  ;;  %v2170_v14 = vld [vmem:[#allocation8 + $0x3d0] sm:$0xff] }
 0x22a   : > { %v1765_v5 = vpop.f32.mrf.mxu2  ;;  %v1878_v49 = vpop.f32.mrf.mxu3  ;;  %2371 = vmatpush.msra.mxu2 %v2107_v4  ;;  %v2422_v4 = vld [vmem:[#allocation9 + $0x40] sm:$0xff] }
 0x22b   : > { %v1766_v24 = vadd.f32 %v1765_v5, %v1653_v28  ;;  %v1542_v50 = vpop.f32.mrf.mxu0  ;;  %v1655_v57 = vpop.f32.mrf.mxu1  ;;  %v2102_v28 = vld [vmem:[#allocation8 + $0x1b0] sm:$0xff]  ;;  %v2103_v5 = vld [vmem:[#allocation8 + $0x1b8] sm:$0xff] }
 0x22c   : > { %v1656_v56 = vadd.f32 %v1655_v57, %v1542_v50  ;;  %2332 = vmatpush.msra.mxu0 %v2102_v28  ;;  %2372 = vmatpush.msra.mxu2 %v2103_v5  ;;  %v2090_v50 = vld [vmem:[#allocation8 + $0x150] sm:$0xff]  ;;  %v2091_v57 = vld [vmem:[#allocation8 + $0x158] sm:$0xff] }
 0x22d   : > { %v1879_v62 = vadd.f32 %v1878_v49, %v1766_v24  ;;  %v2098_v24 = vld [vmem:[#allocation8 + $0x190] sm:$0xff]  ;;  %v2099_v49 = vld [vmem:[#allocation8 + $0x198] sm:$0xff] }
 0x22e   : > { %2333 = vmatpush.msra.mxu0 %v2098_v24  ;;  %2373 = vmatpush.msra.mxu2 %v2099_v49  ;;  %v2126_v28 = vld [vmem:[#allocation8 + $0x270] sm:$0xff]  ;;  %v2127_v5 = vld [vmem:[#allocation8 + $0x278] sm:$0xff] }
 0x22f   : > { %v1946_v45 = vadd.f32 %v1914_v7, %v1879_v62  ;;  %v2094_v7 = vld [vmem:[#allocation8 + $0x170] sm:$0xff]  ;;  %v2095_v62 = vld [vmem:[#allocation8 + $0x178] sm:$0xff] }
 0x230   : > { %v2013_v27 = vld [vmem:[#allocation2 + $0xe8] sm:$0xff]  ;;  %2334 = vmatpush.msra.mxu0 %v2094_v7  ;;  %2374 = vmatpush.msra.mxu2 %v2095_v62  ;;  %v2420_v24 = vld [vmem:[#allocation9 + $0x30] sm:$0xff]  ;;  %v2123_v7 = vld [vmem:[#allocation8 + $0x258] sm:$0xff] }
 0x231   : > { %1979 = vst.msk [vmem:[#allocation2 + $0xf0] sm:$0xff] %vm557_vm0, %v1946_v45  ;;  %v2045_v10 = vmul.f32 0.001953125, %v2013_v27  ;;  %v2086_v45 = vld [vmem:[#allocation8 + $0x130] sm:$0xff] }
 0x232   : > { %v1768_v37 = vpop.f32.mrf.mxu2  ;;  %v1881_v44 = vpop.f32.mrf.mxu3  ;;  %2335 = vmatpush.msra.mxu0 %v2090_v50  ;;  %2375 = vmatpush.msra.mxu2 %v2091_v57  ;;  %v2054_v27 = vld [vmem:[#allocation8 + $0x30] sm:$0xff]  ;;  %v2119_v50 = vld [vmem:[#allocation8 + $0x238] sm:$0xff] }
 0x233   : > { %v1769_v54 = vadd.f32 %v1768_v37, %v1656_v56  ;;  %v2087_v56 = vld [vmem:[#allocation8 + $0x138] sm:$0xff]  ;;  %v2122_v49 = vld [vmem:[#allocation8 + $0x250] sm:$0xff] }
 0x234   : > { %2336 = vmatpush.msra.mxu0 %v2086_v45  ;;  %2376 = vmatpush.msra.mxu2 %v2087_v56  ;;  %v2083_v37 = vld [vmem:[#allocation8 + $0x118] sm:$0xff]  ;;  %v2118_v62 = vld [vmem:[#allocation8 + $0x230] sm:$0xff] }
 0x235   : > { %v1882_v0 = vadd.f32 %v1881_v44, %v1769_v54  ;;  %v2078_v54 = vld [vmem:[#allocation8 + $0xf0] sm:$0xff]  ;;  %v2075_v44 = vld [vmem:[#allocation8 + $0xd8] sm:$0xff] }
 0x236   : > { %2337 = vmatpush.msra.mxu0 %v2082_v1  ;;  %2377 = vmatpush.msra.mxu2 %v2083_v37  ;;  %v2114_v57 = vld [vmem:[#allocation8 + $0x210] sm:$0xff]  ;;  %v2115_v45 = vld [vmem:[#allocation8 + $0x218] sm:$0xff]  ;;  %v2474_v1 = vld [vmem:[#allocation9 + $0x1e0] sm:$0xff] }
 0x237   : > { %v1947_v30 = vadd.f32 %v1915_v22, %v1882_v0  ;;  %v2070_v22 = vld [vmem:[#allocation8 + $0xb0] sm:$0xff]  ;;  %v2071_v0 = vld [vmem:[#allocation8 + $0xb8] sm:$0xff] }
 0x238   : > { %v2014_v32 = vld [vmem:[#allocation2 + $0xf0] sm:$0xff]  ;;  %2338 = vmatpush.msra.mxu0 %v2078_v54  ;;  %2378 = vmatpush.msra.mxu2 %v2079_v17  ;;  %v2470_v54 = vld [vmem:[#allocation9 + $0x1c0] sm:$0xff] }
 0x239   : > { %1980 = vst.msk [vmem:[#allocation2 + $0xf8] sm:$0xff] %vm557_vm0, %v1947_v30  ;;  %v2046_v16 = vmul.f32 0.001953125, %v2014_v32  ;;  %v2067_v30 = vld [vmem:[#allocation8 + $0x98] sm:$0xff]  ;;  %v2476_v56 = vld [vmem:[#allocation9 + $0x1f0] sm:$0xff]  ;;  %v2418_v17 = vld [vmem:[#allocation9 + $0x20] sm:$0xff] }
 0x23a   : > { %2339 = vmatpush.msra.mxu0 %v2074_v42  ;;  %2379 = vmatpush.msra.mxu2 %v2075_v44  ;;  %v2063_v32 = vld [vmem:[#allocation8 + $0x78] sm:$0xff]  ;;  %v2472_v37 = vld [vmem:[#allocation9 + $0x1d0] sm:$0xff]  ;;  %v2466_v44 = vld [vmem:[#allocation9 + $0x1a0] sm:$0xff] }
 0x23b   : > { %v2468_v42 = vld [vmem:[#allocation9 + $0x1b0] sm:$0xff] }
 0x23c   : > { %2340 = vmatpush.msra.mxu0 %v2070_v22  ;;  %2380 = vmatpush.msra.mxu2 %v2071_v0  ;;  %v2464_v22 = vld [vmem:[#allocation9 + $0x190] sm:$0xff]  ;;  %v2462_v0 = vld [vmem:[#allocation9 + $0x180] sm:$0xff] }
 0x23e   : > { %2341 = vmatpush.msra.mxu0 %v2066_v15  ;;  %2381 = vmatpush.msra.mxu2 %v2067_v30  ;;  %v2460_v15 = vld [vmem:[#allocation9 + $0x170] sm:$0xff]  ;;  %v2458_v30 = vld [vmem:[#allocation9 + $0x160] sm:$0xff] }
 0x240   : > { %v2015_v3 = vld [vmem:[#allocation2 + $0xf8] sm:$0xff]  ;;  %2382 = vmatpush.msra.mxu2 %v2063_v32  ;;  %v2416_v32 = vld [vmem:[#allocation9 + $0x10] sm:$0xff] }
 0x241   : > { %v2047_v46 = vmul.f32 0.001953125, %v2015_v3  ;;  %v2062_v3 = vld [vmem:[#allocation8 + $0x70] sm:$0xff] }
 0x242   : > { %2342 = vmatpush.msra.mxu0 %v2062_v3  ;;  %2383 = vmatpush.msra.mxu2 %v2059_v43  ;;  %v2456_v3 = vld [vmem:[#allocation9 + $0x150] sm:$0xff]  ;;  %v2414_v43 = vld [vmem:[#allocation9] sm:$0xff] }
 0x243   : > { %3016 = vmatpush.lsf.msrb.mxu1 %v2047_v46  ;;  %3066 = vmatpush.lsf.msrb.mxu3 %v2047_v46  ;;  %v2058_v46 = vld [vmem:[#allocation8 + $0x50] sm:$0xff] }
 0x244   : > { %2343 = vmatpush.msra.mxu0 %v2058_v46  ;;  %v2454_v46 = vld [vmem:[#allocation9 + $0x140] sm:$0xff] }
 0x245   : > { %2324 = vmatpush.msra.mxu3 %v2117_v31  ;;  %3017 = vmatpush.lsf.msrb.mxu1 %v2046_v16  ;;  %v2055_v31 = vld [vmem:[#allocation8 + $0x38] sm:$0xff] }
 0x246   : > { %2344 = vmatpush.msra.mxu0 %v2054_v27  ;;  %2384 = vmatpush.msra.mxu2 %v2055_v31  ;;  %v2452_v27 = vld [vmem:[#allocation9 + $0x130] sm:$0xff] }
 0x247   : > { %3067 = vmatpush.lsf.msrb.mxu3 %v2046_v16  ;;  %2284 = vmatpush.msra.mxu1 %v2116_v20  ;;  %v2051_v16 = vld [vmem:[#allocation8 + $0x18] sm:$0xff]  ;;  %v2174_v20 = vld [vmem:[#allocation8 + $0x3f0] sm:$0xff] }
 0x248   : > { %2345 = vmatpush.msra.mxu0 %v2050_v58  ;;  %2385 = vmatpush.msra.mxu2 %v2051_v16  ;;  %v2508_v31 = vld [vmem:[#allocation9 + $0x2f0] sm:$0xff]  ;;  %v2450_v58 = vld [vmem:[#allocation9 + $0x120] sm:$0xff] }
 0x249   : > { %3018 = vmatpush.lsf.msrb.mxu1 %v2045_v10  ;;  %3068 = vmatpush.lsf.msrb.mxu3 %v2045_v10  ;;  %v2171_v10 = vld [vmem:[#allocation8 + $0x3d8] sm:$0xff]  ;;  %v2506_v16 = vld [vmem:[#allocation9 + $0x2e0] sm:$0xff] }
 0x24a   : > { %3009 = vmatmul.lmr.bf16.vlgmr.msra.gmra.1.mxu0  ;;  %3059 = vmatmul.lmr.bf16.vlgmr.msra.gmra.1.mxu2 }
 0x24b   : > { %2325 = vmatpush.msra.mxu3 %v2113_v11  ;;  %3019 = vmatpush.lsf.msrb.mxu1 %v2044_v41  ;;  %v2444_v11 = vld [vmem:[#allocation9 + $0xf0] sm:$0xff] }
 0x24c   : > { %2548 = vmatpush.msra.mxu0 %v2444_v11  ;;  %2588 = vmatpush.msra.mxu2 %v2508_v31  ;;  %v2540_v11 = vld [vmem:[#allocation9 + $0x3f0] sm:$0xff]  ;;  %v2465_v31 = vld [vmem:[#allocation9 + $0x198] sm:$0xff] }
 0x24d   : > { %3069 = vmatpush.lsf.msrb.mxu3 %v2044_v41  ;;  %2285 = vmatpush.msra.mxu1 %v2112_v6  ;;  %v2167_v41 = vld [vmem:[#allocation8 + $0x3b8] sm:$0xff]  ;;  %v2440_v6 = vld [vmem:[#allocation9 + $0xd0] sm:$0xff] }
 0x24e   : > { %2549 = vmatpush.msra.mxu0 %v2442_v51  ;;  %2589 = vmatpush.msra.mxu2 %v2506_v16  ;;  %v2538_v51 = vld [vmem:[#allocation9 + $0x3e0] sm:$0xff]  ;;  %v2463_v16 = vld [vmem:[#allocation9 + $0x188] sm:$0xff] }
 0x24f   : > { %3020 = vmatpush.lsf.msrb.mxu1 %v2043_v12  ;;  %3070 = vmatpush.lsf.msrb.mxu3 %v2043_v12  ;;  %v2163_v12 = vld [vmem:[#allocation8 + $0x398] sm:$0xff] }
 0x250   : > { %2550 = vmatpush.msra.mxu0 %v2440_v6  ;;  %v2498_v6 = vld [vmem:[#allocation9 + $0x2a0] sm:$0xff] }
 0x251   : > { %3021 = vmatpush.lsf.msrb.mxu1 %v2042_v25  ;;  %3071 = vmatpush.lsf.msrb.mxu3 %v2042_v25  ;;  %v2159_v25 = vld [vmem:[#allocation8 + $0x378] sm:$0xff] }
 0x252   : > { %2551 = vmatpush.msra.mxu0 %v2438_v52  ;;  %v2532_v52 = vld [vmem:[#allocation9 + $0x3b0] sm:$0xff] }
 0x253   : > { %3022 = vmatpush.lsf.msrb.mxu1 %v2041_v39  ;;  %3072 = vmatpush.lsf.msrb.mxu3 %v2041_v39  ;;  %v2155_v39 = vld [vmem:[#allocation8 + $0x358] sm:$0xff] }
 0x254   : > { %2552 = vmatpush.msra.mxu0 %v2436_v33  ;;  %v2492_v33 = vld [vmem:[#allocation9 + $0x270] sm:$0xff] }
 0x255   : > { %3023 = vmatpush.lsf.msrb.mxu1 %v2040_v34  ;;  %3073 = vmatpush.lsf.msrb.mxu3 %v2040_v34  ;;  %v2150_v34 = vld [vmem:[#allocation8 + $0x330] sm:$0xff] }
 0x256   : > { %2553 = vmatpush.msra.mxu0 %v2434_v23  ;;  %v2490_v23 = vld [vmem:[#allocation9 + $0x260] sm:$0xff] }
 0x257   : > { %3024 = vmatpush.lsf.msrb.mxu1 %v2039_v29  ;;  %3074 = vmatpush.lsf.msrb.mxu3 %v2039_v29  ;;  %v2432_v29 = vld [vmem:[#allocation9 + $0x90] sm:$0xff] }
 0x258   : > { %2554 = vmatpush.msra.mxu0 %v2432_v29  ;;  %v2488_v29 = vld [vmem:[#allocation9 + $0x250] sm:$0xff] }
 0x259   : > { %3025 = vmatpush.lsf.msrb.mxu1 %v2038_v13  ;;  %3075 = vmatpush.lsf.msrb.mxu3 %v2038_v13  ;;  %v2147_v13 = vld [vmem:[#allocation8 + $0x318] sm:$0xff] }
 0x25a   : > { %2555 = vmatpush.msra.mxu0 %v2430_v47  ;;  %v2486_v47 = vld [vmem:[#allocation9 + $0x240] sm:$0xff] }
 0x25b   : > { %3026 = vmatpush.lsf.msrb.mxu1 %v2037_v35  ;;  %3076 = vmatpush.lsf.msrb.mxu3 %v2037_v35  ;;  %v2142_v35 = vld [vmem:[#allocation8 + $0x2f0] sm:$0xff] }
 0x25d   : > { %3027 = vmatpush.lsf.msrb.mxu1 %v2036_v63  ;;  %3077 = vmatpush.lsf.msrb.mxu3 %v2036_v63  ;;  %v2428_v63 = vld [vmem:[#allocation9 + $0x70] sm:$0xff] }
 0x25e   : > { %2556 = vmatpush.msra.mxu0 %v2428_v63  ;;  %v2484_v63 = vld [vmem:[#allocation9 + $0x230] sm:$0xff] }
 0x25f   : > { %3028 = vmatpush.lsf.msrb.mxu1 %v2035_v61  ;;  %3078 = vmatpush.lsf.msrb.mxu3 %v2035_v61  ;;  %v2139_v61 = vld [vmem:[#allocation8 + $0x2d8] sm:$0xff] }
 0x260   : > { %2557 = vmatpush.msra.mxu0 %v2426_v2  ;;  %v2482_v2 = vld [vmem:[#allocation9 + $0x220] sm:$0xff] }
 0x261   : > { %3029 = vmatpush.lsf.msrb.mxu1 %v2034_v36  ;;  %3079 = vmatpush.lsf.msrb.mxu3 %v2034_v36  ;;  %v2134_v36 = vld [vmem:[#allocation8 + $0x2b0] sm:$0xff] }
 0x263   : > { %3030 = vmatpush.lsf.msrb.mxu1 %v2033_v9  ;;  %3080 = vmatpush.lsf.msrb.mxu3 %v2033_v9  ;;  %v2424_v9 = vld [vmem:[#allocation9 + $0x50] sm:$0xff] }
 0x264   : > { %2558 = vmatpush.msra.mxu0 %v2424_v9 }
 0x265   : > { %3031 = vmatpush.lsf.msrb.mxu1 %v2032_v38  ;;  %3081 = vmatpush.lsf.msrb.mxu3 %v2032_v38  ;;  %v2130_v38 = vld [vmem:[#allocation8 + $0x290] sm:$0xff] }
 0x266   : > { %3032 = vllmr.1.mxu1  ;;  %3082 = vllmr.1.mxu3 }
 0x267   : > { %2559 = vmatpush.msra.mxu0 %v2422_v4  ;;  %v2445_v4 = vld [vmem:[#allocation9 + $0xf8] sm:$0xff] }
 0x269   : > { %2560 = vmatpush.msra.mxu0 %v2420_v24  ;;  %v2443_v24 = vld [vmem:[#allocation9 + $0xe8] sm:$0xff] }
 0x26b   : > { %2561 = vmatpush.msra.mxu0 %v2418_v17  ;;  %v2510_v17 = vld [vmem:[#allocation9 + $0x300] sm:$0xff] }
 0x26d   : > { %2562 = vmatpush.msra.mxu0 %v2416_v32  ;;  %v2469_v32 = vld [vmem:[#allocation9 + $0x1b8] sm:$0xff] }
 0x26f   : > { %2563 = vmatpush.msra.mxu0 %v2414_v43  ;;  %v2467_v43 = vld [vmem:[#allocation9 + $0x1a8] sm:$0xff] }
 0x287   : > { %3033 = vmatmul.lmr.bf16.vlgmr.msra.gmra.1.mxu1  ;;  %3083 = vmatmul.lmr.bf16.vlgmr.msra.gmra.1.mxu3 }
 0x288   : > { %2350 = vmatpush.msra.mxu1 %v2174_v20  ;;  %2390 = vmatpush.msra.mxu3 %v2175_v21  ;;  %v2448_v20 = vld [vmem:[#allocation9 + $0x110] sm:$0xff] }
 0x289   : > { %v2504_v21 = vld [vmem:[#allocation9 + $0x2d0] sm:$0xff] }
 0x28a   : > { %2351 = vmatpush.msra.mxu1 %v2170_v14  ;;  %2391 = vmatpush.msra.mxu3 %v2171_v10  ;;  %v2446_v14 = vld [vmem:[#allocation9 + $0x100] sm:$0xff] }
 0x28b   : > { %v2502_v10 = vld [vmem:[#allocation9 + $0x2c0] sm:$0xff]  ;;  %2590 = vmatpush.msra.mxu2 %v2504_v21  ;;  %v2461_v21 = vld [vmem:[#allocation9 + $0x178] sm:$0xff] }
 0x28c   : > { %2352 = vmatpush.msra.mxu1 %v2166_v53  ;;  %2392 = vmatpush.msra.mxu3 %v2167_v41  ;;  %v2500_v53 = vld [vmem:[#allocation9 + $0x2b0] sm:$0xff] }
 0x28d   : > { %2591 = vmatpush.msra.mxu2 %v2502_v10  ;;  %v2536_v41 = vld [vmem:[#allocation9 + $0x3d0] sm:$0xff] }
 0x28e   : > { %2353 = vmatpush.msra.mxu1 %v2162_v59  ;;  %2393 = vmatpush.msra.mxu3 %v2163_v12  ;;  %v2534_v59 = vld [vmem:[#allocation9 + $0x3c0] sm:$0xff]  ;;  %v2496_v12 = vld [vmem:[#allocation9 + $0x290] sm:$0xff] }
 0x28f   : > { %2592 = vmatpush.msra.mxu2 %v2500_v53 }
 0x290   : > { %2354 = vmatpush.msra.mxu1 %v2158_v19  ;;  %2394 = vmatpush.msra.mxu3 %v2159_v25  ;;  %v2494_v19 = vld [vmem:[#allocation9 + $0x280] sm:$0xff] }
 0x291   : > { %2593 = vmatpush.msra.mxu2 %v2498_v6  ;;  %v2530_v25 = vld [vmem:[#allocation9 + $0x3a0] sm:$0xff]  ;;  %v2457_v6 = vld [vmem:[#allocation9 + $0x158] sm:$0xff] }
 0x292   : > { %2355 = vmatpush.msra.mxu1 %v2154_v18  ;;  %2395 = vmatpush.msra.mxu3 %v2155_v39  ;;  %v5050_v18 = vld [vmem:[%s5131_s4] sm:$0xf]  ;;  %v2528_v39 = vld [vmem:[#allocation9 + $0x390] sm:$0xff] }
 0x293   : > { %2594 = vmatpush.msra.mxu2 %v2496_v12  ;;  %v2455_v12 = vld [vmem:[#allocation9 + $0x148] sm:$0xff] }
 0x294   : > { %2356 = vmatpush.msra.mxu1 %v2150_v34  ;;  %2396 = vmatpush.msra.mxu3 %v2151_v55  ;;  %v2526_v34 = vld [vmem:[#allocation9 + $0x380] sm:$0xff]  ;;  %v2242_v55 = vperm.slane %v5050_v18, 0 }
 0x295   : > { %2595 = vmatpush.msra.mxu2 %v2494_v19 }
 0x296   : > { %2357 = vmatpush.msra.mxu1 %v2146_v60  ;;  %2397 = vmatpush.msra.mxu3 %v2147_v13  ;;  %v2267_v60 = vpop.f32.mrf.mxu0  ;;  %v2524_v13 = vld [vmem:[#allocation9 + $0x370] sm:$0xff] }
 0x297   : > { %2596 = vmatpush.msra.mxu2 %v2492_v33 }
 0x298   : > { %2358 = vmatpush.msra.mxu1 %v2142_v35  ;;  %2398 = vmatpush.msra.mxu3 %v2143_v48  ;;  %v2522_v35 = vld [vmem:[#allocation9 + $0x360] sm:$0xff]  ;;  %v2268_v48 = vadd.f32 %v2267_v60, %v2242_v55  ;;  %v2451_v60 = vld [vmem:[#allocation9 + $0x128] sm:$0xff] }
 0x299   : > { %2597 = vmatpush.msra.mxu2 %v2490_v23  ;;  %v2453_v23 = vld [vmem:[#allocation9 + $0x138] sm:$0xff] }
 0x29a   : > { %2359 = vmatpush.msra.mxu1 %v2138_v40  ;;  %2399 = vmatpush.msra.mxu3 %v2139_v61  ;;  %v2520_v40 = vld [vmem:[#allocation9 + $0x350] sm:$0xff]  ;;  %v2243_v61 = vperm.slane %v5050_v18, 1 }
 0x29b   : > { %2598 = vmatpush.msra.mxu2 %v2488_v29  ;;  %v2509_v29 = vld [vmem:[#allocation9 + $0x2f8] sm:$0xff] }
 0x29c   : > { %2360 = vmatpush.msra.mxu1 %v2134_v36  ;;  %2400 = vmatpush.msra.mxu3 %v2135_v8  ;;  %v2307_v8 = vpop.f32.mrf.mxu2 }
 0x29d   : > { %2599 = vmatpush.msra.mxu2 %v2486_v47 }
 0x29e   : > { %2361 = vmatpush.msra.mxu1 %v2130_v38  ;;  %2401 = vmatpush.msra.mxu3 %v2131_v26  ;;  %v2308_v26 = vadd.f32 %v2307_v8, %v2243_v61  ;;  %v2503_v61 = vld [vmem:[#allocation9 + $0x2c8] sm:$0xff] }
 0x29f   : > { %2600 = vmatpush.msra.mxu2 %v2484_v63  ;;  %v2447_v63 = vld [vmem:[#allocation9 + $0x108] sm:$0xff] }
 0x2a0   : > { %2362 = vmatpush.msra.mxu1 %v2126_v28  ;;  %2402 = vmatpush.msra.mxu3 %v2127_v5  ;;  %v2480_v28 = vld [vmem:[#allocation9 + $0x210] sm:$0xff]  ;;  %v2518_v5 = vld [vmem:[#allocation9 + $0x340] sm:$0xff]  ;;  %v2539_v8 = vld [vmem:[#allocation9 + $0x3e8] sm:$0xff] }
 0x2a1   : > { %2601 = vmatpush.msra.mxu2 %v2482_v2  ;;  %v2541_v2 = vld [vmem:[#allocation9 + $0x3f8] sm:$0xff] }
 0x2a2   : > { %2363 = vmatpush.msra.mxu1 %v2122_v49  ;;  %2403 = vmatpush.msra.mxu3 %v2123_v7  ;;  %v2478_v49 = vld [vmem:[#allocation9 + $0x200] sm:$0xff]  ;;  %v2516_v7 = vld [vmem:[#allocation9 + $0x330] sm:$0xff] }
 0x2a3   : > { %2602 = vmatpush.msra.mxu2 %v2480_v28  ;;  %v2495_v28 = vld [vmem:[#allocation9 + $0x288] sm:$0xff] }
 0x2a4   : > { %2364 = vmatpush.msra.mxu1 %v2118_v62  ;;  %2404 = vmatpush.msra.mxu3 %v2119_v50  ;;  %v2514_v50 = vld [vmem:[#allocation9 + $0x320] sm:$0xff] }
 0x2a5   : > { %2603 = vmatpush.msra.mxu2 %v2478_v49  ;;  %v2531_v49 = vld [vmem:[#allocation9 + $0x3a8] sm:$0xff] }
 0x2a6   : > { %2365 = vmatpush.msra.mxu1 %v2114_v57  ;;  %2405 = vmatpush.msra.mxu3 %v2115_v45  ;;  %v2441_v45 = vld [vmem:[#allocation9 + $0xd8] sm:$0xff] }
 0x2a7   : > { %3034 = vmatmul.lmr.bf16.vlgmr.msra.gmra.1.mxu1  ;;  %3084 = vmatmul.lmr.bf16.vlgmr.msra.gmra.1.mxu3 }
 0x2a8   : > { %2568 = vmatpush.msra.mxu1 %v2476_v56  ;;  %2608 = vmatpush.msra.mxu3 %v2540_v11  ;;  %v2421_v11 = vld [vmem:[#allocation9 + $0x38] sm:$0xff] }
 0x2aa   : > { %2569 = vmatpush.msra.mxu1 %v2474_v1  ;;  %2609 = vmatpush.msra.mxu3 %v2538_v51  ;;  %v2439_v1 = vld [vmem:[#allocation9 + $0xc8] sm:$0xff] }
 0x2ab   : > { %v2459_v51 = vld [vmem:[#allocation9 + $0x168] sm:$0xff] }
 0x2ac   : > { %2570 = vmatpush.msra.mxu1 %v2472_v37  ;;  %2610 = vmatpush.msra.mxu3 %v2536_v41  ;;  %v2477_v37 = vld [vmem:[#allocation9 + $0x1f8] sm:$0xff]  ;;  %v2419_v41 = vld [vmem:[#allocation9 + $0x28] sm:$0xff] }
 0x2ae   : > { %2571 = vmatpush.msra.mxu1 %v2470_v54  ;;  %2611 = vmatpush.msra.mxu3 %v2534_v59  ;;  %v2512_v54 = vld [vmem:[#allocation9 + $0x310] sm:$0xff]  ;;  %v2417_v59 = vld [vmem:[#allocation9 + $0x18] sm:$0xff] }
 0x2b0   : > { %2572 = vmatpush.msra.mxu1 %v2468_v42  ;;  %2612 = vmatpush.msra.mxu3 %v2532_v52  ;;  %v2437_v42 = vld [vmem:[#allocation9 + $0xb8] sm:$0xff]  ;;  %v2245_v52 = vperm.slane %v5050_v18, 3 }
 0x2b2   : > { %2573 = vmatpush.msra.mxu1 %v2466_v44  ;;  %2613 = vmatpush.msra.mxu3 %v2530_v25  ;;  %v2475_v44 = vld [vmem:[#allocation9 + $0x1e8] sm:$0xff] }
 0x2b4   : > { %2574 = vmatpush.msra.mxu1 %v2464_v22  ;;  %2614 = vmatpush.msra.mxu3 %v2528_v39  ;;  %v2435_v22 = vld [vmem:[#allocation9 + $0xa8] sm:$0xff] }
 0x2b5   : > { %v2415_v39 = vld [vmem:[#allocation9 + $0x8] sm:$0xff] }
 0x2b6   : > { %2575 = vmatpush.msra.mxu1 %v2462_v0  ;;  %2615 = vmatpush.msra.mxu3 %v2526_v34  ;;  %v2473_v0 = vld [vmem:[#allocation9 + $0x1d8] sm:$0xff] }
 0x2b8   : > { %2576 = vmatpush.msra.mxu1 %v2460_v15  ;;  %2616 = vmatpush.msra.mxu3 %v2524_v13  ;;  %v2433_v15 = vld [vmem:[#allocation9 + $0x98] sm:$0xff] }
 0x2b9   : > { %v2449_v13 = vld [vmem:[#allocation9 + $0x118] sm:$0xff] }
 0x2ba   : > { %2577 = vmatpush.msra.mxu1 %v2458_v30  ;;  %2617 = vmatpush.msra.mxu3 %v2522_v35  ;;  %v2471_v30 = vld [vmem:[#allocation9 + $0x1c8] sm:$0xff] }
 0x2bc   : > { %2578 = vmatpush.msra.mxu1 %v2456_v3  ;;  %2618 = vmatpush.msra.mxu3 %v2520_v40  ;;  %v2431_v3 = vld [vmem:[#allocation9 + $0x88] sm:$0xff] }
 0x2be   : > { %2579 = vmatpush.msra.mxu1 %v2454_v46  ;;  %2619 = vmatpush.msra.mxu3 %v2518_v5  ;;  %v2429_v46 = vld [vmem:[#allocation9 + $0x78] sm:$0xff] }
 0x2bf   : > { %v2533_v5 = vld [vmem:[#allocation9 + $0x3b8] sm:$0xff] }
 0x2c0   : > { %2580 = vmatpush.msra.mxu1 %v2452_v27  ;;  %2620 = vmatpush.msra.mxu3 %v2516_v7  ;;  %v2427_v27 = vld [vmem:[#allocation9 + $0x68] sm:$0xff] }
 0x2c1   : > { %v2491_v7 = vld [vmem:[#allocation9 + $0x268] sm:$0xff] }
 0x2c2   : > { %2581 = vmatpush.msra.mxu1 %v2450_v58  ;;  %2621 = vmatpush.msra.mxu3 %v2514_v50  ;;  %v2425_v58 = vld [vmem:[#allocation9 + $0x58] sm:$0xff] }
 0x2c3   : > { %v2489_v50 = vld [vmem:[#allocation9 + $0x258] sm:$0xff] }
 0x2c4   : > { %2582 = vmatpush.msra.mxu1 %v2448_v20  ;;  %2622 = vmatpush.msra.mxu3 %v2512_v54  ;;  %v2423_v20 = vld [vmem:[#allocation9 + $0x48] sm:$0xff] }
 0x2c5   : > { %v2483_v54 = vld [vmem:[#allocation9 + $0x228] sm:$0xff] }
 0x2c6   : > { %2583 = vmatpush.msra.mxu1 %v2446_v14  ;;  %2623 = vmatpush.msra.mxu3 %v2510_v17  ;;  %v2244_v14 = vperm.slane %v5050_v18, 2  ;;  %v2507_v18 = vld [vmem:[#allocation9 + $0x2e8] sm:$0xff]  ;;  %v2521_v17 = vld [vmem:[#allocation9 + $0x358] sm:$0xff] }
 0x2c7   : > { %v2347_v10 = vpop.f32.mrf.mxu0 }
 0x2c8   : > { %v2348_v53 = vadd.f32 %v2347_v10, %v2244_v14  ;;  %v2716_v14 = vld [vmem:[#allocation11 + $0x30] sm:$0xff]  ;;  %v2715_v10 = vld [vmem:[#allocation11 + $0x28] sm:$0xff] }
 0x2cd   : > { %v2387_v25 = vpop.f32.mrf.mxu2 }
 0x2ce   : > { %v2388_v55 = vadd.f32 %v2387_v25, %v2245_v52  ;;  %v2739_v52 = vld [vmem:[#allocation11 + $0xe8] sm:$0xff]  ;;  %v2737_v25 = vld [vmem:[#allocation11 + $0xd8] sm:$0xff] }
 0x304   : > { %v2287_v36 = vpop.f32.mrf.mxu1 }
 0x305   : > { %v5054_v9 = vadd.f32 %v2287_v36, %v2268_v48  ;;  %v2505_v48 = vld [vmem:[#allocation9 + $0x2d8] sm:$0xff] }
 0x306   : > { %v2501_v36 = vld [vmem:[#allocation9 + $0x2b8] sm:$0xff] }
 0x307   : > { %v2410_v38 = vmax.f32 %v5054_v9, 0.0  ;;  %v2499_v9 = vld [vmem:[#allocation9 + $0x2a8] sm:$0xff] }
 0x309   : > { %2564 = vmatmul.f32.vlgmr.msra.gmra.mxu0 %v2410_v38 }
 0x30a   : > { %2628 = vmatpush.msra.mxu0 %v2445_v4  ;;  %v2327_v62 = vpop.f32.mrf.mxu3  ;;  %v2535_v4 = vld [vmem:[#allocation9 + $0x3c8] sm:$0xff] }
 0x30b   : > { %v5059_v57 = vadd.f32 %v2327_v62, %v2308_v26  ;;  %v2497_v26 = vld [vmem:[#allocation9 + $0x298] sm:$0xff] }
 0x30c   : > { %2629 = vmatpush.msra.mxu0 %v2443_v24  ;;  %v2493_v24 = vld [vmem:[#allocation9 + $0x278] sm:$0xff] }
 0x30d   : > { %v2411_v56 = vmax.f32 %v5059_v57, 0.0  ;;  %v2529_v62 = vld [vmem:[#allocation9 + $0x398] sm:$0xff]  ;;  %v2527_v57 = vld [vmem:[#allocation9 + $0x388] sm:$0xff] }
 0x30e   : > { %2630 = vmatpush.msra.mxu0 %v2441_v45  ;;  %v2487_v45 = vld [vmem:[#allocation9 + $0x248] sm:$0xff] }
 0x30f   : > { %2584 = vmatmul.f32.vlgmr.msra.gmra.mxu1 %v2411_v56 }
 0x310   : > { %2631 = vmatpush.msra.mxu0 %v2439_v1  ;;  %2648 = vmatpush.msra.mxu1 %v2477_v37  ;;  %v2485_v1 = vld [vmem:[#allocation9 + $0x238] sm:$0xff]  ;;  %v2523_v37 = vld [vmem:[#allocation9 + $0x368] sm:$0xff] }
 0x312   : > { %2632 = vmatpush.msra.mxu0 %v2437_v42  ;;  %2649 = vmatpush.msra.mxu1 %v2475_v44  ;;  %v2481_v42 = vld [vmem:[#allocation9 + $0x218] sm:$0xff]  ;;  %v2519_v44 = vld [vmem:[#allocation9 + $0x348] sm:$0xff] }
 0x314   : > { %2633 = vmatpush.msra.mxu0 %v2435_v22  ;;  %2650 = vmatpush.msra.mxu1 %v2473_v0  ;;  %v2479_v22 = vld [vmem:[#allocation9 + $0x208] sm:$0xff]  ;;  %v2517_v0 = vld [vmem:[#allocation9 + $0x338] sm:$0xff] }
 0x316   : > { %2634 = vmatpush.msra.mxu0 %v2433_v15  ;;  %2651 = vmatpush.msra.mxu1 %v2471_v30  ;;  %v2515_v15 = vld [vmem:[#allocation9 + $0x328] sm:$0xff]  ;;  %v2513_v30 = vld [vmem:[#allocation9 + $0x318] sm:$0xff] }
 0x318   : > { %2635 = vmatpush.msra.mxu0 %v2431_v3  ;;  %2652 = vmatpush.msra.mxu1 %v2469_v32  ;;  %v2511_v3 = vld [vmem:[#allocation9 + $0x308] sm:$0xff]  ;;  %v2725_v32 = vld [vmem:[#allocation11 + $0x78] sm:$0xff] }
 0x31a   : > { %2636 = vmatpush.msra.mxu0 %v2429_v46  ;;  %2653 = vmatpush.msra.mxu1 %v2467_v43  ;;  %v2724_v46 = vld [vmem:[#allocation11 + $0x70] sm:$0xff]  ;;  %v2723_v43 = vld [vmem:[#allocation11 + $0x68] sm:$0xff] }
 0x31c   : > { %2637 = vmatpush.msra.mxu0 %v2427_v27  ;;  %2654 = vmatpush.msra.mxu1 %v2465_v31  ;;  %v2722_v27 = vld [vmem:[#allocation11 + $0x60] sm:$0xff]  ;;  %v2721_v31 = vld [vmem:[#allocation11 + $0x58] sm:$0xff] }
 0x31e   : > { %2638 = vmatpush.msra.mxu0 %v2425_v58  ;;  %2655 = vmatpush.msra.mxu1 %v2463_v16  ;;  %v2720_v58 = vld [vmem:[#allocation11 + $0x50] sm:$0xff]  ;;  %v2719_v16 = vld [vmem:[#allocation11 + $0x48] sm:$0xff] }
 0x320   : > { %2639 = vmatpush.msra.mxu0 %v2423_v20  ;;  %2656 = vmatpush.msra.mxu1 %v2461_v21  ;;  %v2718_v20 = vld [vmem:[#allocation11 + $0x40] sm:$0xff]  ;;  %v2717_v21 = vld [vmem:[#allocation11 + $0x38] sm:$0xff] }
 0x322   : > { %2640 = vmatpush.msra.mxu0 %v2421_v11  ;;  %2657 = vmatpush.msra.mxu1 %v2459_v51  ;;  %v2714_v11 = vld [vmem:[#allocation11 + $0x20] sm:$0xff]  ;;  %v2713_v51 = vld [vmem:[#allocation11 + $0x18] sm:$0xff] }
 0x324   : > { %v2367_v19 = vpop.f32.mrf.mxu1  ;;  %2641 = vmatpush.msra.mxu0 %v2419_v41  ;;  %2658 = vmatpush.msra.mxu1 %v2457_v6  ;;  %v2711_v41 = vld [vmem:[#allocation11 + $0x8] sm:$0xff]  ;;  %v2710_v6 = vld [vmem:[#allocation11] sm:$0xff] }
 0x325   : > { %v5066_v33 = vadd.f32 %v2367_v19, %v2348_v53  ;;  %v2712_v53 = vld [vmem:[#allocation11 + $0x10] sm:$0xff]  ;;  %v2738_v19 = vld [vmem:[#allocation11 + $0xe0] sm:$0xff] }
 0x326   : > { %2642 = vmatpush.msra.mxu0 %v2417_v59  ;;  %2659 = vmatpush.msra.mxu1 %v2455_v12  ;;  %v2741_v59 = vld [vmem:[#allocation11 + $0xf8] sm:$0xff]  ;;  %v2740_v12 = vld [vmem:[#allocation11 + $0xf0] sm:$0xff] }
 0x327   : > { %v2412_v34 = vmax.f32 %v5066_v33, 0.0  ;;  %v2736_v33 = vld [vmem:[#allocation11 + $0xd0] sm:$0xff] }
 0x328   : > { %2643 = vmatpush.msra.mxu0 %v2415_v39  ;;  %2660 = vmatpush.msra.mxu1 %v2453_v23  ;;  %v2735_v39 = vld [vmem:[#allocation11 + $0xc8] sm:$0xff]  ;;  %v2734_v23 = vld [vmem:[#allocation11 + $0xc0] sm:$0xff] }
 0x329   : > { %2604 = vmatmul.f32.vlgmr.msra.gmra.mxu2 %v2412_v34  ;;  %2644 = vmatmul.f32.vlgmr.msra.gmra.mxu0 %v2410_v38  ;;  %v2537_v38 = vld [vmem:[#allocation9 + $0x3d8] sm:$0xff] }
 0x32a   : > { %2668 = vmatpush.msra.mxu2 %v2509_v29  ;;  %v2407_v47 = vpop.f32.mrf.mxu3  ;;  %2661 = vmatpush.msra.mxu1 %v2451_v60  ;;  %v2732_v60 = vld [vmem:[#allocation11 + $0xb0] sm:$0xff] }
 0x32b   : > { %v5073_v35 = vadd.f32 %v2407_v47, %v2388_v55  ;;  %2743 = vmatpush.msra.mxu0 %v2725_v32  ;;  %v2733_v55 = vld [vmem:[#allocation11 + $0xb8] sm:$0xff] }
 0x32c   : > { %2669 = vmatpush.msra.mxu2 %v2507_v18  ;;  %2662 = vmatpush.msra.mxu1 %v2449_v13 }
 0x32d   : > { %v2413_v40 = vmax.f32 %v5073_v35, 0.0  ;;  %2744 = vmatpush.msra.mxu0 %v2724_v46  ;;  %v2731_v35 = vld [vmem:[#allocation11 + $0xa8] sm:$0xff] }
 0x32e   : > { %2670 = vmatpush.msra.mxu2 %v2505_v48  ;;  %2663 = vmatpush.msra.mxu1 %v2447_v63  ;;  %v2730_v48 = vld [vmem:[#allocation11 + $0xa0] sm:$0xff] }
 0x32f   : > { %2624 = vmatmul.f32.vlgmr.msra.gmra.mxu3 %v2413_v40  ;;  %2664 = vmatmul.f32.vlgmr.msra.gmra.mxu1 %v2411_v56  ;;  %v2525_v56 = vld [vmem:[#allocation9 + $0x378] sm:$0xff] }
 0x330   : > { %2671 = vmatpush.msra.mxu2 %v2503_v61  ;;  %2688 = vmatpush.msra.mxu3 %v2541_v2  ;;  %v2729_v61 = vld [vmem:[#allocation11 + $0x98] sm:$0xff] }
 0x331   : > { %2745 = vmatpush.msra.mxu0 %v2723_v43  ;;  %2763 = vmatpush.msra.mxu1 %v2741_v59 }
 0x332   : > { %2672 = vmatpush.msra.mxu2 %v2501_v36  ;;  %2689 = vmatpush.msra.mxu3 %v2539_v8 }
 0x333   : > { %2746 = vmatpush.msra.mxu0 %v2722_v27  ;;  %2764 = vmatpush.msra.mxu1 %v2740_v12 }
 0x334   : > { %2673 = vmatpush.msra.mxu2 %v2499_v9  ;;  %2690 = vmatpush.msra.mxu3 %v2537_v38  ;;  %v2728_v38 = vld [vmem:[#allocation11 + $0x90] sm:$0xff] }
 0x335   : > { %2747 = vmatpush.msra.mxu0 %v2721_v31  ;;  %2765 = vmatpush.msra.mxu1 %v2739_v52 }
 0x336   : > { %2674 = vmatpush.msra.mxu2 %v2497_v26  ;;  %2691 = vmatpush.msra.mxu3 %v2535_v4  ;;  %v2727_v26 = vld [vmem:[#allocation11 + $0x88] sm:$0xff]  ;;  %v2726_v4 = vld [vmem:[#allocation11 + $0x80] sm:$0xff] }
 0x337   : > { %2748 = vmatpush.msra.mxu0 %v2720_v58  ;;  %2766 = vmatpush.msra.mxu1 %v2738_v19 }
 0x338   : > { %2675 = vmatpush.msra.mxu2 %v2495_v28  ;;  %2692 = vmatpush.msra.mxu3 %v2533_v5 }
 0x339   : > { %2749 = vmatpush.msra.mxu0 %v2719_v16  ;;  %2767 = vmatpush.msra.mxu1 %v2737_v25 }
 0x33a   : > { %2676 = vmatpush.msra.mxu2 %v2493_v24  ;;  %2693 = vmatpush.msra.mxu3 %v2531_v49 }
 0x33b   : > { %2750 = vmatpush.msra.mxu0 %v2718_v20  ;;  %2768 = vmatpush.msra.mxu1 %v2736_v33 }
 0x33c   : > { %2677 = vmatpush.msra.mxu2 %v2491_v7  ;;  %2694 = vmatpush.msra.mxu3 %v2529_v62 }
 0x33d   : > { %2751 = vmatpush.msra.mxu0 %v2717_v21  ;;  %2769 = vmatpush.msra.mxu1 %v2735_v39 }
 0x33e   : > { %2678 = vmatpush.msra.mxu2 %v2489_v50  ;;  %2695 = vmatpush.msra.mxu3 %v2527_v57 }
 0x33f   : > { %2752 = vmatpush.msra.mxu0 %v2716_v14  ;;  %2770 = vmatpush.msra.mxu1 %v2734_v23 }
 0x340   : > { %2679 = vmatpush.msra.mxu2 %v2487_v45  ;;  %2696 = vmatpush.msra.mxu3 %v2525_v56 }
 0x341   : > { %2753 = vmatpush.msra.mxu0 %v2715_v10  ;;  %2771 = vmatpush.msra.mxu1 %v2733_v55 }
 0x342   : > { %2680 = vmatpush.msra.mxu2 %v2485_v1  ;;  %2697 = vmatpush.msra.mxu3 %v2523_v37  ;;  %v2742_v1 = vld [vmem:[%s5135_s8] sm:$0x1] }
 0x343   : > { %2754 = vmatpush.msra.mxu0 %v2714_v11  ;;  %2772 = vmatpush.msra.mxu1 %v2732_v60 }
 0x344   : > { %2681 = vmatpush.msra.mxu2 %v2483_v54  ;;  %2698 = vmatpush.msra.mxu3 %v2521_v17 }
 0x345   : > { %2755 = vmatpush.msra.mxu0 %v2713_v51  ;;  %2773 = vmatpush.msra.mxu1 %v2731_v35 }
 0x346   : > { %2682 = vmatpush.msra.mxu2 %v2481_v42  ;;  %2699 = vmatpush.msra.mxu3 %v2519_v44 }
 0x347   : > { %2756 = vmatpush.msra.mxu0 %v2712_v53  ;;  %2774 = vmatpush.msra.mxu1 %v2730_v48 }
 0x348   : > { %2683 = vmatpush.msra.mxu2 %v2479_v22  ;;  %2700 = vmatpush.msra.mxu3 %v2517_v0 }
 0x349   : > { %2684 = vmatmul.f32.vlgmr.msra.gmra.mxu2 %v2412_v34  ;;  %2757 = vmatpush.msra.mxu0 %v2711_v41  ;;  %v2542_v34 = vld [vmem:[%s5133_s6] sm:$0x3] }
 0x34a   : > { %2701 = vmatpush.msra.mxu3 %v2515_v15  ;;  %v2544_v29 = vperm.slane %v2542_v34, 0  ;;  %2775 = vmatpush.msra.mxu1 %v2729_v61  ;;  %v2545_v28 = vperm.slane %v2542_v34, 1 }
 0x34b   : > { %2758 = vmatpush.msra.mxu0 %v2710_v6 }
 0x34c   : > { %2702 = vmatpush.msra.mxu3 %v2513_v30  ;;  %2776 = vmatpush.msra.mxu1 %v2728_v38 }
 0x34e   : > { %2703 = vmatpush.msra.mxu3 %v2511_v3  ;;  %2777 = vmatpush.msra.mxu1 %v2727_v26 }
 0x34f   : > { %2704 = vmatmul.f32.vlgmr.msra.gmra.mxu3 %v2413_v40 }
 0x350   : > { %2778 = vmatpush.msra.mxu1 %v2726_v4 }
 0x386   : > { %v2565_v18 = vpop.f32.mrf.mxu0 }
 0x387   : > { %v2566_v13 = vadd.f32 %v2565_v18, %v2544_v29 }
 0x38c   : > { %v2585_v47 = vpop.f32.mrf.mxu1 }
 0x38d   : > { %v2586_v40 = vadd.f32 %v2585_v47, %v2566_v13 }
 0x3a6   : > { %v2645_v5 = vpop.f32.mrf.mxu0 }
 0x3a7   : > { %v2646_v49 = vadd.f32 %v2645_v5, %v2545_v28 }
 0x3ac   : > { %v2605_v63 = vpop.f32.mrf.mxu2  ;;  %v2665_v24 = vpop.f32.mrf.mxu1 }
 0x3ad   : > { %v2606_v2 = vadd.f32 %v2605_v63, %v2586_v40  ;;  %v2666_v62 = vadd.f32 %v2665_v24, %v2646_v49 }
 0x3b2   : > { %v2625_v36 = vpop.f32.mrf.mxu3 }
 0x3b3   : > { %v2626_v8 = vadd.f32 %v2625_v36, %v2606_v2 }
 0x3b5   : > { %v2708_v9 = vmax.f32 %v2626_v8, 0.0 }
 0x3b7   : > { %2759 = vmatmul.f32.vlgmr.msra.gmra.mxu0 %v2708_v9 }
 0x3cc   : > { %v2685_v7 = vpop.f32.mrf.mxu2 }
 0x3cd   : > { %v2686_v50 = vadd.f32 %v2685_v7, %v2666_v62 }
 0x3d2   : > { %v2705_v57 = vpop.f32.mrf.mxu3 }
 0x3d3   : > { %v2706_v45 = vadd.f32 %v2705_v57, %v2686_v50 }
 0x3d5   : > { %v2709_v56 = vmax.f32 %v2706_v45, 0.0 }
 0x3d7   : > { %2779 = vmatmul.f32.vlgmr.msra.gmra.mxu1 %v2709_v56 }
 0x434   : > { %v2760_v37 = vpop.f32.mrf.mxu0 }
 0x435   : > { %v2761_v54 = vadd.f32 %v2760_v37, %v2742_v1 }
 0x454   : > { %v2780_v17 = vpop.f32.mrf.mxu1 }
 0x455   : > { %v2781_v42 = vadd.f32 %v2780_v17, %v2761_v54 }
 0x457   : > { %2784 = vst.msk [vmem:[%s469_s17] sm:$0x1] %vm2783_vm1, %v2781_v42 }
 0x458   : > { %3380 = shalt.err (!%p3377_p9)
}
 0x459   : > { %3105 = dma.vmem_to_hbm [thread:$0]  (%p3558_p4), %s2810_s25, 16, %s2812_s27, %s2795_s28  }
 0x45a PF: > { %s5239_s2 = sld [smem:[#allocation20_spill]] }
 0x45b   : > { %s5240_s15 = sld [smem:[#allocation17_spill]] }
 0x460   : > { %p3137_p10 = scmp.ge.s32.totalorder %s5239_s2, 2 }
 0x461   : > { %s2835_s26 = sand.u32 1, %s5240_s15  }
 0x462   : > { %p3124_p11 = pnand %p3137_p10, %p3565_p8  ;;  %s2836_s19 = scalar_lea.sflag [#allocation5], %s2835_s26 }
 0x464   : > { %p3125_p12 = pneg %p3124_p11 }
 0x466   : > { %3418 = dma.done.wait (%p3125_p12), %s2836_s19, 16  }
 0x467   : > { %3420 = vsyncadd (%p3125_p12), %s2836_s19, 4294967280  ;;  %s27_s18 = sadd.s32 1, %s5239_s2   ;;  %s5242_s5 = sld [smem:[#allocation18_spill]] }
 0x468   : > { %p24_p13 = scmp.ge.s32.totalorder %s27_s18, 4   ;;  %s5243_s15 = sld [smem:[#allocation23_spill]] }
 0x469   : > { %s5244_s16 = sld [smem:[#allocation19_spill]]  ;;  %s5246_s13 = smov %s3427_s14 }
 0x46a   : > { %s5245_s17 = sld [smem:[#allocation21_spill]]  ;;  %26 = sbr.rel (!%p24_p13) target bundleno = 10 (0xa), region = 132 }
 0x46d   : > { %s5247_s14 = smov %s5242_s5 }
 0x46f   :  { %2841 = vsyncpa [#allocation4], 1 }
 0x470   :  { %2843 = vsyncpa [#allocation4 + $0x1], 1 }
 0x471   :  { %2844 = vsyncpa [#allocation7], 1 }
 0x472   :  { %2845 = vsyncpa [#allocation10], 1 }
 0x473   :  { %2846 = vsyncpa [#allocation5], 1 }
 0x474   :  { %2848 = vsyncpa [#allocation5 + $0x1], 1 }

</bundles_post_ra>
